<compile_context>
chip_gen: v5e
topology: v5e:2x2
jax: 0.10.0
libtpu: 0.0.40
codegen_flags: <defaults>
</compile_context>

<pallas_src>
import functools

import jax
import jax.numpy as jnp
import numpy as np
from jax import lax
from jax.experimental import pallas as pl
from jax.experimental.pallas import tpu as pltpu

# Architecture constants implied by the module (im_size = (3, 32, 32)).
CIN, H, W = 3, 32, 32
COUT, KH, KW = 32, 3, 3
KP = 128                      # per-dy band width: (W+2)*CIN = 102 padded to 128 lanes
LANES = W * COUT              # 1024 conv-output lanes per image row


# ---------------------------------------------------------------------------
# Fused kernel: conv3x3 + ReLU + flatten + Linear + Softmax (one grid step
# per group of `tb` images; all weights resident in VMEM).
# ---------------------------------------------------------------------------
def fused_cnn_kernel(x_ref, w_ref, wl_ref, b_ref, probs_ref, scores_ref, *,
                     tb, n_classes):
    # ---- conv3x3 (padding=1, no bias) as ONE aligned MXU matmul, then ReLU ----
    xb = x_ref[0]                                              # (tb*H, KH*KP)
    conv = jnp.dot(xb, w_ref[...],
                   preferred_element_type=jnp.float32)         # (tb*H, W*COUT) f32
    feat = jnp.maximum(conv, 0.0).astype(wl_ref.dtype)         # stays in VMEM

    # ---- flatten + Linear on the MXU ----
    # feat rows are interleaved as (h, t); wl_ref[h] is (n_classes, W*COUT).
    acc = jnp.zeros((tb, n_classes), jnp.float32)
    for h in range(H):                                         # static unroll
        fh = feat[h * tb:(h + 1) * tb, :]                      # (tb, W*COUT)
        acc = acc + lax.dot_general(
            fh, wl_ref[h],
            dimension_numbers=(((1,), (1,)), ((), ())),        # fh @ wl[h].T
            preferred_element_type=jnp.float32)                # (tb, n_classes)

    scores = acc + b_ref[...]                                  # (tb, n_classes)
    scores_ref[0] = scores

    # ---- Softmax over classes (lane axis) ----
    m = jnp.max(scores, axis=1, keepdims=True)
    e = jnp.exp(scores - m)
    den = jnp.sum(e, axis=1, keepdims=True)
    probs_ref[0] = e * pl.reciprocal(den, approx=True)


def onelayercnn_fused(x_stk, w_cat, wl, bias, *, tb):
    g = x_stk.shape[0]
    n_classes = wl.shape[1]
    kernel = functools.partial(fused_cnn_kernel, tb=tb, n_classes=n_classes)
    probs, scores = pl.pallas_call(
        kernel,
        out_shape=(
            jax.ShapeDtypeStruct((g, tb, n_classes), jnp.float32),   # softmax
            jax.ShapeDtypeStruct((g, tb, n_classes), jnp.float32),   # raw scores
        ),
        grid=(g,),
        in_specs=[
            # stacked conv-input rows for this image group (pipelined over grid)
            pl.BlockSpec((1, tb * H, KH * KP), lambda i: (i, 0, 0)),
            # banded conv weight: grid-invariant index map -> resident in VMEM
            pl.BlockSpec((KH * KP, LANES), lambda i: (0, 0)),
            # classifier weight (H, n_classes, W*COUT): resident in VMEM
            pl.BlockSpec((H, n_classes, LANES), lambda i: (0, 0, 0)),
            # bias (1, n_classes): resident
            pl.BlockSpec((1, n_classes), lambda i: (0, 0)),
        ],
        out_specs=(
            pl.BlockSpec((1, tb, n_classes), lambda i: (i, 0, 0)),
            pl.BlockSpec((1, tb, n_classes), lambda i: (i, 0, 0)),
        ),
        compiler_params=pltpu.CompilerParams(
            dimension_semantics=("parallel",)),   # v7x: split image groups over TCs
    )(x_stk, w_cat, wl, bias)
    return probs, scores


# ---------------------------------------------------------------------------
# One-time parameter repacking (hoisted out of the per-forward path)
# ---------------------------------------------------------------------------
def prepare_params(w_conv_pt, w_lin_pt, b_lin_pt, compute_dtype=jnp.bfloat16):
    """w_conv_pt: (COUT,CIN,KH,KW); w_lin_pt: (NC, COUT*H*W); b_lin_pt: (NC,)."""
    n_classes = w_lin_pt.shape[0]
    wk = np.asarray(w_conv_pt, np.float32)                    # (COUT, CIN, KH, KW)

    # Conv weight: one KP-wide band per dy, concatenated along K (rows >=102 zero).
    # w_cat[dy*KP + (w+dx)*CIN + ci, w*COUT + co] = wk[co, ci, dy, dx]
    w_cat = np.zeros((KH * KP, LANES), np.float32)
    for dy in range(KH):
        for dx in range(KW):
            for w in range(W):
                r0 = dy * KP + (w + dx) * CIN
                w_cat[r0:r0 + CIN, w * COUT:(w + 1) * COUT] = wk[:, :, dy, dx].T

    # Linear weight: PyTorch flatten order (co, h, w) -> [h, c, w*COUT + co].
    wl = np.asarray(w_lin_pt, np.float32).reshape(n_classes, COUT, H, W)
    wl = np.transpose(wl, (2, 0, 3, 1)).reshape(H, n_classes, LANES)
    bias = np.asarray(b_lin_pt, np.float32).reshape(1, n_classes)

    return (jnp.asarray(w_cat, dtype=compute_dtype),
            jnp.asarray(wl, dtype=compute_dtype),
            jnp.asarray(bias, dtype=jnp.float32))


# ---------------------------------------------------------------------------
# Forward pass (only cheap image re-layout remains outside the kernel)
# ---------------------------------------------------------------------------
@functools.partial(jax.jit, static_argnames=("tb",))
def onelayercnn_forward(images_nchw, w_cat, wl, bias, *, tb=1):
    """images_nchw: (N, 3, 32, 32) -> (softmax_probs, unnormalised_scores)."""
    n = images_nchw.shape[0]
    assert n % tb == 0, "batch must be divisible by the image-stacking factor"
    g = n // tb
    x = jnp.transpose(images_nchw, (0, 2, 3, 1))              # NHWC
    x = jnp.pad(x, ((0, 0), (1, 1), (1, 1), (0, 0)))          # conv padding=1
    x = x.reshape(n, H + 2, (W + 2) * CIN)                    # (N, 34, 102)
    x = jnp.pad(x, ((0, 0), (0, 0), (0, KP - (W + 2) * CIN)))  # lane-align -> 128
    # one K-band per dy shift, concatenated along lanes -> single conv matmul
    bands = jnp.concatenate([x[:, dy:dy + H, :] for dy in range(KH)], axis=-1)
    # interleave tb images along the matmul M axis: row index = h*tb + t
    x_stk = (bands.reshape(g, tb, H, KH * KP)
                  .transpose(0, 2, 1, 3)
                  .reshape(g, tb * H, KH * KP)
                  .astype(w_cat.dtype))
    probs, scores = onelayercnn_fused(x_stk, w_cat, wl, bias, tb=tb)
    return probs.reshape(n, -1), scores.reshape(n, -1)


# ---------------------------------------------------------------------------
# Pure-JAX reference (exact PyTorch forward semantics, NCHW)
# ---------------------------------------------------------------------------
def reference_forward(images_nchw, w_conv_pt, w_lin_pt, b_lin_pt):
    y = lax.conv_general_dilated(
        images_nchw, w_conv_pt, window_strides=(1, 1),
        padding=((1, 1), (1, 1)),
        dimension_numbers=("NCHW", "OIHW", "NCHW"))
    y = jnp.maximum(y, 0.0)
    flat = y.reshape(y.shape[0], -1)
    scores = flat @ w_lin_pt.T + b_lin_pt
    probs = jax.nn.softmax(scores, axis=1)
    return probs, scores


if __name__ == "__main__":
    N, n_classes = 2, 10

    key = jax.random.PRNGKey(0)
    k_img, k_wc, k_wl, k_bl = jax.random.split(key, 4)

    images = jax.random.normal(k_img, (N, CIN, H, W), dtype=jnp.float32)
    # Deterministic synthetic parameters (not a checkpoint load)
    w_conv = 0.05 * jax.random.normal(k_wc, (COUT, CIN, KH, KW), dtype=jnp.float32)
    w_lin = 0.01 * jax.random.normal(k_wl, (n_classes, COUT * H * W), dtype=jnp.float32)
    b_lin = 0.01 * jax.random.normal(k_bl, (n_classes,), dtype=jnp.float32)

    ref_probs, ref_scores = reference_forward(images, w_conv, w_lin, b_lin)

    # --- strict f32 check (tb=1: one image per grid step, batch parallel) ---
    w_cat32, wl32, bias32 = prepare_params(w_conv, w_lin, b_lin,
                                           compute_dtype=jnp.float32)
    probs, scores = onelayercnn_forward(images, w_cat32, wl32, bias32, tb=1)
    jax.block_until_ready((probs, scores))
    np.testing.assert_allclose(np.asarray(scores), np.asarray(ref_scores),
                               rtol=1e-4, atol=2e-3)
    np.testing.assert_allclose(np.asarray(probs), np.asarray(ref_probs),
                               rtol=1e-3, atol=1e-3)

    # --- bf16 fast path, tb=2 (both images stacked into one M=64 matmul) ---
    w_catbf, wlbf, biasbf = prepare_params(w_conv, w_lin, b_lin,
                                           compute_dtype=jnp.bfloat16)
    probs_bf, scores_bf = onelayercnn_forward(images, w_catbf, wlbf, biasbf, tb=2)
    jax.block_until_ready((probs_bf, scores_bf))
    np.testing.assert_allclose(np.asarray(scores_bf), np.asarray(ref_scores),
                               rtol=2e-2, atol=1e-2)
    np.testing.assert_allclose(np.asarray(probs_bf), np.asarray(ref_probs),
                               rtol=2e-2, atol=5e-3)

    print("KERNEL_OK")
</pallas_src>

<mosaic_0001>
module attributes {stable_mosaic.version = 11 : i64} {
  func.func @fused_cnn_kernel(%arg0: i32, %arg1: memref<1x32x384xf32, #tpu.memory_space<vmem>>, %arg2: memref<384x1024xf32, #tpu.memory_space<vmem>>, %arg3: memref<32x10x1024xf32, #tpu.memory_space<vmem>>, %arg4: memref<1x10xf32, #tpu.memory_space<vmem>>, %arg5: memref<1x1x10xf32, #tpu.memory_space<vmem>>, %arg6: memref<1x1x10xf32, #tpu.memory_space<vmem>>) attributes {dimension_semantics = [#tpu.dimension_semantics<parallel>], iteration_bounds = array<i64: 2>, scalar_prefetch = 0 : i64, scratch_operands = 0 : i64, tpu.core_type = #tpu.core_type<tc>, window_params = [{transform_indices = @transform_0, window_bounds = array<i64: 1, 32, 384>}, {pipeline_mode = #tpu.pipeline_mode<synchronous>, transform_indices = @transform_1, window_bounds = array<i64: 384, 1024>}, {pipeline_mode = #tpu.pipeline_mode<synchronous>, transform_indices = @transform_2, window_bounds = array<i64: 32, 10, 1024>}, {pipeline_mode = #tpu.pipeline_mode<synchronous>, transform_indices = @transform_3, window_bounds = array<i64: 1, 10>}, {transform_indices = @transform_4, window_bounds = array<i64: 1, 1, 10>}, {transform_indices = @transform_5, window_bounds = array<i64: 1, 1, 10>}]} {
    %c0 = arith.constant 0 : index
    %c0_0 = arith.constant 0 : index
    %c0_1 = arith.constant 0 : index
    %0 = vector.load %arg1[%c0, %c0_0, %c0_1] : memref<1x32x384xf32, #tpu.memory_space<vmem>>, vector<1x32x384xf32>
    %1 = vector.shape_cast %0 : vector<1x32x384xf32> to vector<32x384xf32>
    %c0_2 = arith.constant 0 : index
    %c0_3 = arith.constant 0 : index
    %2 = vector.load %arg2[%c0_2, %c0_3] : memref<384x1024xf32, #tpu.memory_space<vmem>>, vector<384x1024xf32>
    %cst = arith.constant dense<0.000000e+00> : vector<32x1024xf32>
    %3 = tpu.matmul %1, %2, %cst {dimension_numbers = #tpu.dot_dimension_numbers<[1], [0], [0], [1], [0, 0, 1, 1], [], []>} : vector<32x384xf32>, vector<384x1024xf32>, vector<32x1024xf32> -> vector<32x1024xf32>
    %cst_4 = arith.constant 0.000000e+00 : f32
    %4 = vector.broadcast %cst_4 : f32 to vector<32x1024xf32>
    %5 = arith.maximumf %3, %4 : vector<32x1024xf32>
    %cst_5 = arith.constant 0.000000e+00 : f32
    %6 = vector.broadcast %cst_5 : f32 to vector<1x10xf32>
    %7 = vector.extract_strided_slice %5 {offsets = [0, 0], sizes = [1, 1024], strides = [1, 1]} : vector<32x1024xf32> to vector<1x1024xf32>
    %c0_6 = arith.constant 0 : index
    %c0_7 = arith.constant 0 : index
    %c0_8 = arith.constant 0 : index
    %8 = vector.load %arg3[%c0_6, %c0_7, %c0_8] : memref<32x10x1024xf32, #tpu.memory_space<vmem>>, vector<1x10x1024xf32>
    %9 = vector.shape_cast %8 : vector<1x10x1024xf32> to vector<10x1024xf32>
    %cst_9 = arith.constant dense<0.000000e+00> : vector<1x10xf32>
    %10 = tpu.matmul %7, %9, %cst_9 {dimension_numbers = #tpu.dot_dimension_numbers<[1], [1], [0], [0], [0, 0, 1, 0], [], []>} : vector<1x1024xf32>, vector<10x1024xf32>, vector<1x10xf32> -> vector<1x10xf32>
    %11 = arith.addf %6, %10 : vector<1x10xf32>
    %12 = vector.extract_strided_slice %5 {offsets = [1, 0], sizes = [1, 1024], strides = [1, 1]} : vector<32x1024xf32> to vector<1x1024xf32>
    %c1 = arith.constant 1 : index
    %c0_10 = arith.constant 0 : index
    %c0_11 = arith.constant 0 : index
    %13 = vector.load %arg3[%c1, %c0_10, %c0_11] : memref<32x10x1024xf32, #tpu.memory_space<vmem>>, vector<1x10x1024xf32>
    %14 = vector.shape_cast %13 : vector<1x10x1024xf32> to vector<10x1024xf32>
    %cst_12 = arith.constant dense<0.000000e+00> : vector<1x10xf32>
    %15 = tpu.matmul %12, %14, %cst_12 {dimension_numbers = #tpu.dot_dimension_numbers<[1], [1], [0], [0], [0, 0, 1, 0], [], []>} : vector<1x1024xf32>, vector<10x1024xf32>, vector<1x10xf32> -> vector<1x10xf32>
    %16 = arith.addf %11, %15 : vector<1x10xf32>
    %17 = vector.extract_strided_slice %5 {offsets = [2, 0], sizes = [1, 1024], strides = [1, 1]} : vector<32x1024xf32> to vector<1x1024xf32>
    %c2 = arith.constant 2 : index
    %c0_13 = arith.constant 0 : index
    %c0_14 = arith.constant 0 : index
    %18 = vector.load %arg3[%c2, %c0_13, %c0_14] : memref<32x10x1024xf32, #tpu.memory_space<vmem>>, vector<1x10x1024xf32>
    %19 = vector.shape_cast %18 : vector<1x10x1024xf32> to vector<10x1024xf32>
    %cst_15 = arith.constant dense<0.000000e+00> : vector<1x10xf32>
    %20 = tpu.matmul %17, %19, %cst_15 {dimension_numbers = #tpu.dot_dimension_numbers<[1], [1], [0], [0], [0, 0, 1, 0], [], []>} : vector<1x1024xf32>, vector<10x1024xf32>, vector<1x10xf32> -> vector<1x10xf32>
    %21 = arith.addf %16, %20 : vector<1x10xf32>
    %22 = vector.extract_strided_slice %5 {offsets = [3, 0], sizes = [1, 1024], strides = [1, 1]} : vector<32x1024xf32> to vector<1x1024xf32>
    %c3 = arith.constant 3 : index
    %c0_16 = arith.constant 0 : index
    %c0_17 = arith.constant 0 : index
    %23 = vector.load %arg3[%c3, %c0_16, %c0_17] : memref<32x10x1024xf32, #tpu.memory_space<vmem>>, vector<1x10x1024xf32>
    %24 = vector.shape_cast %23 : vector<1x10x1024xf32> to vector<10x1024xf32>
    %cst_18 = arith.constant dense<0.000000e+00> : vector<1x10xf32>
    %25 = tpu.matmul %22, %24, %cst_18 {dimension_numbers = #tpu.dot_dimension_numbers<[1], [1], [0], [0], [0, 0, 1, 0], [], []>} : vector<1x1024xf32>, vector<10x1024xf32>, vector<1x10xf32> -> vector<1x10xf32>
    %26 = arith.addf %21, %25 : vector<1x10xf32>
    %27 = vector.extract_strided_slice %5 {offsets = [4, 0], sizes = [1, 1024], strides = [1, 1]} : vector<32x1024xf32> to vector<1x1024xf32>
    %c4 = arith.constant 4 : index
    %c0_19 = arith.constant 0 : index
    %c0_20 = arith.constant 0 : index
    %28 = vector.load %arg3[%c4, %c0_19, %c0_20] : memref<32x10x1024xf32, #tpu.memory_space<vmem>>, vector<1x10x1024xf32>
    %29 = vector.shape_cast %28 : vector<1x10x1024xf32> to vector<10x1024xf32>
    %cst_21 = arith.constant dense<0.000000e+00> : vector<1x10xf32>
    %30 = tpu.matmul %27, %29, %cst_21 {dimension_numbers = #tpu.dot_dimension_numbers<[1], [1], [0], [0], [0, 0, 1, 0], [], []>} : vector<1x1024xf32>, vector<10x1024xf32>, vector<1x10xf32> -> vector<1x10xf32>
    %31 = arith.addf %26, %30 : vector<1x10xf32>
    %32 = vector.extract_strided_slice %5 {offsets = [5, 0], sizes = [1, 1024], strides = [1, 1]} : vector<32x1024xf32> to vector<1x1024xf32>
    %c5 = arith.constant 5 : index
    %c0_22 = arith.constant 0 : index
    %c0_23 = arith.constant 0 : index
    %33 = vector.load %arg3[%c5, %c0_22, %c0_23] : memref<32x10x1024xf32, #tpu.memory_space<vmem>>, vector<1x10x1024xf32>
    %34 = vector.shape_cast %33 : vector<1x10x1024xf32> to vector<10x1024xf32>
    %cst_24 = arith.constant dense<0.000000e+00> : vector<1x10xf32>
    %35 = tpu.matmul %32, %34, %cst_24 {dimension_numbers = #tpu.dot_dimension_numbers<[1], [1], [0], [0], [0, 0, 1, 0], [], []>} : vector<1x1024xf32>, vector<10x1024xf32>, vector<1x10xf32> -> vector<1x10xf32>
    %36 = arith.addf %31, %35 : vector<1x10xf32>
    %37 = vector.extract_strided_slice %5 {offsets = [6, 0], sizes = [1, 1024], strides = [1, 1]} : vector<32x1024xf32> to vector<1x1024xf32>
    %c6 = arith.constant 6 : index
    %c0_25 = arith.constant 0 : index
    %c0_26 = arith.constant 0 : index
    %38 = vector.load %arg3[%c6, %c0_25, %c0_26] : memref<32x10x1024xf32, #tpu.memory_space<vmem>>, vector<1x10x1024xf32>
    %39 = vector.shape_cast %38 : vector<1x10x1024xf32> to vector<10x1024xf32>
    %cst_27 = arith.constant dense<0.000000e+00> : vector<1x10xf32>
    %40 = tpu.matmul %37, %39, %cst_27 {dimension_numbers = #tpu.dot_dimension_numbers<[1], [1], [0], [0], [0, 0, 1, 0], [], []>} : vector<1x1024xf32>, vector<10x1024xf32>, vector<1x10xf32> -> vector<1x10xf32>
    %41 = arith.addf %36, %40 : vector<1x10xf32>
    %42 = vector.extract_strided_slice %5 {offsets = [7, 0], sizes = [1, 1024], strides = [1, 1]} : vector<32x1024xf32> to vector<1x1024xf32>
    %c7 = arith.constant 7 : index
    %c0_28 = arith.constant 0 : index
    %c0_29 = arith.constant 0 : index
    %43 = vector.load %arg3[%c7, %c0_28, %c0_29] : memref<32x10x1024xf32, #tpu.memory_space<vmem>>, vector<1x10x1024xf32>
    %44 = vector.shape_cast %43 : vector<1x10x1024xf32> to vector<10x1024xf32>
    %cst_30 = arith.constant dense<0.000000e+00> : vector<1x10xf32>
    %45 = tpu.matmul %42, %44, %cst_30 {dimension_numbers = #tpu.dot_dimension_numbers<[1], [1], [0], [0], [0, 0, 1, 0], [], []>} : vector<1x1024xf32>, vector<10x1024xf32>, vector<1x10xf32> -> vector<1x10xf32>
    %46 = arith.addf %41, %45 : vector<1x10xf32>
    %47 = vector.extract_strided_slice %5 {offsets = [8, 0], sizes = [1, 1024], strides = [1, 1]} : vector<32x1024xf32> to vector<1x1024xf32>
    %c8 = arith.constant 8 : index
    %c0_31 = arith.constant 0 : index
    %c0_32 = arith.constant 0 : index
    %48 = vector.load %arg3[%c8, %c0_31, %c0_32] : memref<32x10x1024xf32, #tpu.memory_space<vmem>>, vector<1x10x1024xf32>
    %49 = vector.shape_cast %48 : vector<1x10x1024xf32> to vector<10x1024xf32>
    %cst_33 = arith.constant dense<0.000000e+00> : vector<1x10xf32>
    %50 = tpu.matmul %47, %49, %cst_33 {dimension_numbers = #tpu.dot_dimension_numbers<[1], [1], [0], [0], [0, 0, 1, 0], [], []>} : vector<1x1024xf32>, vector<10x1024xf32>, vector<1x10xf32> -> vector<1x10xf32>
    %51 = arith.addf %46, %50 : vector<1x10xf32>
    %52 = vector.extract_strided_slice %5 {offsets = [9, 0], sizes = [1, 1024], strides = [1, 1]} : vector<32x1024xf32> to vector<1x1024xf32>
    %c9 = arith.constant 9 : index
    %c0_34 = arith.constant 0 : index
    %c0_35 = arith.constant 0 : index
    %53 = vector.load %arg3[%c9, %c0_34, %c0_35] : memref<32x10x1024xf32, #tpu.memory_space<vmem>>, vector<1x10x1024xf32>
    %54 = vector.shape_cast %53 : vector<1x10x1024xf32> to vector<10x1024xf32>
    %cst_36 = arith.constant dense<0.000000e+00> : vector<1x10xf32>
    %55 = tpu.matmul %52, %54, %cst_36 {dimension_numbers = #tpu.dot_dimension_numbers<[1], [1], [0], [0], [0, 0, 1, 0], [], []>} : vector<1x1024xf32>, vector<10x1024xf32>, vector<1x10xf32> -> vector<1x10xf32>
    %56 = arith.addf %51, %55 : vector<1x10xf32>
    %57 = vector.extract_strided_slice %5 {offsets = [10, 0], sizes = [1, 1024], strides = [1, 1]} : vector<32x1024xf32> to vector<1x1024xf32>
    %c10 = arith.constant 10 : index
    %c0_37 = arith.constant 0 : index
    %c0_38 = arith.constant 0 : index
    %58 = vector.load %arg3[%c10, %c0_37, %c0_38] : memref<32x10x1024xf32, #tpu.memory_space<vmem>>, vector<1x10x1024xf32>
    %59 = vector.shape_cast %58 : vector<1x10x1024xf32> to vector<10x1024xf32>
    %cst_39 = arith.constant dense<0.000000e+00> : vector<1x10xf32>
    %60 = tpu.matmul %57, %59, %cst_39 {dimension_numbers = #tpu.dot_dimension_numbers<[1], [1], [0], [0], [0, 0, 1, 0], [], []>} : vector<1x1024xf32>, vector<10x1024xf32>, vector<1x10xf32> -> vector<1x10xf32>
    %61 = arith.addf %56, %60 : vector<1x10xf32>
    %62 = vector.extract_strided_slice %5 {offsets = [11, 0], sizes = [1, 1024], strides = [1, 1]} : vector<32x1024xf32> to vector<1x1024xf32>
    %c11 = arith.constant 11 : index
    %c0_40 = arith.constant 0 : index
    %c0_41 = arith.constant 0 : index
    %63 = vector.load %arg3[%c11, %c0_40, %c0_41] : memref<32x10x1024xf32, #tpu.memory_space<vmem>>, vector<1x10x1024xf32>
    %64 = vector.shape_cast %63 : vector<1x10x1024xf32> to vector<10x1024xf32>
    %cst_42 = arith.constant dense<0.000000e+00> : vector<1x10xf32>
    %65 = tpu.matmul %62, %64, %cst_42 {dimension_numbers = #tpu.dot_dimension_numbers<[1], [1], [0], [0], [0, 0, 1, 0], [], []>} : vector<1x1024xf32>, vector<10x1024xf32>, vector<1x10xf32> -> vector<1x10xf32>
    %66 = arith.addf %61, %65 : vector<1x10xf32>
    %67 = vector.extract_strided_slice %5 {offsets = [12, 0], sizes = [1, 1024], strides = [1, 1]} : vector<32x1024xf32> to vector<1x1024xf32>
    %c12 = arith.constant 12 : index
    %c0_43 = arith.constant 0 : index
    %c0_44 = arith.constant 0 : index
    %68 = vector.load %arg3[%c12, %c0_43, %c0_44] : memref<32x10x1024xf32, #tpu.memory_space<vmem>>, vector<1x10x1024xf32>
    %69 = vector.shape_cast %68 : vector<1x10x1024xf32> to vector<10x1024xf32>
    %cst_45 = arith.constant dense<0.000000e+00> : vector<1x10xf32>
    %70 = tpu.matmul %67, %69, %cst_45 {dimension_numbers = #tpu.dot_dimension_numbers<[1], [1], [0], [0], [0, 0, 1, 0], [], []>} : vector<1x1024xf32>, vector<10x1024xf32>, vector<1x10xf32> -> vector<1x10xf32>
    %71 = arith.addf %66, %70 : vector<1x10xf32>
    %72 = vector.extract_strided_slice %5 {offsets = [13, 0], sizes = [1, 1024], strides = [1, 1]} : vector<32x1024xf32> to vector<1x1024xf32>
    %c13 = arith.constant 13 : index
    %c0_46 = arith.constant 0 : index
    %c0_47 = arith.constant 0 : index
    %73 = vector.load %arg3[%c13, %c0_46, %c0_47] : memref<32x10x1024xf32, #tpu.memory_space<vmem>>, vector<1x10x1024xf32>
    %74 = vector.shape_cast %73 : vector<1x10x1024xf32> to vector<10x1024xf32>
    %cst_48 = arith.constant dense<0.000000e+00> : vector<1x10xf32>
    %75 = tpu.matmul %72, %74, %cst_48 {dimension_numbers = #tpu.dot_dimension_numbers<[1], [1], [0], [0], [0, 0, 1, 0], [], []>} : vector<1x1024xf32>, vector<10x1024xf32>, vector<1x10xf32> -> vector<1x10xf32>
    %76 = arith.addf %71, %75 : vector<1x10xf32>
    %77 = vector.extract_strided_slice %5 {offsets = [14, 0], sizes = [1, 1024], strides = [1, 1]} : vector<32x1024xf32> to vector<1x1024xf32>
    %c14 = arith.constant 14 : index
    %c0_49 = arith.constant 0 : index
    %c0_50 = arith.constant 0 : index
    %78 = vector.load %arg3[%c14, %c0_49, %c0_50] : memref<32x10x1024xf32, #tpu.memory_space<vmem>>, vector<1x10x1024xf32>
    %79 = vector.shape_cast %78 : vector<1x10x1024xf32> to vector<10x1024xf32>
    %cst_51 = arith.constant dense<0.000000e+00> : vector<1x10xf32>
    %80 = tpu.matmul %77, %79, %cst_51 {dimension_numbers = #tpu.dot_dimension_numbers<[1], [1], [0], [0], [0, 0, 1, 0], [], []>} : vector<1x1024xf32>, vector<10x1024xf32>, vector<1x10xf32> -> vector<1x10xf32>
    %81 = arith.addf %76, %80 : vector<1x10xf32>
    %82 = vector.extract_strided_slice %5 {offsets = [15, 0], sizes = [1, 1024], strides = [1, 1]} : vector<32x1024xf32> to vector<1x1024xf32>
    %c15 = arith.constant 15 : index
    %c0_52 = arith.constant 0 : index
    %c0_53 = arith.constant 0 : index
    %83 = vector.load %arg3[%c15, %c0_52, %c0_53] : memref<32x10x1024xf32, #tpu.memory_space<vmem>>, vector<1x10x1024xf32>
    %84 = vector.shape_cast %83 : vector<1x10x1024xf32> to vector<10x1024xf32>
    %cst_54 = arith.constant dense<0.000000e+00> : vector<1x10xf32>
    %85 = tpu.matmul %82, %84, %cst_54 {dimension_numbers = #tpu.dot_dimension_numbers<[1], [1], [0], [0], [0, 0, 1, 0], [], []>} : vector<1x1024xf32>, vector<10x1024xf32>, vector<1x10xf32> -> vector<1x10xf32>
    %86 = arith.addf %81, %85 : vector<1x10xf32>
    %87 = vector.extract_strided_slice %5 {offsets = [16, 0], sizes = [1, 1024], strides = [1, 1]} : vector<32x1024xf32> to vector<1x1024xf32>
    %c16 = arith.constant 16 : index
    %c0_55 = arith.constant 0 : index
    %c0_56 = arith.constant 0 : index
    %88 = vector.load %arg3[%c16, %c0_55, %c0_56] : memref<32x10x1024xf32, #tpu.memory_space<vmem>>, vector<1x10x1024xf32>
    %89 = vector.shape_cast %88 : vector<1x10x1024xf32> to vector<10x1024xf32>
    %cst_57 = arith.constant dense<0.000000e+00> : vector<1x10xf32>
    %90 = tpu.matmul %87, %89, %cst_57 {dimension_numbers = #tpu.dot_dimension_numbers<[1], [1], [0], [0], [0, 0, 1, 0], [], []>} : vector<1x1024xf32>, vector<10x1024xf32>, vector<1x10xf32> -> vector<1x10xf32>
    %91 = arith.addf %86, %90 : vector<1x10xf32>
    %92 = vector.extract_strided_slice %5 {offsets = [17, 0], sizes = [1, 1024], strides = [1, 1]} : vector<32x1024xf32> to vector<1x1024xf32>
    %c17 = arith.constant 17 : index
    %c0_58 = arith.constant 0 : index
    %c0_59 = arith.constant 0 : index
    %93 = vector.load %arg3[%c17, %c0_58, %c0_59] : memref<32x10x1024xf32, #tpu.memory_space<vmem>>, vector<1x10x1024xf32>
    %94 = vector.shape_cast %93 : vector<1x10x1024xf32> to vector<10x1024xf32>
    %cst_60 = arith.constant dense<0.000000e+00> : vector<1x10xf32>
    %95 = tpu.matmul %92, %94, %cst_60 {dimension_numbers = #tpu.dot_dimension_numbers<[1], [1], [0], [0], [0, 0, 1, 0], [], []>} : vector<1x1024xf32>, vector<10x1024xf32>, vector<1x10xf32> -> vector<1x10xf32>
    %96 = arith.addf %91, %95 : vector<1x10xf32>
    %97 = vector.extract_strided_slice %5 {offsets = [18, 0], sizes = [1, 1024], strides = [1, 1]} : vector<32x1024xf32> to vector<1x1024xf32>
    %c18 = arith.constant 18 : index
    %c0_61 = arith.constant 0 : index
    %c0_62 = arith.constant 0 : index
    %98 = vector.load %arg3[%c18, %c0_61, %c0_62] : memref<32x10x1024xf32, #tpu.memory_space<vmem>>, vector<1x10x1024xf32>
    %99 = vector.shape_cast %98 : vector<1x10x1024xf32> to vector<10x1024xf32>
    %cst_63 = arith.constant dense<0.000000e+00> : vector<1x10xf32>
    %100 = tpu.matmul %97, %99, %cst_63 {dimension_numbers = #tpu.dot_dimension_numbers<[1], [1], [0], [0], [0, 0, 1, 0], [], []>} : vector<1x1024xf32>, vector<10x1024xf32>, vector<1x10xf32> -> vector<1x10xf32>
    %101 = arith.addf %96, %100 : vector<1x10xf32>
    %102 = vector.extract_strided_slice %5 {offsets = [19, 0], sizes = [1, 1024], strides = [1, 1]} : vector<32x1024xf32> to vector<1x1024xf32>
    %c19 = arith.constant 19 : index
    %c0_64 = arith.constant 0 : index
    %c0_65 = arith.constant 0 : index
    %103 = vector.load %arg3[%c19, %c0_64, %c0_65] : memref<32x10x1024xf32, #tpu.memory_space<vmem>>, vector<1x10x1024xf32>
    %104 = vector.shape_cast %103 : vector<1x10x1024xf32> to vector<10x1024xf32>
    %cst_66 = arith.constant dense<0.000000e+00> : vector<1x10xf32>
    %105 = tpu.matmul %102, %104, %cst_66 {dimension_numbers = #tpu.dot_dimension_numbers<[1], [1], [0], [0], [0, 0, 1, 0], [], []>} : vector<1x1024xf32>, vector<10x1024xf32>, vector<1x10xf32> -> vector<1x10xf32>
    %106 = arith.addf %101, %105 : vector<1x10xf32>
    %107 = vector.extract_strided_slice %5 {offsets = [20, 0], sizes = [1, 1024], strides = [1, 1]} : vector<32x1024xf32> to vector<1x1024xf32>
    %c20 = arith.constant 20 : index
    %c0_67 = arith.constant 0 : index
    %c0_68 = arith.constant 0 : index
    %108 = vector.load %arg3[%c20, %c0_67, %c0_68] : memref<32x10x1024xf32, #tpu.memory_space<vmem>>, vector<1x10x1024xf32>
    %109 = vector.shape_cast %108 : vector<1x10x1024xf32> to vector<10x1024xf32>
    %cst_69 = arith.constant dense<0.000000e+00> : vector<1x10xf32>
    %110 = tpu.matmul %107, %109, %cst_69 {dimension_numbers = #tpu.dot_dimension_numbers<[1], [1], [0], [0], [0, 0, 1, 0], [], []>} : vector<1x1024xf32>, vector<10x1024xf32>, vector<1x10xf32> -> vector<1x10xf32>
    %111 = arith.addf %106, %110 : vector<1x10xf32>
    %112 = vector.extract_strided_slice %5 {offsets = [21, 0], sizes = [1, 1024], strides = [1, 1]} : vector<32x1024xf32> to vector<1x1024xf32>
    %c21 = arith.constant 21 : index
    %c0_70 = arith.constant 0 : index
    %c0_71 = arith.constant 0 : index
    %113 = vector.load %arg3[%c21, %c0_70, %c0_71] : memref<32x10x1024xf32, #tpu.memory_space<vmem>>, vector<1x10x1024xf32>
    %114 = vector.shape_cast %113 : vector<1x10x1024xf32> to vector<10x1024xf32>
    %cst_72 = arith.constant dense<0.000000e+00> : vector<1x10xf32>
    %115 = tpu.matmul %112, %114, %cst_72 {dimension_numbers = #tpu.dot_dimension_numbers<[1], [1], [0], [0], [0, 0, 1, 0], [], []>} : vector<1x1024xf32>, vector<10x1024xf32>, vector<1x10xf32> -> vector<1x10xf32>
    %116 = arith.addf %111, %115 : vector<1x10xf32>
    %117 = vector.extract_strided_slice %5 {offsets = [22, 0], sizes = [1, 1024], strides = [1, 1]} : vector<32x1024xf32> to vector<1x1024xf32>
    %c22 = arith.constant 22 : index
    %c0_73 = arith.constant 0 : index
    %c0_74 = arith.constant 0 : index
    %118 = vector.load %arg3[%c22, %c0_73, %c0_74] : memref<32x10x1024xf32, #tpu.memory_space<vmem>>, vector<1x10x1024xf32>
    %119 = vector.shape_cast %118 : vector<1x10x1024xf32> to vector<10x1024xf32>
    %cst_75 = arith.constant dense<0.000000e+00> : vector<1x10xf32>
    %120 = tpu.matmul %117, %119, %cst_75 {dimension_numbers = #tpu.dot_dimension_numbers<[1], [1], [0], [0], [0, 0, 1, 0], [], []>} : vector<1x1024xf32>, vector<10x1024xf32>, vector<1x10xf32> -> vector<1x10xf32>
    %121 = arith.addf %116, %120 : vector<1x10xf32>
    %122 = vector.extract_strided_slice %5 {offsets = [23, 0], sizes = [1, 1024], strides = [1, 1]} : vector<32x1024xf32> to vector<1x1024xf32>
    %c23 = arith.constant 23 : index
    %c0_76 = arith.constant 0 : index
    %c0_77 = arith.constant 0 : index
    %123 = vector.load %arg3[%c23, %c0_76, %c0_77] : memref<32x10x1024xf32, #tpu.memory_space<vmem>>, vector<1x10x1024xf32>
    %124 = vector.shape_cast %123 : vector<1x10x1024xf32> to vector<10x1024xf32>
    %cst_78 = arith.constant dense<0.000000e+00> : vector<1x10xf32>
    %125 = tpu.matmul %122, %124, %cst_78 {dimension_numbers = #tpu.dot_dimension_numbers<[1], [1], [0], [0], [0, 0, 1, 0], [], []>} : vector<1x1024xf32>, vector<10x1024xf32>, vector<1x10xf32> -> vector<1x10xf32>
    %126 = arith.addf %121, %125 : vector<1x10xf32>
    %127 = vector.extract_strided_slice %5 {offsets = [24, 0], sizes = [1, 1024], strides = [1, 1]} : vector<32x1024xf32> to vector<1x1024xf32>
    %c24 = arith.constant 24 : index
    %c0_79 = arith.constant 0 : index
    %c0_80 = arith.constant 0 : index
    %128 = vector.load %arg3[%c24, %c0_79, %c0_80] : memref<32x10x1024xf32, #tpu.memory_space<vmem>>, vector<1x10x1024xf32>
    %129 = vector.shape_cast %128 : vector<1x10x1024xf32> to vector<10x1024xf32>
    %cst_81 = arith.constant dense<0.000000e+00> : vector<1x10xf32>
    %130 = tpu.matmul %127, %129, %cst_81 {dimension_numbers = #tpu.dot_dimension_numbers<[1], [1], [0], [0], [0, 0, 1, 0], [], []>} : vector<1x1024xf32>, vector<10x1024xf32>, vector<1x10xf32> -> vector<1x10xf32>
    %131 = arith.addf %126, %130 : vector<1x10xf32>
    %132 = vector.extract_strided_slice %5 {offsets = [25, 0], sizes = [1, 1024], strides = [1, 1]} : vector<32x1024xf32> to vector<1x1024xf32>
    %c25 = arith.constant 25 : index
    %c0_82 = arith.constant 0 : index
    %c0_83 = arith.constant 0 : index
    %133 = vector.load %arg3[%c25, %c0_82, %c0_83] : memref<32x10x1024xf32, #tpu.memory_space<vmem>>, vector<1x10x1024xf32>
    %134 = vector.shape_cast %133 : vector<1x10x1024xf32> to vector<10x1024xf32>
    %cst_84 = arith.constant dense<0.000000e+00> : vector<1x10xf32>
    %135 = tpu.matmul %132, %134, %cst_84 {dimension_numbers = #tpu.dot_dimension_numbers<[1], [1], [0], [0], [0, 0, 1, 0], [], []>} : vector<1x1024xf32>, vector<10x1024xf32>, vector<1x10xf32> -> vector<1x10xf32>
    %136 = arith.addf %131, %135 : vector<1x10xf32>
    %137 = vector.extract_strided_slice %5 {offsets = [26, 0], sizes = [1, 1024], strides = [1, 1]} : vector<32x1024xf32> to vector<1x1024xf32>
    %c26 = arith.constant 26 : index
    %c0_85 = arith.constant 0 : index
    %c0_86 = arith.constant 0 : index
    %138 = vector.load %arg3[%c26, %c0_85, %c0_86] : memref<32x10x1024xf32, #tpu.memory_space<vmem>>, vector<1x10x1024xf32>
    %139 = vector.shape_cast %138 : vector<1x10x1024xf32> to vector<10x1024xf32>
    %cst_87 = arith.constant dense<0.000000e+00> : vector<1x10xf32>
    %140 = tpu.matmul %137, %139, %cst_87 {dimension_numbers = #tpu.dot_dimension_numbers<[1], [1], [0], [0], [0, 0, 1, 0], [], []>} : vector<1x1024xf32>, vector<10x1024xf32>, vector<1x10xf32> -> vector<1x10xf32>
    %141 = arith.addf %136, %140 : vector<1x10xf32>
    %142 = vector.extract_strided_slice %5 {offsets = [27, 0], sizes = [1, 1024], strides = [1, 1]} : vector<32x1024xf32> to vector<1x1024xf32>
    %c27 = arith.constant 27 : index
    %c0_88 = arith.constant 0 : index
    %c0_89 = arith.constant 0 : index
    %143 = vector.load %arg3[%c27, %c0_88, %c0_89] : memref<32x10x1024xf32, #tpu.memory_space<vmem>>, vector<1x10x1024xf32>
    %144 = vector.shape_cast %143 : vector<1x10x1024xf32> to vector<10x1024xf32>
    %cst_90 = arith.constant dense<0.000000e+00> : vector<1x10xf32>
    %145 = tpu.matmul %142, %144, %cst_90 {dimension_numbers = #tpu.dot_dimension_numbers<[1], [1], [0], [0], [0, 0, 1, 0], [], []>} : vector<1x1024xf32>, vector<10x1024xf32>, vector<1x10xf32> -> vector<1x10xf32>
    %146 = arith.addf %141, %145 : vector<1x10xf32>
    %147 = vector.extract_strided_slice %5 {offsets = [28, 0], sizes = [1, 1024], strides = [1, 1]} : vector<32x1024xf32> to vector<1x1024xf32>
    %c28 = arith.constant 28 : index
    %c0_91 = arith.constant 0 : index
    %c0_92 = arith.constant 0 : index
    %148 = vector.load %arg3[%c28, %c0_91, %c0_92] : memref<32x10x1024xf32, #tpu.memory_space<vmem>>, vector<1x10x1024xf32>
    %149 = vector.shape_cast %148 : vector<1x10x1024xf32> to vector<10x1024xf32>
    %cst_93 = arith.constant dense<0.000000e+00> : vector<1x10xf32>
    %150 = tpu.matmul %147, %149, %cst_93 {dimension_numbers = #tpu.dot_dimension_numbers<[1], [1], [0], [0], [0, 0, 1, 0], [], []>} : vector<1x1024xf32>, vector<10x1024xf32>, vector<1x10xf32> -> vector<1x10xf32>
    %151 = arith.addf %146, %150 : vector<1x10xf32>
    %152 = vector.extract_strided_slice %5 {offsets = [29, 0], sizes = [1, 1024], strides = [1, 1]} : vector<32x1024xf32> to vector<1x1024xf32>
    %c29 = arith.constant 29 : index
    %c0_94 = arith.constant 0 : index
    %c0_95 = arith.constant 0 : index
    %153 = vector.load %arg3[%c29, %c0_94, %c0_95] : memref<32x10x1024xf32, #tpu.memory_space<vmem>>, vector<1x10x1024xf32>
    %154 = vector.shape_cast %153 : vector<1x10x1024xf32> to vector<10x1024xf32>
    %cst_96 = arith.constant dense<0.000000e+00> : vector<1x10xf32>
    %155 = tpu.matmul %152, %154, %cst_96 {dimension_numbers = #tpu.dot_dimension_numbers<[1], [1], [0], [0], [0, 0, 1, 0], [], []>} : vector<1x1024xf32>, vector<10x1024xf32>, vector<1x10xf32> -> vector<1x10xf32>
    %156 = arith.addf %151, %155 : vector<1x10xf32>
    %157 = vector.extract_strided_slice %5 {offsets = [30, 0], sizes = [1, 1024], strides = [1, 1]} : vector<32x1024xf32> to vector<1x1024xf32>
    %c30 = arith.constant 30 : index
    %c0_97 = arith.constant 0 : index
    %c0_98 = arith.constant 0 : index
    %158 = vector.load %arg3[%c30, %c0_97, %c0_98] : memref<32x10x1024xf32, #tpu.memory_space<vmem>>, vector<1x10x1024xf32>
    %159 = vector.shape_cast %158 : vector<1x10x1024xf32> to vector<10x1024xf32>
    %cst_99 = arith.constant dense<0.000000e+00> : vector<1x10xf32>
    %160 = tpu.matmul %157, %159, %cst_99 {dimension_numbers = #tpu.dot_dimension_numbers<[1], [1], [0], [0], [0, 0, 1, 0], [], []>} : vector<1x1024xf32>, vector<10x1024xf32>, vector<1x10xf32> -> vector<1x10xf32>
    %161 = arith.addf %156, %160 : vector<1x10xf32>
    %162 = vector.extract_strided_slice %5 {offsets = [31, 0], sizes = [1, 1024], strides = [1, 1]} : vector<32x1024xf32> to vector<1x1024xf32>
    %c31 = arith.constant 31 : index
    %c0_100 = arith.constant 0 : index
    %c0_101 = arith.constant 0 : index
    %163 = vector.load %arg3[%c31, %c0_100, %c0_101] : memref<32x10x1024xf32, #tpu.memory_space<vmem>>, vector<1x10x1024xf32>
    %164 = vector.shape_cast %163 : vector<1x10x1024xf32> to vector<10x1024xf32>
    %cst_102 = arith.constant dense<0.000000e+00> : vector<1x10xf32>
    %165 = tpu.matmul %162, %164, %cst_102 {dimension_numbers = #tpu.dot_dimension_numbers<[1], [1], [0], [0], [0, 0, 1, 0], [], []>} : vector<1x1024xf32>, vector<10x1024xf32>, vector<1x10xf32> -> vector<1x10xf32>
    %166 = arith.addf %161, %165 : vector<1x10xf32>
    %c0_103 = arith.constant 0 : index
    %c0_104 = arith.constant 0 : index
    %167 = vector.load %arg4[%c0_103, %c0_104] : memref<1x10xf32, #tpu.memory_space<vmem>>, vector<1x10xf32>
    %168 = arith.addf %166, %167 : vector<1x10xf32>
    %c0_105 = arith.constant 0 : index
    %c0_106 = arith.constant 0 : index
    %c0_107 = arith.constant 0 : index
    %169 = vector.load %arg6[%c0_105, %c0_106, %c0_107] : memref<1x1x10xf32, #tpu.memory_space<vmem>>, vector<1x1x10xf32>
    %170 = vector.shape_cast %169 : vector<1x1x10xf32> to vector<1x10xf32>
    %171 = vector.shape_cast %168 : vector<1x10xf32> to vector<1x1x10xf32>
    tpu.vector_store %arg6[%c0_105, %c0_106, %c0_107], %171 {strides = array<i32>} : memref<1x1x10xf32, #tpu.memory_space<vmem>>, vector<1x1x10xf32>,
    %cst_108 = arith.constant dense<0xFF800000> : vector<1xf32>
    %172 = vector.multi_reduction <maximumf>, %168, %cst_108 [1] : vector<1x10xf32> to vector<1xf32>
    %173 = vector.shape_cast %172 : vector<1xf32> to vector<1x1xf32>
    %174 = vector.broadcast %173 : vector<1x1xf32> to vector<1x10xf32>
    %175 = arith.subf %168, %174 : vector<1x10xf32>
    %176 = math.exp %175 : vector<1x10xf32>
    %cst_109 = arith.constant dense<0.000000e+00> : vector<1xf32>
    %177 = vector.multi_reduction <add>, %176, %cst_109 [1] : vector<1x10xf32> to vector<1xf32>
    %178 = vector.shape_cast %177 : vector<1xf32> to vector<1x1xf32>
    %179 = tpu.reciprocal %178 {approx = true} : vector<1x1xf32> -> vector<1x1xf32>
    %180 = vector.broadcast %179 : vector<1x1xf32> to vector<1x10xf32>
    %181 = arith.mulf %176, %180 : vector<1x10xf32>
    %c0_110 = arith.constant 0 : index
    %c0_111 = arith.constant 0 : index
    %c0_112 = arith.constant 0 : index
    %182 = vector.load %arg5[%c0_110, %c0_111, %c0_112] : memref<1x1x10xf32, #tpu.memory_space<vmem>>, vector<1x1x10xf32>
    %183 = vector.shape_cast %182 : vector<1x1x10xf32> to vector<1x10xf32>
    %184 = vector.shape_cast %181 : vector<1x10xf32> to vector<1x1x10xf32>
    tpu.vector_store %arg5[%c0_110, %c0_111, %c0_112], %184 {strides = array<i32>} : memref<1x1x10xf32, #tpu.memory_space<vmem>>, vector<1x1x10xf32>,
    return
  }
  func.func @transform_0(%arg0: i32) -> (i32, i32, i32) {
    %c0_i32 = arith.constant 0 : i32
    %c0_i32_0 = arith.constant 0 : i32
    %c0_i32_1 = arith.constant 0 : i32
    return %arg0, %c0_i32, %c0_i32_0 : i32, i32, i32
  }
  func.func @transform_1(%arg0: i32) -> (i32, i32) {
    %c0_i32 = arith.constant 0 : i32
    %c0_i32_0 = arith.constant 0 : i32
    %c0_i32_1 = arith.constant 0 : i32
    return %c0_i32, %c0_i32_0 : i32, i32
  }
  func.func @transform_2(%arg0: i32) -> (i32, i32, i32) {
    %c0_i32 = arith.constant 0 : i32
    %c0_i32_0 = arith.constant 0 : i32
    %c0_i32_1 = arith.constant 0 : i32
    %c0_i32_2 = arith.constant 0 : i32
    return %c0_i32, %c0_i32_0, %c0_i32_1 : i32, i32, i32
  }
  func.func @transform_3(%arg0: i32) -> (i32, i32) {
    %c0_i32 = arith.constant 0 : i32
    %c0_i32_0 = arith.constant 0 : i32
    %c0_i32_1 = arith.constant 0 : i32
    return %c0_i32, %c0_i32_0 : i32, i32
  }
  func.func @transform_4(%arg0: i32) -> (i32, i32, i32) {
    %c0_i32 = arith.constant 0 : i32
    %c0_i32_0 = arith.constant 0 : i32
    %c0_i32_1 = arith.constant 0 : i32
    return %arg0, %c0_i32, %c0_i32_0 : i32, i32, i32
  }
  func.func @transform_5(%arg0: i32) -> (i32, i32, i32) {
    %c0_i32 = arith.constant 0 : i32
    %c0_i32_0 = arith.constant 0 : i32
    %c0_i32_1 = arith.constant 0 : i32
    return %arg0, %c0_i32, %c0_i32_0 : i32, i32, i32
  }
}

</mosaic_0001>

<bundles_post_ra>
// kernel: onelayercnn_forward.1
= control target key start
LH: loop header
LB: loop body
LE: loop exit
PB: predicated region body
PF: predicated region fallthrough
CT: control target
= control target key end

     0   :  { %11 = vsyncpa [#allocation3], 0  ;;  %s12228_s0 = inlined_call_operand.vmem [shape: f32[2,32,384], index: 0, kind: input, shape index: {}]   ;;  %s12229_s1 = inlined_call_operand.vmem [shape: f32[384,1024], index: 1, kind: input, shape index: {}]   ;;  %s12230_s2 = inlined_call_operand.vmem [shape: f32[32,10,1024], index: 2, kind: input, shape index: {}]   ;;  %s12231_s3 = inlined_call_operand.vmem [shape: f32[1,10], index: 3, kind: input, shape index: {}]   ;;  %s12232_s4 = inlined_call_operand.hbm [shape: f32[2,1,10], index: 4, kind: output, shape index: {0}]   ;;  %s12233_s5 = inlined_call_operand.hbm [shape: f32[2,1,10], index: 5, kind: output, shape index: {1}]  }
   0x1   :  { %13 = vsyncpa [#allocation3 + $0x1], 0 }
   0x2   :  { %14 = vsyncpa [#allocation5], 0 }
   0x3   :  { %16 = vsyncpa [#allocation5 + $0x1], 0  ;;  %s8348_s18 = smov 0   ;;  %s8350_s19 = smov 0  }
   0x4   :  { %s8352_s20 = smov 0   ;;  %s8354_s21 = smov 0  }
   0x5 LB: > { %s8369_s22 = sadd.s32 4294967295, %s8316_s21   ;;  %s7658_s23 = sadd.s32 4294967294, %s8316_s21   ;;  %s8316_s21 = sphi %s8354_s21, %s12287_s21   ;;  %s8312_s20 = sphi %s8352_s20, %s12286_s20   ;;  %s8308_s19 = sphi %s8350_s19, %s12285_s19   ;;  %s8304_s18 = sphi %s8348_s18, %s12284_s18  }
   0x6   : > { %s8373_s24 = sadd.s32 1, %s8316_s21   ;;  %s118_s25 = sadd.s32 1, %s8312_s20 }
   0x7   : > { %s115_s26 = ssub.s32 %s8316_s21, %s8373_s24  ;;  %p128_p0 = scmp.ne.s32.totalorder %s8312_s20, %s8308_s19 }
   0x8   : > { %p116_p1 = scmp.eq.s32.totalorder %s115_s26, 0  ;;  %p129_p2 = scmp.eq.s32.totalorder %s8369_s22, 1 }
   0x9   : > { %p134_p3 = scmp.ne.s32.totalorder %s8308_s19, %s8304_s18  ;;  %p135_p4 = scmp.eq.s32.totalorder %s7658_s23, 1 }
   0xa   : > { %s8384_s27 = scalar_select %p116_p1, %s8312_s20, %s118_s25  }
   0xb   : > { %p8386_p5 = por %p129_p2, %p128_p0  ;;  %p8390_p6 = por %p135_p4, %p134_p3 }
   0xc   : > { %p7661_p7 = scmp.ge.s32.totalorder %s8316_s21, 1  ;;  %p196_p8 = scmp.lt.s32.totalorder %s8316_s21, 3 }
   0xe   : > { %p197_p9 = pnand %p7661_p7, %p196_p8 }
  0x10   : > { %200 = sbr.rel (%p197_p9) target bundleno = 1297 (0x511), region = 36 }
  0x15   : > { %v364_v0 = vld [vmem:[%s12229_s1 + $0x3c0] sm:$0xff]  ;;  %v365_v3 = vld [vmem:[%s12229_s1 + $0x3c8] sm:$0xff]  ;;  %p227_p10 = scmp.lt.s32.totalorder %s8369_s22, 1  ;;  %s12170_s30 = sand.u32 1, %s8308_s19   ;;  %vm7531_vm0 = vcmask 73728  }
  0x16   : > { %v492_v1 = vld [vmem:[%s12229_s1 + $0x7c0] sm:$0xff]  ;;  %628 = vmatpush.msra.mxu0 %v364_v0  ;;  %715 = vmatpush.msra.mxu3 %v365_v3  ;;  %v357_v7 = vld [vmem:[%s12229_s1 + $0x388] sm:$0xff]  ;;  %v366_v3 = vld [vmem:[%s12229_s1 + $0x3d0] sm:$0xff]  ;;  %s7571_s9 = scalar_lea.hbm %s12233_s5, %s8369_s22  ;;  %s7550_s12 = scalar_lea.sflag [#allocation5], %s12170_s30 }
  0x17   : > { %v620_v2 = vld [vmem:[%s12229_s1 + $0xbc0] sm:$0xff]  ;;  %657 = vmatpush.msra.mxu1 %v492_v1  ;;  %v349_v11 = vld [vmem:[%s12229_s1 + $0x348] sm:$0xff]  ;;  %s8532_s13 = scalar_select %p227_p10, %s8369_s22, 1 }
  0x18   : > { %v356_v4 = vld [vmem:[%s12229_s1 + $0x380] sm:$0xff]  ;;  %686 = vmatpush.msra.mxu2 %v620_v2  ;;  %716 = vmatpush.msra.mxu3 %v357_v7  ;;  %v341_v15 = vld [vmem:[%s12229_s1 + $0x308] sm:$0xff]  ;;  %v358_v7 = vld [vmem:[%s12229_s1 + $0x390] sm:$0xff]  ;;  %s7575_s11 = sshll.u32 %s7571_s9, 4  ;;  %s8242_s23 = scalar_lea.hbm %s12233_s5, 2  ;;  %s7576_s11 = int_to_ptr.hbm [resolvable:$true] %s7575_s11 }
  0x19   : > { %v484_v5 = vld [vmem:[%s12229_s1 + $0x780] sm:$0xff]  ;;  %629 = vmatpush.msra.mxu0 %v356_v4  ;;  %v333_v19 = vld [vmem:[%s12229_s1 + $0x2c8] sm:$0xff]  ;;  %s8161_s15 = smul.u32 96, %s8532_s13  ;;  %s226_s13 = scalar_lea.vmem [#allocation4], %s12170_s30 }
  0x1a   : > { %v612_v6 = vld [vmem:[%s12229_s1 + $0xb80] sm:$0xff]  ;;  %658 = vmatpush.msra.mxu1 %v484_v5  ;;  %717 = vmatpush.msra.mxu3 %v349_v11  ;;  %v325_v23 = vld [vmem:[%s12229_s1 + $0x288] sm:$0xff]  ;;  %v350_v11 = vld [vmem:[%s12229_s1 + $0x350] sm:$0xff]  ;;  %s7573_s10 = sshll.u32 %s226_s13, 4  ;;  %s8236_s14 = sshra.s32 %s7576_s11, 4  ;;  %s7574_s10 = int_to_ptr.vmem [resolvable:$true] %s7573_s10  ;;  %s8237_s14 = int_to_ptr.hbm [resolvable:$true] %s8236_s14 }
  0x1b   : > { %v348_v8 = vld [vmem:[%s12229_s1 + $0x340] sm:$0xff]  ;;  %687 = vmatpush.msra.mxu2 %v612_v6  ;;  %v317_v27 = vld [vmem:[%s12229_s1 + $0x248] sm:$0xff]  ;;  %s8586_s25 = scalar_lea.vmem %s12228_s0, %s8161_s15  ;;  %v494_v6 = vld [vmem:[%s12229_s1 + $0x7d0] sm:$0xff]  ;;  %p8243_p0 = scmp.lt.s32.totalorder %s8237_s14, %s12233_s5 }
  0x1c   : > { %v476_v9 = vld [vmem:[%s12229_s1 + $0x740] sm:$0xff]  ;;  %630 = vmatpush.msra.mxu0 %v348_v8  ;;  %718 = vmatpush.msra.mxu3 %v341_v15  ;;  %v309_v31 = vld [vmem:[%s12229_s1 + $0x208] sm:$0xff]  ;;  %v8607_v2 = vld [vmem:[%s8586_s25 + $0x10] sm:$0xff] }
  0x1d   : > { %v604_v10 = vld [vmem:[%s12229_s1 + $0xb40] sm:$0xff]  ;;  %659 = vmatpush.msra.mxu1 %v476_v9  ;;  %v301_v35 = vld [vmem:[%s12229_s1 + $0x1c8] sm:$0xff]  ;;  %v342_v15 = vld [vmem:[%s12229_s1 + $0x310] sm:$0xff] }
  0x1e   : > { %v340_v12 = vld [vmem:[%s12229_s1 + $0x300] sm:$0xff]  ;;  %688 = vmatpush.msra.mxu2 %v604_v10  ;;  %719 = vmatpush.msra.mxu3 %v333_v19  ;;  %v293_v39 = vld [vmem:[%s12229_s1 + $0x188] sm:$0xff]  ;;  %v486_v10 = vld [vmem:[%s12229_s1 + $0x790] sm:$0xff] }
  0x1f   : > { %v468_v13 = vld [vmem:[%s12229_s1 + $0x700] sm:$0xff]  ;;  %631 = vmatpush.msra.mxu0 %v340_v12  ;;  %v285_v43 = vld [vmem:[%s12229_s1 + $0x148] sm:$0xff]  ;;  %v8662_v19 = vld [vmem:[%s8586_s25 + $0x18] sm:$0xff] }
  0x20   : > { %v596_v14 = vld [vmem:[%s12229_s1 + $0xb00] sm:$0xff]  ;;  %660 = vmatpush.msra.mxu1 %v468_v13  ;;  %720 = vmatpush.msra.mxu3 %v325_v23  ;;  %v277_v47 = vld [vmem:[%s12229_s1 + $0x108] sm:$0xff] }
  0x21   : > { %v332_v16 = vld [vmem:[%s12229_s1 + $0x2c0] sm:$0xff]  ;;  %689 = vmatpush.msra.mxu2 %v596_v14  ;;  %v269_v51 = vld [vmem:[%s12229_s1 + $0xc8] sm:$0xff]  ;;  %v478_v14 = vld [vmem:[%s12229_s1 + $0x750] sm:$0xff] }
  0x22   : > { %v460_v17 = vld [vmem:[%s12229_s1 + $0x6c0] sm:$0xff]  ;;  %632 = vmatpush.msra.mxu0 %v332_v16  ;;  %721 = vmatpush.msra.mxu3 %v317_v27  ;;  %v261_v55 = vld [vmem:[%s12229_s1 + $0x88] sm:$0xff] }
  0x23   : > { %v588_v18 = vld [vmem:[%s12229_s1 + $0xac0] sm:$0xff]  ;;  %661 = vmatpush.msra.mxu1 %v460_v17  ;;  %v253_v59 = vld [vmem:[%s12229_s1 + $0x48] sm:$0xff] }
  0x24   : > { %v324_v20 = vld [vmem:[%s12229_s1 + $0x280] sm:$0xff]  ;;  %690 = vmatpush.msra.mxu2 %v588_v18  ;;  %722 = vmatpush.msra.mxu3 %v309_v31  ;;  %v245_v63 = vld [vmem:[%s12229_s1 + $0x8] sm:$0xff]  ;;  %v470_v18 = vld [vmem:[%s12229_s1 + $0x710] sm:$0xff] }
  0x25   : > { %v452_v21 = vld [vmem:[%s12229_s1 + $0x680] sm:$0xff]  ;;  %633 = vmatpush.msra.mxu0 %v324_v20  ;;  %v8604_v1 = vld [vmem:[%s8586_s25 + $0x8] sm:$0xff] }
  0x26   : > { %v580_v22 = vld [vmem:[%s12229_s1 + $0xa80] sm:$0xff]  ;;  %662 = vmatpush.msra.mxu1 %v452_v21  ;;  %723 = vmatpush.msra.mxu3 %v301_v35  ;;  %v493_v4 = vld [vmem:[%s12229_s1 + $0x7c8] sm:$0xff] }
  0x27   : > { %v316_v24 = vld [vmem:[%s12229_s1 + $0x240] sm:$0xff]  ;;  %691 = vmatpush.msra.mxu2 %v580_v22  ;;  %v621_v5 = vld [vmem:[%s12229_s1 + $0xbc8] sm:$0xff]  ;;  %v334_v22 = vld [vmem:[%s12229_s1 + $0x2d0] sm:$0xff] }
  0x28   : > { %v444_v25 = vld [vmem:[%s12229_s1 + $0x640] sm:$0xff]  ;;  %634 = vmatpush.msra.mxu0 %v316_v24  ;;  %724 = vmatpush.msra.mxu3 %v293_v39  ;;  %v485_v8 = vld [vmem:[%s12229_s1 + $0x788] sm:$0xff]  ;;  %v8726_v39 = vld [vmem:[%s8586_s25 + $0x38] sm:$0xff] }
  0x29   : > { %v572_v26 = vld [vmem:[%s12229_s1 + $0xa40] sm:$0xff]  ;;  %663 = vmatpush.msra.mxu1 %v444_v25  ;;  %v613_v9 = vld [vmem:[%s12229_s1 + $0xb88] sm:$0xff]  ;;  %v462_v25 = vld [vmem:[%s12229_s1 + $0x6d0] sm:$0xff] }
  0x2a   : > { %v308_v28 = vld [vmem:[%s12229_s1 + $0x200] sm:$0xff]  ;;  %692 = vmatpush.msra.mxu2 %v572_v26  ;;  %725 = vmatpush.msra.mxu3 %v285_v43  ;;  %v477_v12 = vld [vmem:[%s12229_s1 + $0x748] sm:$0xff]  ;;  %v326_v26 = vld [vmem:[%s12229_s1 + $0x290] sm:$0xff] }
  0x2b   : > { %v436_v29 = vld [vmem:[%s12229_s1 + $0x600] sm:$0xff]  ;;  %635 = vmatpush.msra.mxu0 %v308_v28  ;;  %v605_v13 = vld [vmem:[%s12229_s1 + $0xb48] sm:$0xff] }
  0x2c   : > { %v564_v30 = vld [vmem:[%s12229_s1 + $0xa00] sm:$0xff]  ;;  %664 = vmatpush.msra.mxu1 %v436_v29  ;;  %726 = vmatpush.msra.mxu3 %v277_v47  ;;  %v469_v16 = vld [vmem:[%s12229_s1 + $0x708] sm:$0xff]  ;;  %v454_v29 = vld [vmem:[%s12229_s1 + $0x690] sm:$0xff] }
  0x2d   : > { %v300_v32 = vld [vmem:[%s12229_s1 + $0x1c0] sm:$0xff]  ;;  %693 = vmatpush.msra.mxu2 %v564_v30  ;;  %v597_v17 = vld [vmem:[%s12229_s1 + $0xb08] sm:$0xff]  ;;  %v318_v30 = vld [vmem:[%s12229_s1 + $0x250] sm:$0xff] }
  0x2e   : > { %v428_v33 = vld [vmem:[%s12229_s1 + $0x5c0] sm:$0xff]  ;;  %636 = vmatpush.msra.mxu0 %v300_v32  ;;  %727 = vmatpush.msra.mxu3 %v269_v51  ;;  %v8668_v21 = vld [vmem:[%s8586_s25 + $0x28] sm:$0xff] }
  0x2f   : > { %v556_v34 = vld [vmem:[%s12229_s1 + $0x9c0] sm:$0xff]  ;;  %665 = vmatpush.msra.mxu1 %v428_v33  ;;  %v461_v23 = vld [vmem:[%s12229_s1 + $0x6c8] sm:$0xff]  ;;  %v446_v33 = vld [vmem:[%s12229_s1 + $0x650] sm:$0xff] }
  0x30   : > { %v292_v36 = vld [vmem:[%s12229_s1 + $0x180] sm:$0xff]  ;;  %694 = vmatpush.msra.mxu2 %v556_v34  ;;  %728 = vmatpush.msra.mxu3 %v261_v55  ;;  %v589_v24 = vld [vmem:[%s12229_s1 + $0xac8] sm:$0xff]  ;;  %v310_v34 = vld [vmem:[%s12229_s1 + $0x210] sm:$0xff] }
  0x31   : > { %v420_v37 = vld [vmem:[%s12229_s1 + $0x580] sm:$0xff]  ;;  %637 = vmatpush.msra.mxu0 %v292_v36  ;;  %v453_v27 = vld [vmem:[%s12229_s1 + $0x688] sm:$0xff] }
  0x32   : > { %v548_v38 = vld [vmem:[%s12229_s1 + $0x980] sm:$0xff]  ;;  %666 = vmatpush.msra.mxu1 %v420_v37  ;;  %729 = vmatpush.msra.mxu3 %v253_v59  ;;  %v581_v28 = vld [vmem:[%s12229_s1 + $0xa88] sm:$0xff]  ;;  %v438_v37 = vld [vmem:[%s12229_s1 + $0x610] sm:$0xff] }
  0x33   : > { %v284_v40 = vld [vmem:[%s12229_s1 + $0x140] sm:$0xff]  ;;  %695 = vmatpush.msra.mxu2 %v548_v38  ;;  %v445_v31 = vld [vmem:[%s12229_s1 + $0x648] sm:$0xff]  ;;  %v8723_v38 = vld [vmem:[%s8586_s25 + $0x30] sm:$0xff] }
  0x34   : > { %v412_v41 = vld [vmem:[%s12229_s1 + $0x540] sm:$0xff]  ;;  %638 = vmatpush.msra.mxu0 %v284_v40  ;;  %730 = vmatpush.msra.mxu3 %v245_v63  ;;  %v573_v32 = vld [vmem:[%s12229_s1 + $0xa48] sm:$0xff]  ;;  %v8790_v59 = vld [vmem:[%s8586_s25 + $0x58] sm:$0xff] }
  0x35   : > { %v540_v42 = vld [vmem:[%s12229_s1 + $0x940] sm:$0xff]  ;;  %667 = vmatpush.msra.mxu1 %v412_v41  ;;  %v437_v35 = vld [vmem:[%s12229_s1 + $0x608] sm:$0xff]  ;;  %v302_v41 = vld [vmem:[%s12229_s1 + $0x1d0] sm:$0xff] }
  0x36   : > { %v276_v44 = vld [vmem:[%s12229_s1 + $0x100] sm:$0xff]  ;;  %696 = vmatpush.msra.mxu2 %v540_v42  ;;  %831 = vmatpush.msrb.mxu3 %v494_v6  ;;  %v565_v36 = vld [vmem:[%s12229_s1 + $0xa08] sm:$0xff]  ;;  %v398_v63 = vld [vmem:[%s12229_s1 + $0x4d0] sm:$0xff] }
  0x37   : > { %v404_v45 = vld [vmem:[%s12229_s1 + $0x500] sm:$0xff]  ;;  %639 = vmatpush.msra.mxu0 %v276_v44  ;;  %v429_v42 = vld [vmem:[%s12229_s1 + $0x5c8] sm:$0xff]  ;;  %v430_v44 = vld [vmem:[%s12229_s1 + $0x5d0] sm:$0xff] }
  0x38   : > { %v532_v46 = vld [vmem:[%s12229_s1 + $0x900] sm:$0xff]  ;;  %668 = vmatpush.msra.mxu1 %v404_v45  ;;  %832 = vmatpush.msrb.mxu3 %v486_v10  ;;  %v557_v43 = vld [vmem:[%s12229_s1 + $0x9c8] sm:$0xff]  ;;  %v294_v45 = vld [vmem:[%s12229_s1 + $0x190] sm:$0xff] }
  0x39   : > { %v268_v48 = vld [vmem:[%s12229_s1 + $0xc0] sm:$0xff]  ;;  %697 = vmatpush.msra.mxu2 %v532_v46  ;;  %v421_v46 = vld [vmem:[%s12229_s1 + $0x588] sm:$0xff]  ;;  %v390_v6 = vld [vmem:[%s12229_s1 + $0x490] sm:$0xff] }
  0x3a   : > { %v396_v49 = vld [vmem:[%s12229_s1 + $0x4c0] sm:$0xff]  ;;  %640 = vmatpush.msra.mxu0 %v268_v48  ;;  %833 = vmatpush.msrb.mxu3 %v478_v14  ;;  %v549_v47 = vld [vmem:[%s12229_s1 + $0x988] sm:$0xff]  ;;  %v422_v48 = vld [vmem:[%s12229_s1 + $0x590] sm:$0xff] }
  0x3b   : > { %v524_v50 = vld [vmem:[%s12229_s1 + $0x8c0] sm:$0xff]  ;;  %669 = vmatpush.msra.mxu1 %v396_v49  ;;  %v286_v49 = vld [vmem:[%s12229_s1 + $0x150] sm:$0xff]  ;;  %v541_v51 = vld [vmem:[%s12229_s1 + $0x948] sm:$0xff] }
  0x3c   : > { %v260_v52 = vld [vmem:[%s12229_s1 + $0x80] sm:$0xff]  ;;  %698 = vmatpush.msra.mxu2 %v524_v50  ;;  %834 = vmatpush.msrb.mxu3 %v470_v18  ;;  %v413_v50 = vld [vmem:[%s12229_s1 + $0x548] sm:$0xff]  ;;  %v382_v10 = vld [vmem:[%s12229_s1 + $0x450] sm:$0xff] }
  0x3d   : > { %v388_v53 = vld [vmem:[%s12229_s1 + $0x480] sm:$0xff]  ;;  %641 = vmatpush.msra.mxu0 %v260_v52  ;;  %v414_v52 = vld [vmem:[%s12229_s1 + $0x550] sm:$0xff]  ;;  %v533_v55 = vld [vmem:[%s12229_s1 + $0x908] sm:$0xff] }
  0x3e   : > { %v516_v54 = vld [vmem:[%s12229_s1 + $0x880] sm:$0xff]  ;;  %670 = vmatpush.msra.mxu1 %v388_v53  ;;  %835 = vmatpush.msrb.mxu3 %v462_v25  ;;  %v278_v53 = vld [vmem:[%s12229_s1 + $0x110] sm:$0xff]  ;;  %v623_v18 = vld [vmem:[%s12229_s1 + $0xbd8] sm:$0xff] }
  0x3f   : > { %v252_v56 = vld [vmem:[%s12229_s1 + $0x40] sm:$0xff]  ;;  %699 = vmatpush.msra.mxu2 %v516_v54  ;;  %v405_v54 = vld [vmem:[%s12229_s1 + $0x508] sm:$0xff]  ;;  %v374_v14 = vld [vmem:[%s12229_s1 + $0x410] sm:$0xff] }
  0x40   : > { %v380_v57 = vld [vmem:[%s12229_s1 + $0x440] sm:$0xff]  ;;  %642 = vmatpush.msra.mxu0 %v252_v56  ;;  %836 = vmatpush.msrb.mxu3 %v454_v29  ;;  %v406_v56 = vld [vmem:[%s12229_s1 + $0x510] sm:$0xff]  ;;  %v615_v25 = vld [vmem:[%s12229_s1 + $0xb98] sm:$0xff] }
  0x41   : > { %v508_v58 = vld [vmem:[%s12229_s1 + $0x840] sm:$0xff]  ;;  %671 = vmatpush.msra.mxu1 %v380_v57  ;;  %v8784_v57 = vld [vmem:[%s8586_s25 + $0x48] sm:$0xff]  ;;  %v607_v29 = vld [vmem:[%s12229_s1 + $0xb58] sm:$0xff] }
  0x42   : > { %v244_v60 = vld [vmem:[%s12229_s1] sm:$0xff]  ;;  %700 = vmatpush.msra.mxu2 %v508_v58  ;;  %837 = vmatpush.msrb.mxu3 %v446_v33  ;;  %v8787_v58 = vld [vmem:[%s8586_s25 + $0x50] sm:$0xff]  ;;  %v599_v33 = vld [vmem:[%s12229_s1 + $0xb18] sm:$0xff] }
  0x43   : > { %v372_v61 = vld [vmem:[%s12229_s1 + $0x400] sm:$0xff]  ;;  %643 = vmatpush.msra.mxu0 %v244_v60  ;;  %v270_v60 = vld [vmem:[%s12229_s1 + $0xd0] sm:$0xff] }
  0x44   : > { %v500_v62 = vld [vmem:[%s12229_s1 + $0x800] sm:$0xff]  ;;  %672 = vmatpush.msra.mxu1 %v372_v61  ;;  %838 = vmatpush.msrb.mxu3 %v438_v37  ;;  %v397_v61 = vld [vmem:[%s12229_s1 + $0x4c8] sm:$0xff]  ;;  %v591_v37 = vld [vmem:[%s12229_s1 + $0xad8] sm:$0xff] }
  0x45   : > { %v8601_v0 = vld [vmem:[%s8586_s25] sm:$0xff]  ;;  %701 = vmatpush.msra.mxu2 %v500_v62  ;;  %673 = vmatmul.f32.vlgmr.msra.gmra.mxu1 %v8604_v1  ;;  %v525_v62 = vld [vmem:[%s12229_s1 + $0x8c8] sm:$0xff] }
  0x46   : > { %644 = vmatmul.f32.vlgmr.msra.gmra.mxu0 %v8601_v0  ;;  %702 = vmatmul.f32.vlgmr.msra.gmra.mxu2 %v8607_v2  ;;  %v8665_v20 = vld [vmem:[%s8586_s25 + $0x20] sm:$0xff] }
  0x47   : > { %731 = vmatmul.f32.vlgmr.msra.gmra.mxu3 %v8601_v0  ;;  %802 = vmatpush.msrb.mxu2 %v366_v3  ;;  %v8729_v40 = vld [vmem:[%s8586_s25 + $0x40] sm:$0xff]  ;;  %v262_v3 = vld [vmem:[%s12229_s1 + $0x90] sm:$0xff] }
  0x48   : > { %744 = vmatpush.msrb.mxu0 %v493_v4  ;;  %773 = vmatpush.msrb.mxu1 %v621_v5  ;;  %v389_v4 = vld [vmem:[%s12229_s1 + $0x488] sm:$0xff] }
  0x49   : > { %803 = vmatpush.msrb.mxu2 %v358_v7  ;;  %839 = vmatpush.msrb.mxu3 %v430_v44  ;;  %v517_v5 = vld [vmem:[%s12229_s1 + $0x888] sm:$0xff]  ;;  %v254_v7 = vld [vmem:[%s12229_s1 + $0x50] sm:$0xff]  ;;  %v583_v44 = vld [vmem:[%s12229_s1 + $0xa98] sm:$0xff] }
  0x4a   : > { %745 = vmatpush.msrb.mxu0 %v485_v8  ;;  %774 = vmatpush.msrb.mxu1 %v613_v9  ;;  %v381_v8 = vld [vmem:[%s12229_s1 + $0x448] sm:$0xff] }
  0x4b   : > { %804 = vmatpush.msrb.mxu2 %v350_v11  ;;  %840 = vmatpush.msrb.mxu3 %v422_v48  ;;  %v509_v9 = vld [vmem:[%s12229_s1 + $0x848] sm:$0xff]  ;;  %v246_v11 = vld [vmem:[%s12229_s1 + $0x10] sm:$0xff]  ;;  %v575_v48 = vld [vmem:[%s12229_s1 + $0xa58] sm:$0xff] }
  0x4c   : > { %746 = vmatpush.msrb.mxu0 %v477_v12  ;;  %775 = vmatpush.msrb.mxu1 %v605_v13  ;;  %v373_v12 = vld [vmem:[%s12229_s1 + $0x408] sm:$0xff] }
  0x4d   : > { %805 = vmatpush.msrb.mxu2 %v342_v15  ;;  %676 = vmatmul.f32.gmra.mxu1 %v8665_v20  ;;  %v501_v13 = vld [vmem:[%s12229_s1 + $0x808] sm:$0xff]  ;;  %v495_v15 = vld [vmem:[%s12229_s1 + $0x7d8] sm:$0xff] }
  0x4e   : > { %747 = vmatpush.msrb.mxu0 %v469_v16  ;;  %776 = vmatpush.msrb.mxu1 %v597_v17  ;;  %v622_v16 = vld [vmem:[%s12229_s1 + $0xbd0] sm:$0xff]  ;;  %v367_v17 = vld [vmem:[%s12229_s1 + $0x3d8] sm:$0xff] }
  0x4f   : > { %647 = vmatmul.f32.gmra.mxu0 %v8662_v19  ;;  %705 = vmatmul.f32.gmra.mxu2 %v8668_v21 }
  0x50   : > { %734 = vmatmul.f32.gmra.mxu3 %v8662_v19  ;;  %806 = vmatpush.msrb.mxu2 %v334_v22  ;;  %v487_v22 = vld [vmem:[%s12229_s1 + $0x798] sm:$0xff] }
  0x51   : > { %748 = vmatpush.msrb.mxu0 %v461_v23  ;;  %777 = vmatpush.msrb.mxu1 %v589_v24  ;;  %v614_v23 = vld [vmem:[%s12229_s1 + $0xb90] sm:$0xff]  ;;  %v359_v24 = vld [vmem:[%s12229_s1 + $0x398] sm:$0xff] }
  0x52   : > { %807 = vmatpush.msrb.mxu2 %v326_v26  ;;  %841 = vmatpush.msrb.mxu3 %v414_v52  ;;  %v479_v26 = vld [vmem:[%s12229_s1 + $0x758] sm:$0xff] }
  0x53   : > { %749 = vmatpush.msrb.mxu0 %v453_v27  ;;  %778 = vmatpush.msrb.mxu1 %v581_v28  ;;  %v606_v27 = vld [vmem:[%s12229_s1 + $0xb50] sm:$0xff]  ;;  %v351_v28 = vld [vmem:[%s12229_s1 + $0x358] sm:$0xff] }
  0x54   : > { %808 = vmatpush.msrb.mxu2 %v318_v30  ;;  %842 = vmatpush.msrb.mxu3 %v406_v56  ;;  %v471_v30 = vld [vmem:[%s12229_s1 + $0x718] sm:$0xff] }
  0x55   : > { %750 = vmatpush.msrb.mxu0 %v445_v31  ;;  %779 = vmatpush.msrb.mxu1 %v573_v32  ;;  %v598_v31 = vld [vmem:[%s12229_s1 + $0xb10] sm:$0xff]  ;;  %v343_v32 = vld [vmem:[%s12229_s1 + $0x318] sm:$0xff] }
  0x56   : > { %809 = vmatpush.msrb.mxu2 %v310_v34  ;;  %679 = vmatmul.f32.gmra.mxu1 %v8726_v39  ;;  %v463_v34 = vld [vmem:[%s12229_s1 + $0x6d8] sm:$0xff] }
  0x57   : > { %751 = vmatpush.msrb.mxu0 %v437_v35  ;;  %780 = vmatpush.msrb.mxu1 %v565_v36  ;;  %v590_v35 = vld [vmem:[%s12229_s1 + $0xad0] sm:$0xff]  ;;  %v335_v36 = vld [vmem:[%s12229_s1 + $0x2d8] sm:$0xff] }
  0x58   : > { %650 = vmatmul.f32.gmra.mxu0 %v8723_v38  ;;  %708 = vmatmul.f32.gmra.mxu2 %v8729_v40  ;;  %v567_v52 = vld [vmem:[%s12229_s1 + $0xa18] sm:$0xff] }
  0x59   : > { %737 = vmatmul.f32.gmra.mxu3 %v8723_v38  ;;  %810 = vmatpush.msrb.mxu2 %v302_v41  ;;  %v455_v41 = vld [vmem:[%s12229_s1 + $0x698] sm:$0xff] }
  0x5a   : > { %752 = vmatpush.msrb.mxu0 %v429_v42  ;;  %781 = vmatpush.msrb.mxu1 %v557_v43  ;;  %v582_v42 = vld [vmem:[%s12229_s1 + $0xa90] sm:$0xff]  ;;  %v327_v43 = vld [vmem:[%s12229_s1 + $0x298] sm:$0xff] }
  0x5b   : > { %811 = vmatpush.msrb.mxu2 %v294_v45  ;;  %843 = vmatpush.msrb.mxu3 %v398_v63  ;;  %v447_v45 = vld [vmem:[%s12229_s1 + $0x658] sm:$0xff] }
  0x5c   : > { %753 = vmatpush.msrb.mxu0 %v421_v46  ;;  %782 = vmatpush.msrb.mxu1 %v549_v47  ;;  %v574_v46 = vld [vmem:[%s12229_s1 + $0xa50] sm:$0xff]  ;;  %v319_v47 = vld [vmem:[%s12229_s1 + $0x258] sm:$0xff] }
  0x5d   : > { %812 = vmatpush.msrb.mxu2 %v286_v49  ;;  %844 = vmatpush.msrb.mxu3 %v390_v6  ;;  %v439_v49 = vld [vmem:[%s12229_s1 + $0x618] sm:$0xff] }
  0x5e   : > { %754 = vmatpush.msrb.mxu0 %v413_v50  ;;  %783 = vmatpush.msrb.mxu1 %v541_v51  ;;  %v566_v50 = vld [vmem:[%s12229_s1 + $0xa10] sm:$0xff]  ;;  %v311_v51 = vld [vmem:[%s12229_s1 + $0x218] sm:$0xff] }
  0x5f   : > { %813 = vmatpush.msrb.mxu2 %v278_v53  ;;  %682 = vmatmul.f32.gmra.mxu1 %v8787_v58  ;;  %v431_v53 = vld [vmem:[%s12229_s1 + $0x5d8] sm:$0xff] }
  0x60   : > { %755 = vmatpush.msrb.mxu0 %v405_v54  ;;  %784 = vmatpush.msrb.mxu1 %v533_v55  ;;  %v558_v54 = vld [vmem:[%s12229_s1 + $0x9d0] sm:$0xff]  ;;  %v303_v55 = vld [vmem:[%s12229_s1 + $0x1d8] sm:$0xff] }
  0x61   : > { %653 = vmatmul.f32.gmra.mxu0 %v8784_v57  ;;  %711 = vmatmul.f32.gmra.mxu2 %v8790_v59  ;;  %v559_v56 = vld [vmem:[%s12229_s1 + $0x9d8] sm:$0xff] }
  0x62   : > { %740 = vmatmul.f32.gmra.mxu3 %v8784_v57  ;;  %814 = vmatpush.msrb.mxu2 %v270_v60  ;;  %v423_v60 = vld [vmem:[%s12229_s1 + $0x598] sm:$0xff] }
  0x63   : > { %756 = vmatpush.msrb.mxu0 %v397_v61  ;;  %785 = vmatpush.msrb.mxu1 %v525_v62  ;;  %v550_v61 = vld [vmem:[%s12229_s1 + $0x990] sm:$0xff]  ;;  %v295_v62 = vld [vmem:[%s12229_s1 + $0x198] sm:$0xff] }
  0x64   : > { %815 = vmatpush.msrb.mxu2 %v262_v3  ;;  %845 = vmatpush.msrb.mxu3 %v382_v10  ;;  %v551_v63 = vld [vmem:[%s12229_s1 + $0x998] sm:$0xff] }
  0x65   : > { %757 = vmatpush.msrb.mxu0 %v389_v4  ;;  %786 = vmatpush.msrb.mxu1 %v517_v5  ;;  %v415_v3 = vld [vmem:[%s12229_s1 + $0x558] sm:$0xff]  ;;  %v542_v4 = vld [vmem:[%s12229_s1 + $0x950] sm:$0xff] }
  0x66   : > { %816 = vmatpush.msrb.mxu2 %v254_v7  ;;  %846 = vmatpush.msrb.mxu3 %v374_v14  ;;  %v287_v5 = vld [vmem:[%s12229_s1 + $0x158] sm:$0xff] }
  0x67   : > { %758 = vmatpush.msrb.mxu0 %v381_v8  ;;  %787 = vmatpush.msrb.mxu1 %v509_v9  ;;  %v543_v6 = vld [vmem:[%s12229_s1 + $0x958] sm:$0xff]  ;;  %v534_v8 = vld [vmem:[%s12229_s1 + $0x910] sm:$0xff] }
  0x68   : > { %817 = vmatpush.msrb.mxu2 %v246_v11  ;;  %947 = vmatpush.msra.mxu3 %v623_v18  ;;  %v407_v7 = vld [vmem:[%s12229_s1 + $0x518] sm:$0xff] }
  0x69   : > { %759 = vmatpush.msrb.mxu0 %v373_v12  ;;  %788 = vmatpush.msrb.mxu1 %v501_v13  ;;  %v279_v9 = vld [vmem:[%s12229_s1 + $0x118] sm:$0xff]  ;;  %v526_v12 = vld [vmem:[%s12229_s1 + $0x8d0] sm:$0xff] }
  0x6a   : > { %760 = vmatmul.f32.vlgmr.msrb.gmra.mxu0 %v8604_v1  ;;  %789 = vmatmul.f32.vlgmr.msrb.gmra.mxu1 %v8607_v2  ;;  %v535_v10 = vld [vmem:[%s12229_s1 + $0x918] sm:$0xff] }
  0x6b   : > { %818 = vmatmul.f32.vlgmr.msrb.gmra.mxu2 %v8601_v0  ;;  %847 = vmatmul.f32.vlgmr.msrb.gmra.mxu3 %v8604_v1  ;;  %v399_v11 = vld [vmem:[%s12229_s1 + $0x4d8] sm:$0xff] }
  0x6c   : > { %918 = vmatpush.msra.mxu2 %v495_v15  ;;  %860 = vmatpush.msra.mxu0 %v622_v16  ;;  %v271_v13 = vld [vmem:[%s12229_s1 + $0xd8] sm:$0xff]  ;;  %v518_v16 = vld [vmem:[%s12229_s1 + $0x890] sm:$0xff] }
  0x6d   : > { %889 = vmatpush.msra.mxu1 %v367_v17  ;;  %948 = vmatpush.msra.mxu3 %v615_v25  ;;  %v527_v14 = vld [vmem:[%s12229_s1 + $0x8d8] sm:$0xff] }
  0x6e   : > { %919 = vmatpush.msra.mxu2 %v487_v22  ;;  %861 = vmatpush.msra.mxu0 %v614_v23  ;;  %v391_v15 = vld [vmem:[%s12229_s1 + $0x498] sm:$0xff]  ;;  %v510_v23 = vld [vmem:[%s12229_s1 + $0x850] sm:$0xff] }
  0x6f   : > { %890 = vmatpush.msra.mxu1 %v359_v24  ;;  %949 = vmatpush.msra.mxu3 %v607_v29  ;;  %v263_v17 = vld [vmem:[%s12229_s1 + $0x98] sm:$0xff] }
  0x70   : > { %920 = vmatpush.msra.mxu2 %v479_v26  ;;  %862 = vmatpush.msra.mxu0 %v606_v27  ;;  %v519_v18 = vld [vmem:[%s12229_s1 + $0x898] sm:$0xff]  ;;  %v502_v27 = vld [vmem:[%s12229_s1 + $0x810] sm:$0xff] }
  0x71   : > { %891 = vmatpush.msra.mxu1 %v351_v28  ;;  %950 = vmatpush.msra.mxu3 %v599_v33  ;;  %v383_v22 = vld [vmem:[%s12229_s1 + $0x458] sm:$0xff]  ;;  %v369_v33 = vld [vmem:[%s12229_s1 + $0x3e8] sm:$0xff] }
  0x72   : > { %921 = vmatpush.msra.mxu2 %v471_v30  ;;  %863 = vmatpush.msra.mxu0 %v598_v31  ;;  %v255_v24 = vld [vmem:[%s12229_s1 + $0x58] sm:$0xff]  ;;  %v624_v30 = vld [vmem:[%s12229_s1 + $0xbe0] sm:$0xff] }
  0x73   : > { %892 = vmatpush.msra.mxu1 %v343_v32  ;;  %763 = vmatmul.f32.gmra.mxu0 %v8665_v20  ;;  %v511_v25 = vld [vmem:[%s12229_s1 + $0x858] sm:$0xff]  ;;  %v368_v31 = vld [vmem:[%s12229_s1 + $0x3e0] sm:$0xff] }
  0x74   : > { %792 = vmatmul.f32.gmra.mxu1 %v8668_v21  ;;  %821 = vmatmul.f32.gmra.mxu2 %v8662_v19  ;;  %v375_v26 = vld [vmem:[%s12229_s1 + $0x418] sm:$0xff]  ;;  %v496_v32 = vld [vmem:[%s12229_s1 + $0x7e0] sm:$0xff] }
  0x75   : > { %850 = vmatmul.f32.gmra.mxu3 %v8665_v20  ;;  %922 = vmatpush.msra.mxu2 %v463_v34  ;;  %v247_v28 = vld [vmem:[%s12229_s1 + $0x18] sm:$0xff]  ;;  %v616_v34 = vld [vmem:[%s12229_s1 + $0xba0] sm:$0xff] }
  0x76   : > { %864 = vmatpush.msra.mxu0 %v590_v35  ;;  %893 = vmatpush.msra.mxu1 %v335_v36  ;;  %v503_v29 = vld [vmem:[%s12229_s1 + $0x818] sm:$0xff]  ;;  %v360_v35 = vld [vmem:[%s12229_s1 + $0x3a0] sm:$0xff] }
  0x77   : > { %951 = vmatpush.msra.mxu3 %v591_v37  ;;  %923 = vmatpush.msra.mxu2 %v455_v41  ;;  %v488_v36 = vld [vmem:[%s12229_s1 + $0x7a0] sm:$0xff]  ;;  %v361_v37 = vld [vmem:[%s12229_s1 + $0x3a8] sm:$0xff] }
  0x78   : > { %865 = vmatpush.msra.mxu0 %v582_v42  ;;  %894 = vmatpush.msra.mxu1 %v327_v43  ;;  %v608_v41 = vld [vmem:[%s12229_s1 + $0xb60] sm:$0xff] }
  0x79   : > { %952 = vmatpush.msra.mxu3 %v583_v44  ;;  %924 = vmatpush.msra.mxu2 %v447_v45  ;;  %v352_v42 = vld [vmem:[%s12229_s1 + $0x360] sm:$0xff]  ;;  %v353_v44 = vld [vmem:[%s12229_s1 + $0x368] sm:$0xff] }
  0x7a   : > { %866 = vmatpush.msra.mxu0 %v574_v46  ;;  %895 = vmatpush.msra.mxu1 %v319_v47  ;;  %v480_v43 = vld [vmem:[%s12229_s1 + $0x760] sm:$0xff] }
  0x7b   : > { %953 = vmatpush.msra.mxu3 %v575_v48  ;;  %925 = vmatpush.msra.mxu2 %v439_v49  ;;  %v600_v45 = vld [vmem:[%s12229_s1 + $0xb20] sm:$0xff]  ;;  %v345_v48 = vld [vmem:[%s12229_s1 + $0x328] sm:$0xff] }
  0x7c   : > { %867 = vmatpush.msra.mxu0 %v566_v50  ;;  %896 = vmatpush.msra.mxu1 %v311_v51  ;;  %v344_v46 = vld [vmem:[%s12229_s1 + $0x320] sm:$0xff] }
  0x7d   : > { %954 = vmatpush.msra.mxu3 %v567_v52  ;;  %766 = vmatmul.f32.gmra.mxu0 %v8726_v39  ;;  %v472_v47 = vld [vmem:[%s12229_s1 + $0x720] sm:$0xff]  ;;  %v337_v52 = vld [vmem:[%s12229_s1 + $0x2e8] sm:$0xff] }
  0x7e   : > { %795 = vmatmul.f32.gmra.mxu1 %v8729_v40  ;;  %824 = vmatmul.f32.gmra.mxu2 %v8723_v38  ;;  %v592_v49 = vld [vmem:[%s12229_s1 + $0xae0] sm:$0xff] }
  0x7f   : > { %853 = vmatmul.f32.gmra.mxu3 %v8726_v39  ;;  %926 = vmatpush.msra.mxu2 %v431_v53  ;;  %v336_v50 = vld [vmem:[%s12229_s1 + $0x2e0] sm:$0xff] }
  0x80   : > { %868 = vmatpush.msra.mxu0 %v558_v54  ;;  %897 = vmatpush.msra.mxu1 %v303_v55  ;;  %v464_v51 = vld [vmem:[%s12229_s1 + $0x6e0] sm:$0xff] }
  0x81   : > { %955 = vmatpush.msra.mxu3 %v559_v56  ;;  %927 = vmatpush.msra.mxu2 %v423_v60  ;;  %v584_v53 = vld [vmem:[%s12229_s1 + $0xaa0] sm:$0xff]  ;;  %v329_v56 = vld [vmem:[%s12229_s1 + $0x2a8] sm:$0xff] }
  0x82   : > { %869 = vmatpush.msra.mxu0 %v550_v61  ;;  %898 = vmatpush.msra.mxu1 %v295_v62  ;;  %v328_v54 = vld [vmem:[%s12229_s1 + $0x2a0] sm:$0xff] }
  0x83   : > { %956 = vmatpush.msra.mxu3 %v551_v63  ;;  %928 = vmatpush.msra.mxu2 %v415_v3  ;;  %v456_v55 = vld [vmem:[%s12229_s1 + $0x6a0] sm:$0xff]  ;;  %v321_v63 = vld [vmem:[%s12229_s1 + $0x268] sm:$0xff] }
  0x84   : > { %870 = vmatpush.msra.mxu0 %v542_v4  ;;  %899 = vmatpush.msra.mxu1 %v287_v5  ;;  %v576_v60 = vld [vmem:[%s12229_s1 + $0xa60] sm:$0xff] }
  0x85   : > { %957 = vmatpush.msra.mxu3 %v543_v6  ;;  %929 = vmatpush.msra.mxu2 %v407_v7  ;;  %v320_v61 = vld [vmem:[%s12229_s1 + $0x260] sm:$0xff]  ;;  %v313_v6 = vld [vmem:[%s12229_s1 + $0x228] sm:$0xff] }
  0x86   : > { %871 = vmatpush.msra.mxu0 %v534_v8  ;;  %900 = vmatpush.msra.mxu1 %v279_v9  ;;  %v448_v62 = vld [vmem:[%s12229_s1 + $0x660] sm:$0xff] }
  0x87   : > { %958 = vmatpush.msra.mxu3 %v535_v10  ;;  %769 = vmatmul.f32.gmra.mxu0 %v8787_v58  ;;  %v568_v3 = vld [vmem:[%s12229_s1 + $0xa20] sm:$0xff]  ;;  %v305_v10 = vld [vmem:[%s12229_s1 + $0x1e8] sm:$0xff] }
  0x88   : > { %798 = vmatmul.f32.gmra.mxu1 %v8790_v59  ;;  %827 = vmatmul.f32.gmra.mxu2 %v8784_v57  ;;  %v312_v4 = vld [vmem:[%s12229_s1 + $0x220] sm:$0xff] }
  0x89   : > { %856 = vmatmul.f32.gmra.mxu3 %v8787_v58  ;;  %930 = vmatpush.msra.mxu2 %v399_v11  ;;  %v440_v5 = vld [vmem:[%s12229_s1 + $0x620] sm:$0xff] }
  0x8a   : > { %872 = vmatpush.msra.mxu0 %v526_v12  ;;  %901 = vmatpush.msra.mxu1 %v271_v13  ;;  %v560_v7 = vld [vmem:[%s12229_s1 + $0x9e0] sm:$0xff] }
  0x8b   : > { %959 = vmatpush.msra.mxu3 %v527_v14  ;;  %931 = vmatpush.msra.mxu2 %v391_v15  ;;  %v304_v8 = vld [vmem:[%s12229_s1 + $0x1e0] sm:$0xff]  ;;  %v297_v14 = vld [vmem:[%s12229_s1 + $0x1a8] sm:$0xff] }
  0x8c   : > { %873 = vmatpush.msra.mxu0 %v518_v16  ;;  %902 = vmatpush.msra.mxu1 %v263_v17  ;;  %v432_v9 = vld [vmem:[%s12229_s1 + $0x5e0] sm:$0xff] }
  0x8d   : > { %960 = vmatpush.msra.mxu3 %v519_v18  ;;  %932 = vmatpush.msra.mxu2 %v383_v22  ;;  %v552_v11 = vld [vmem:[%s12229_s1 + $0x9a0] sm:$0xff]  ;;  %v289_v18 = vld [vmem:[%s12229_s1 + $0x168] sm:$0xff] }
  0x8e   : > { %874 = vmatpush.msra.mxu0 %v510_v23  ;;  %903 = vmatpush.msra.mxu1 %v255_v24  ;;  %v296_v12 = vld [vmem:[%s12229_s1 + $0x1a0] sm:$0xff] }
  0x8f   : > { %961 = vmatpush.msra.mxu3 %v511_v25  ;;  %933 = vmatpush.msra.mxu2 %v375_v26  ;;  %v424_v13 = vld [vmem:[%s12229_s1 + $0x5a0] sm:$0xff]  ;;  %v281_v25 = vld [vmem:[%s12229_s1 + $0x128] sm:$0xff] }
  0x90   : > { %875 = vmatpush.msra.mxu0 %v502_v27  ;;  %904 = vmatpush.msra.mxu1 %v247_v28  ;;  %v544_v15 = vld [vmem:[%s12229_s1 + $0x960] sm:$0xff] }
  0x91   : > { %962 = vmatpush.msra.mxu3 %v503_v29  ;;  %876 = vmatmul.f32.vlgmr.msra.gmra.mxu0 %v8607_v2  ;;  %v288_v16 = vld [vmem:[%s12229_s1 + $0x160] sm:$0xff]  ;;  %v273_v29 = vld [vmem:[%s12229_s1 + $0xe8] sm:$0xff] }
  0x92   : > { %905 = vmatmul.f32.vlgmr.msra.gmra.mxu1 %v8601_v0  ;;  %934 = vmatmul.f32.vlgmr.msra.gmra.mxu2 %v8604_v1  ;;  %v416_v17 = vld [vmem:[%s12229_s1 + $0x560] sm:$0xff] }
  0x93   : > { %963 = vmatmul.f32.vlgmr.msra.gmra.mxu3 %v8607_v2  ;;  %1034 = vmatpush.msrb.mxu2 %v624_v30  ;;  %v536_v22 = vld [vmem:[%s12229_s1 + $0x920] sm:$0xff] }
  0x94   : > { %976 = vmatpush.msrb.mxu0 %v368_v31  ;;  %1005 = vmatpush.msrb.mxu1 %v496_v32  ;;  %v280_v23 = vld [vmem:[%s12229_s1 + $0x120] sm:$0xff] }
  0x95   : > { %1063 = vmatpush.msrb.mxu3 %v369_v33  ;;  %1035 = vmatpush.msrb.mxu2 %v616_v34  ;;  %v408_v24 = vld [vmem:[%s12229_s1 + $0x520] sm:$0xff]  ;;  %v265_v33 = vld [vmem:[%s12229_s1 + $0xa8] sm:$0xff] }
  0x96   : > { %977 = vmatpush.msrb.mxu0 %v360_v35  ;;  %1006 = vmatpush.msrb.mxu1 %v488_v36  ;;  %v528_v26 = vld [vmem:[%s12229_s1 + $0x8e0] sm:$0xff] }
  0x97   : > { %1064 = vmatpush.msrb.mxu3 %v361_v37  ;;  %1036 = vmatpush.msrb.mxu2 %v608_v41  ;;  %v272_v27 = vld [vmem:[%s12229_s1 + $0xe0] sm:$0xff]  ;;  %v257_v37 = vld [vmem:[%s12229_s1 + $0x68] sm:$0xff] }
  0x98   : > { %978 = vmatpush.msrb.mxu0 %v352_v42  ;;  %1007 = vmatpush.msrb.mxu1 %v480_v43  ;;  %v400_v28 = vld [vmem:[%s12229_s1 + $0x4e0] sm:$0xff] }
  0x99   : > { %1065 = vmatpush.msrb.mxu3 %v353_v44  ;;  %1037 = vmatpush.msrb.mxu2 %v600_v45  ;;  %v520_v30 = vld [vmem:[%s12229_s1 + $0x8a0] sm:$0xff]  ;;  %v249_v44 = vld [vmem:[%s12229_s1 + $0x28] sm:$0xff]  ;;  %v370_v45 = vld [vmem:[%s12229_s1 + $0x3f0] sm:$0xff] }
  0x9a   : > { %979 = vmatpush.msrb.mxu0 %v344_v46  ;;  %1008 = vmatpush.msrb.mxu1 %v472_v47  ;;  %v264_v31 = vld [vmem:[%s12229_s1 + $0xa0] sm:$0xff]  ;;  %v497_v46 = vld [vmem:[%s12229_s1 + $0x7e8] sm:$0xff] }
  0x9b   : > { %1066 = vmatpush.msrb.mxu3 %v345_v48  ;;  %879 = vmatmul.f32.gmra.mxu0 %v8668_v21  ;;  %v392_v32 = vld [vmem:[%s12229_s1 + $0x4a0] sm:$0xff]  ;;  %v625_v47 = vld [vmem:[%s12229_s1 + $0xbe8] sm:$0xff]  ;;  %v498_v48 = vld [vmem:[%s12229_s1 + $0x7f0] sm:$0xff] }
  0x9c   : > { %908 = vmatmul.f32.gmra.mxu1 %v8662_v19  ;;  %937 = vmatmul.f32.gmra.mxu2 %v8665_v20  ;;  %v512_v34 = vld [vmem:[%s12229_s1 + $0x860] sm:$0xff] }
  0x9d   : > { %966 = vmatmul.f32.gmra.mxu3 %v8668_v21  ;;  %1038 = vmatpush.msrb.mxu2 %v592_v49  ;;  %v256_v35 = vld [vmem:[%s12229_s1 + $0x60] sm:$0xff]  ;;  %v362_v49 = vld [vmem:[%s12229_s1 + $0x3b0] sm:$0xff] }
  0x9e   : > { %980 = vmatpush.msrb.mxu0 %v336_v50  ;;  %1009 = vmatpush.msrb.mxu1 %v464_v51  ;;  %v384_v36 = vld [vmem:[%s12229_s1 + $0x460] sm:$0xff]  ;;  %v617_v50 = vld [vmem:[%s12229_s1 + $0xba8] sm:$0xff] }
  0x9f   : > { %1067 = vmatpush.msrb.mxu3 %v337_v52  ;;  %1039 = vmatpush.msrb.mxu2 %v584_v53  ;;  %v504_v41 = vld [vmem:[%s12229_s1 + $0x820] sm:$0xff]  ;;  %v481_v51 = vld [vmem:[%s12229_s1 + $0x768] sm:$0xff]  ;;  %v482_v53 = vld [vmem:[%s12229_s1 + $0x770] sm:$0xff] }
  0xa0   : > { %981 = vmatpush.msrb.mxu0 %v328_v54  ;;  %1010 = vmatpush.msrb.mxu1 %v456_v55  ;;  %v248_v42 = vld [vmem:[%s12229_s1 + $0x20] sm:$0xff]  ;;  %v609_v52 = vld [vmem:[%s12229_s1 + $0xb68] sm:$0xff]  ;;  %v346_v54 = vld [vmem:[%s12229_s1 + $0x330] sm:$0xff] }
  0xa1   : > { %1068 = vmatpush.msrb.mxu3 %v329_v56  ;;  %1040 = vmatpush.msrb.mxu2 %v576_v60  ;;  %v376_v43 = vld [vmem:[%s12229_s1 + $0x420] sm:$0xff]  ;;  %v473_v55 = vld [vmem:[%s12229_s1 + $0x728] sm:$0xff] }
  0xa2   : > { %982 = vmatpush.msrb.mxu0 %v320_v61  ;;  %1011 = vmatpush.msrb.mxu1 %v448_v62  ;;  %v601_v60 = vld [vmem:[%s12229_s1 + $0xb28] sm:$0xff]  ;;  %v474_v61 = vld [vmem:[%s12229_s1 + $0x730] sm:$0xff] }
  0xa3   : > { %1069 = vmatpush.msrb.mxu3 %v321_v63  ;;  %1041 = vmatpush.msrb.mxu2 %v568_v3  ;;  %v338_v63 = vld [vmem:[%s12229_s1 + $0x2f0] sm:$0xff]  ;;  %v465_v3 = vld [vmem:[%s12229_s1 + $0x6e8] sm:$0xff] }
  0xa4   : > { %983 = vmatpush.msrb.mxu0 %v312_v4  ;;  %1012 = vmatpush.msrb.mxu1 %v440_v5  ;;  %v593_v4 = vld [vmem:[%s12229_s1 + $0xae8] sm:$0xff]  ;;  %v466_v5 = vld [vmem:[%s12229_s1 + $0x6f0] sm:$0xff] }
  0xa5   : > { %1070 = vmatpush.msrb.mxu3 %v313_v6  ;;  %882 = vmatmul.f32.gmra.mxu0 %v8729_v40  ;;  %v330_v6 = vld [vmem:[%s12229_s1 + $0x2b0] sm:$0xff] }
  0xa6   : > { %911 = vmatmul.f32.gmra.mxu1 %v8723_v38  ;;  %940 = vmatmul.f32.gmra.mxu2 %v8726_v39 }
  0xa7   : > { %969 = vmatmul.f32.gmra.mxu3 %v8729_v40  ;;  %1042 = vmatpush.msrb.mxu2 %v560_v7  ;;  %v585_v7 = vld [vmem:[%s12229_s1 + $0xaa8] sm:$0xff] }
  0xa8   : > { %984 = vmatpush.msrb.mxu0 %v304_v8  ;;  %1013 = vmatpush.msrb.mxu1 %v432_v9  ;;  %v449_v9 = vld [vmem:[%s12229_s1 + $0x668] sm:$0xff] }
  0xa9   : > { %1071 = vmatpush.msrb.mxu3 %v305_v10  ;;  %1043 = vmatpush.msrb.mxu2 %v552_v11  ;;  %v577_v10 = vld [vmem:[%s12229_s1 + $0xa68] sm:$0xff]  ;;  %v450_v11 = vld [vmem:[%s12229_s1 + $0x670] sm:$0xff] }
  0xaa   : > { %985 = vmatpush.msrb.mxu0 %v296_v12  ;;  %1014 = vmatpush.msrb.mxu1 %v424_v13  ;;  %v314_v12 = vld [vmem:[%s12229_s1 + $0x230] sm:$0xff]  ;;  %v441_v13 = vld [vmem:[%s12229_s1 + $0x628] sm:$0xff] }
  0xab   : > { %1072 = vmatpush.msrb.mxu3 %v297_v14  ;;  %1044 = vmatpush.msrb.mxu2 %v544_v15 }
  0xac   : > { %986 = vmatpush.msrb.mxu0 %v288_v16  ;;  %1015 = vmatpush.msrb.mxu1 %v416_v17  ;;  %v569_v16 = vld [vmem:[%s12229_s1 + $0xa28] sm:$0xff]  ;;  %v442_v17 = vld [vmem:[%s12229_s1 + $0x630] sm:$0xff] }
  0xad   : > { %1073 = vmatpush.msrb.mxu3 %v289_v18  ;;  %1045 = vmatpush.msrb.mxu2 %v536_v22  ;;  %v306_v22 = vld [vmem:[%s12229_s1 + $0x1f0] sm:$0xff] }
  0xae   : > { %987 = vmatpush.msrb.mxu0 %v280_v23  ;;  %1016 = vmatpush.msrb.mxu1 %v408_v24  ;;  %v433_v23 = vld [vmem:[%s12229_s1 + $0x5e8] sm:$0xff] }
  0xaf   : > { %1074 = vmatpush.msrb.mxu3 %v281_v25  ;;  %885 = vmatmul.f32.gmra.mxu0 %v8790_v59  ;;  %v561_v24 = vld [vmem:[%s12229_s1 + $0x9e8] sm:$0xff]  ;;  %v434_v25 = vld [vmem:[%s12229_s1 + $0x5f0] sm:$0xff] }
  0xb0   : > { %914 = vmatmul.f32.gmra.mxu1 %v8784_v57  ;;  %943 = vmatmul.f32.gmra.mxu2 %v8787_v58 }
  0xb1   : > { %972 = vmatmul.f32.gmra.mxu3 %v8790_v59  ;;  %1046 = vmatpush.msrb.mxu2 %v528_v26  ;;  %v298_v26 = vld [vmem:[%s12229_s1 + $0x1b0] sm:$0xff] }
  0xb2   : > { %988 = vmatpush.msrb.mxu0 %v272_v27  ;;  %1017 = vmatpush.msrb.mxu1 %v400_v28  ;;  %v553_v27 = vld [vmem:[%s12229_s1 + $0x9a8] sm:$0xff] }
  0xb3   : > { %1075 = vmatpush.msrb.mxu3 %v273_v29  ;;  %1047 = vmatpush.msrb.mxu2 %v520_v30  ;;  %v417_v29 = vld [vmem:[%s12229_s1 + $0x568] sm:$0xff] }
  0xb4   : > { %989 = vmatpush.msrb.mxu0 %v264_v31  ;;  %1018 = vmatpush.msrb.mxu1 %v392_v32  ;;  %v545_v30 = vld [vmem:[%s12229_s1 + $0x968] sm:$0xff]  ;;  %v418_v31 = vld [vmem:[%s12229_s1 + $0x570] sm:$0xff] }
  0xb5   : > { %1076 = vmatpush.msrb.mxu3 %v265_v33  ;;  %1048 = vmatpush.msrb.mxu2 %v512_v34  ;;  %v282_v32 = vld [vmem:[%s12229_s1 + $0x130] sm:$0xff]  ;;  %v409_v33 = vld [vmem:[%s12229_s1 + $0x528] sm:$0xff] }
  0xb6   : > { %990 = vmatpush.msrb.mxu0 %v256_v35  ;;  %1019 = vmatpush.msrb.mxu1 %v384_v36  ;;  %v537_v36 = vld [vmem:[%s12229_s1 + $0x928] sm:$0xff] }
  0xb7   : > { %1077 = vmatpush.msrb.mxu3 %v257_v37  ;;  %1049 = vmatpush.msrb.mxu2 %v504_v41  ;;  %v410_v37 = vld [vmem:[%s12229_s1 + $0x530] sm:$0xff] }
  0xb8   : > { %991 = vmatpush.msrb.mxu0 %v248_v42  ;;  %1020 = vmatpush.msrb.mxu1 %v376_v43  ;;  %v274_v42 = vld [vmem:[%s12229_s1 + $0xf0] sm:$0xff]  ;;  %v401_v43 = vld [vmem:[%s12229_s1 + $0x4e8] sm:$0xff] }
  0xb9   : > { %1078 = vmatpush.msrb.mxu3 %v249_v44  ;;  %992 = vmatmul.f32.vlgmr.msrb.gmra.mxu0 %v8601_v0  ;;  %v529_v44 = vld [vmem:[%s12229_s1 + $0x8e8] sm:$0xff] }
  0xba   : > { %1021 = vmatmul.f32.vlgmr.msrb.gmra.mxu1 %v8604_v1  ;;  %1050 = vmatmul.f32.vlgmr.msrb.gmra.mxu2 %v8607_v2  ;;  %v489_v1 = vld [vmem:[%s12229_s1 + $0x7a8] sm:$0xff]  ;;  %v490_v2 = vld [vmem:[%s12229_s1 + $0x7b0] sm:$0xff] }
  0xbb   : > { %1079 = vmatmul.f32.vlgmr.msrb.gmra.mxu3 %v8601_v0  ;;  %1150 = vmatpush.msra.mxu2 %v370_v45  ;;  %v354_v0 = vld [vmem:[%s12229_s1 + $0x370] sm:$0xff] }
  0xbc   : > { %1092 = vmatpush.msra.mxu0 %v497_v46  ;;  %1121 = vmatpush.msra.mxu1 %v625_v47  ;;  %v402_v45 = vld [vmem:[%s12229_s1 + $0x4f0] sm:$0xff]  ;;  %v521_v47 = vld [vmem:[%s12229_s1 + $0x8a8] sm:$0xff] }
  0xbd   : > { %1179 = vmatpush.msra.mxu3 %v498_v48  ;;  %1151 = vmatpush.msra.mxu2 %v362_v49  ;;  %v266_v46 = vld [vmem:[%s12229_s1 + $0xb0] sm:$0xff]  ;;  %v385_v49 = vld [vmem:[%s12229_s1 + $0x468] sm:$0xff] }
  0xbe   : > { %1093 = vmatpush.msra.mxu0 %v489_v1  ;;  %1122 = vmatpush.msra.mxu1 %v617_v50  ;;  %v513_v1 = vld [vmem:[%s12229_s1 + $0x868] sm:$0xff]  ;;  %v386_v50 = vld [vmem:[%s12229_s1 + $0x470] sm:$0xff] }
  0xbf   : > { %1180 = vmatpush.msra.mxu3 %v490_v2  ;;  %1152 = vmatpush.msra.mxu2 %v354_v0  ;;  %v250_v2 = vld [vmem:[%s12229_s1 + $0x30] sm:$0xff]  ;;  %v377_v0 = vld [vmem:[%s12229_s1 + $0x428] sm:$0xff] }
  0xc0   : > { %1094 = vmatpush.msra.mxu0 %v481_v51  ;;  %1123 = vmatpush.msra.mxu1 %v609_v52 }
  0xc1   : > { %1181 = vmatpush.msra.mxu3 %v482_v53  ;;  %1153 = vmatpush.msra.mxu2 %v346_v54  ;;  %v505_v53 = vld [vmem:[%s12229_s1 + $0x828] sm:$0xff]  ;;  %v378_v54 = vld [vmem:[%s12229_s1 + $0x430] sm:$0xff] }
  0xc2   : > { %v9314_v62 = vpop.f32.mrf.mxu1  ;;  %1095 = vmatpush.msra.mxu0 %v473_v55  ;;  %1124 = vmatpush.msra.mxu1 %v601_v60  ;;  %v499_v60 = vld [vmem:[%s12229_s1 + $0x7f8] sm:$0xff] }
  0xc3   : > { %v9306_v56 = vpop.f32.mrf.mxu0  ;;  %1182 = vmatpush.msra.mxu3 %v474_v61  ;;  %995 = vmatmul.f32.gmra.mxu0 %v8662_v19  ;;  %v626_v61 = vld [vmem:[%s12229_s1 + $0xbf0] sm:$0xff] }
  0xc4   : > { %1024 = vmatmul.f32.gmra.mxu1 %v8665_v20  ;;  %1053 = vmatmul.f32.gmra.mxu2 %v8668_v21  ;;  %v457_v20 = vld [vmem:[%s12229_s1 + $0x6a8] sm:$0xff]  ;;  %v458_v21 = vld [vmem:[%s12229_s1 + $0x6b0] sm:$0xff] }
  0xc5   : > { %1082 = vmatmul.f32.gmra.mxu3 %v8662_v19  ;;  %1154 = vmatpush.msra.mxu2 %v338_v63  ;;  %v322_v19 = vld [vmem:[%s12229_s1 + $0x270] sm:$0xff]  ;;  %v9503_v63 = vld [vmem:[%s8586_s25 + $0x8] sm:$0xff] }
  0xc6   : > { %1096 = vmatpush.msra.mxu0 %v465_v3  ;;  %1125 = vmatpush.msra.mxu1 %v593_v4  ;;  %v9507_v3 = vld [vmem:[%s8586_s25 + $0x10] sm:$0xff]  ;;  %v371_v4 = vld [vmem:[%s12229_s1 + $0x3f8] sm:$0xff] }
  0xc7   : > { %1183 = vmatpush.msra.mxu3 %v466_v5  ;;  %1155 = vmatpush.msra.mxu2 %v330_v6  ;;  %v627_v5 = vld [vmem:[%s12229_s1 + $0xbf8] sm:$0xff]  ;;  %v9517_v6 = vld [vmem:[%s8586_s25] sm:$0xff] }
  0xc8   : > { %1097 = vmatpush.msra.mxu0 %v457_v20  ;;  %1126 = vmatpush.msra.mxu1 %v585_v7  ;;  %v491_v20 = vld [vmem:[%s12229_s1 + $0x7b8] sm:$0xff]  ;;  %v618_v7 = vld [vmem:[%s12229_s1 + $0xbb0] sm:$0xff] }
  0xc9   : > { %v9344_v8 = vpop.f32.mrf.mxu2  ;;  %1184 = vmatpush.msra.mxu3 %v458_v21  ;;  %1156 = vmatpush.msra.mxu2 %v322_v19  ;;  %v363_v21 = vld [vmem:[%s12229_s1 + $0x3b8] sm:$0xff] }
  0xca   : > { %v9364_v14 = vpop.f32.mrf.mxu3  ;;  %1098 = vmatpush.msra.mxu0 %v449_v9  ;;  %1127 = vmatpush.msra.mxu1 %v577_v10  ;;  %v9374_v18 = vpop.f32.mrf.mxu1  ;;  %v619_v19 = vld [vmem:[%s12229_s1 + $0xbb8] sm:$0xff] }
  0xcb   : > { %1185 = vmatpush.msra.mxu3 %v450_v11  ;;  %1157 = vmatpush.msra.mxu2 %v314_v12  ;;  %v483_v10 = vld [vmem:[%s12229_s1 + $0x778] sm:$0xff]  ;;  %v610_v11 = vld [vmem:[%s12229_s1 + $0xb70] sm:$0xff] }
  0xcc   : > { %v9366_v15 = vpop.f32.mrf.mxu0  ;;  %1099 = vmatpush.msra.mxu0 %v441_v13  ;;  %1128 = vmatpush.msra.mxu1 %v569_v16  ;;  %v355_v12 = vld [vmem:[%s12229_s1 + $0x378] sm:$0xff] }
  0xcd   : > { %1186 = vmatpush.msra.mxu3 %v442_v17  ;;  %998 = vmatmul.f32.gmra.mxu0 %v8723_v38  ;;  %v611_v13 = vld [vmem:[%s12229_s1 + $0xb78] sm:$0xff]  ;;  %v602_v17 = vld [vmem:[%s12229_s1 + $0xb30] sm:$0xff] }
  0xce   : > { %1027 = vmatmul.f32.gmra.mxu1 %v8726_v39  ;;  %1056 = vmatmul.f32.gmra.mxu2 %v8729_v40  ;;  %v425_v39 = vld [vmem:[%s12229_s1 + $0x5a8] sm:$0xff]  ;;  %v426_v40 = vld [vmem:[%s12229_s1 + $0x5b0] sm:$0xff]  ;;  %v475_v16 = vld [vmem:[%s12229_s1 + $0x738] sm:$0xff] }
  0xcf   : > { %1085 = vmatmul.f32.gmra.mxu3 %v8723_v38  ;;  %1158 = vmatpush.msra.mxu2 %v306_v22  ;;  %v290_v38 = vld [vmem:[%s12229_s1 + $0x170] sm:$0xff] }
  0xd0   : > { %1100 = vmatpush.msra.mxu0 %v433_v23  ;;  %1129 = vmatpush.msra.mxu1 %v561_v24  ;;  %v347_v24 = vld [vmem:[%s12229_s1 + $0x338] sm:$0xff] }
  0xd1   : > { %1187 = vmatpush.msra.mxu3 %v434_v25  ;;  %1159 = vmatpush.msra.mxu2 %v298_v26  ;;  %v467_v26 = vld [vmem:[%s12229_s1 + $0x6f8] sm:$0xff] }
  0xd2   : > { %v9404_v28 = vpop.f32.mrf.mxu2  ;;  %1101 = vmatpush.msra.mxu0 %v425_v39  ;;  %1130 = vmatpush.msra.mxu1 %v553_v27  ;;  %v9566_v39 = vld [vmem:[%s8586_s25 + $0x20] sm:$0xff]  ;;  %v603_v27 = vld [vmem:[%s12229_s1 + $0xb38] sm:$0xff] }
  0xd3   : > { %1188 = vmatpush.msra.mxu3 %v426_v40  ;;  %v9424_v34 = vpop.f32.mrf.mxu3  ;;  %1160 = vmatpush.msra.mxu2 %v290_v38  ;;  %v9434_v41 = vpop.f32.mrf.mxu1  ;;  %v594_v40 = vld [vmem:[%s12229_s1 + $0xaf0] sm:$0xff]  ;;  %v9576_v38 = vld [vmem:[%s8586_s25 + $0x28] sm:$0xff] }
  0xd4   : > { %1102 = vmatpush.msra.mxu0 %v417_v29  ;;  %1131 = vmatpush.msra.mxu1 %v545_v30  ;;  %v9580_v29 = vld [vmem:[%s8586_s25 + $0x18] sm:$0xff] }
  0xd5   : > { %v9426_v35 = vpop.f32.mrf.mxu0  ;;  %1189 = vmatpush.msra.mxu3 %v418_v31  ;;  %1161 = vmatpush.msra.mxu2 %v282_v32  ;;  %v339_v30 = vld [vmem:[%s12229_s1 + $0x2f8] sm:$0xff] }
  0xd6   : > { %1103 = vmatpush.msra.mxu0 %v409_v33  ;;  %1132 = vmatpush.msra.mxu1 %v537_v36  ;;  %v459_v31 = vld [vmem:[%s12229_s1 + $0x6b8] sm:$0xff]  ;;  %v586_v33 = vld [vmem:[%s12229_s1 + $0xab0] sm:$0xff] }
  0xd7   : > { %1190 = vmatpush.msra.mxu3 %v410_v37  ;;  %1001 = vmatmul.f32.gmra.mxu0 %v8784_v57  ;;  %v595_v32 = vld [vmem:[%s12229_s1 + $0xaf8] sm:$0xff] }
  0xd8   : > { %1030 = vmatmul.f32.gmra.mxu1 %v8787_v58  ;;  %1059 = vmatmul.f32.gmra.mxu2 %v8790_v59  ;;  %v393_v58 = vld [vmem:[%s12229_s1 + $0x4a8] sm:$0xff]  ;;  %v394_v59 = vld [vmem:[%s12229_s1 + $0x4b0] sm:$0xff]  ;;  %v331_v36 = vld [vmem:[%s12229_s1 + $0x2b8] sm:$0xff] }
  0xd9   : > { %1088 = vmatmul.f32.gmra.mxu3 %v8784_v57  ;;  %1162 = vmatpush.msra.mxu2 %v274_v42  ;;  %v258_v57 = vld [vmem:[%s12229_s1 + $0x70] sm:$0xff]  ;;  %v451_v37 = vld [vmem:[%s12229_s1 + $0x678] sm:$0xff] }
  0xda   : > { %1104 = vmatpush.msra.mxu0 %v401_v43  ;;  %1133 = vmatpush.msra.mxu1 %v529_v44  ;;  %v587_v43 = vld [vmem:[%s12229_s1 + $0xab8] sm:$0xff]  ;;  %v578_v44 = vld [vmem:[%s12229_s1 + $0xa70] sm:$0xff] }
  0xdb   : > { %v9464_v48 = vpop.f32.mrf.mxu2  ;;  %1191 = vmatpush.msra.mxu3 %v402_v45  ;;  %1163 = vmatpush.msra.mxu2 %v266_v46  ;;  %v323_v45 = vld [vmem:[%s12229_s1 + $0x278] sm:$0xff] }
  0xdc   : > { %1105 = vmatpush.msra.mxu0 %v393_v58  ;;  %1134 = vmatpush.msra.mxu1 %v521_v47  ;;  %v9484_v51 = vpop.f32.mrf.mxu3  ;;  %v9494_v55 = vpop.f32.mrf.mxu1  ;;  %v443_v46 = vld [vmem:[%s12229_s1 + $0x638] sm:$0xff]  ;;  %v570_v47 = vld [vmem:[%s12229_s1 + $0xa30] sm:$0xff] }
  0xdd   : > { %1192 = vmatpush.msra.mxu3 %v394_v59  ;;  %1164 = vmatpush.msra.mxu2 %v258_v57  ;;  %12237 = vst [vmem:[#allocation9_spill] sm:$0xff] %v9494_v55  ;;  %v579_v58 = vld [vmem:[%s12229_s1 + $0xa78] sm:$0xff] }
  0xde   : > { %v9486_v52 = vpop.f32.mrf.mxu0  ;;  %1106 = vmatpush.msra.mxu0 %v385_v49  ;;  %1135 = vmatpush.msra.mxu1 %v513_v1  ;;  %v315_v49 = vld [vmem:[%s12229_s1 + $0x238] sm:$0xff] }
  0xdf   : > { %12236 = vst [vmem:[#allocation8_spill] sm:$0xff] %v9486_v52  ;;  %1193 = vmatpush.msra.mxu3 %v386_v50  ;;  %1165 = vmatpush.msra.mxu2 %v250_v2  ;;  %v435_v50 = vld [vmem:[%s12229_s1 + $0x5f8] sm:$0xff]  ;;  %v7820_v52 = vld [vmem:[%s12230_s2 + $0x568] sm:$0x3] }
  0xe0   : > { %1107 = vmatpush.msra.mxu0 %v377_v0  ;;  %1136 = vmatpush.msra.mxu1 %v505_v53  ;;  %v9635_v2 = vld [vmem:[%s8586_s25 + $0x38] sm:$0xff]  ;;  %v562_v53 = vld [vmem:[%s12229_s1 + $0x9f0] sm:$0xff] }
  0xe1   : > { %1194 = vmatpush.msra.mxu3 %v378_v54  ;;  %1108 = vmatmul.f32.vlgmr.msra.gmra.mxu0 %v9503_v63  ;;  %v571_v0 = vld [vmem:[%s12229_s1 + $0xa38] sm:$0xff]  ;;  %v9645_v54 = vld [vmem:[%s8586_s25 + $0x40] sm:$0xff] }
  0xe2   : > { %1137 = vmatmul.f32.vlgmr.msra.gmra.mxu1 %v9507_v3  ;;  %1166 = vmatmul.f32.vlgmr.msra.gmra.mxu2 %v9517_v6 }
  0xe3   : > { %1195 = vmatmul.f32.vlgmr.msra.gmra.mxu3 %v9503_v63  ;;  %1266 = vmatpush.msrb.mxu2 %v499_v60  ;;  %v9649_v60 = vld [vmem:[%s8586_s25 + $0x30] sm:$0xff] }
  0xe4   : > { %1208 = vmatpush.msrb.mxu0 %v626_v61  ;;  %v9533_v9 = vpop.f32.mrf.mxu2  ;;  %1237 = vmatpush.msrb.mxu1 %v371_v4  ;;  %v307_v61 = vld [vmem:[%s12229_s1 + $0x1f8] sm:$0xff] }
  0xe5   : > { %12238 = vst [vmem:[#allocation10_spill] sm:$0xff] %v9533_v9  ;;  %1295 = vmatpush.msrb.mxu3 %v627_v5  ;;  %1267 = vmatpush.msrb.mxu2 %v491_v20  ;;  %v9553_v22 = vpop.f32.mrf.mxu3  ;;  %v427_v4 = vld [vmem:[%s12229_s1 + $0x5b8] sm:$0xff]  ;;  %v554_v20 = vld [vmem:[%s12229_s1 + $0x9b0] sm:$0xff] }
  0xe6   : > { %1209 = vmatpush.msrb.mxu0 %v618_v7  ;;  %1238 = vmatpush.msrb.mxu1 %v363_v21  ;;  %12239 = vst [vmem:[#allocation11_spill] sm:$0xff] %v9553_v22  ;;  %v563_v5 = vld [vmem:[%s12229_s1 + $0x9f8] sm:$0xff]  ;;  %v7731_v22 = vld [vmem:[%s12230_s2 + $0x2a0] sm:$0xff] }
  0xe7   : > { %1296 = vmatpush.msrb.mxu3 %v619_v19  ;;  %v9555_v23 = vpop.f32.mrf.mxu0  ;;  %1268 = vmatpush.msrb.mxu2 %v483_v10  ;;  %v9560_v25 = vpop.f32.mrf.mxu1  ;;  %v299_v7 = vld [vmem:[%s12229_s1 + $0x1b8] sm:$0xff] }
  0xe8   : > { %1210 = vmatpush.msrb.mxu0 %v610_v11  ;;  %1239 = vmatpush.msrb.mxu1 %v355_v12  ;;  %v419_v21 = vld [vmem:[%s12229_s1 + $0x578] sm:$0xff]  ;;  %v546_v11 = vld [vmem:[%s12229_s1 + $0x970] sm:$0xff] }
  0xe9   : > { %1297 = vmatpush.msrb.mxu3 %v611_v13  ;;  %1269 = vmatpush.msrb.mxu2 %v475_v16  ;;  %v555_v10 = vld [vmem:[%s12229_s1 + $0x9b8] sm:$0xff] }
  0xea   : > { %1211 = vmatpush.msrb.mxu0 %v602_v17  ;;  %1240 = vmatpush.msrb.mxu1 %v347_v24  ;;  %v291_v12 = vld [vmem:[%s12229_s1 + $0x178] sm:$0xff]  ;;  %v538_v17 = vld [vmem:[%s12229_s1 + $0x930] sm:$0xff] }
  0xeb   : > { %1111 = vmatmul.f32.gmra.mxu0 %v9566_v39  ;;  %1140 = vmatmul.f32.gmra.mxu1 %v9576_v38  ;;  %v411_v13 = vld [vmem:[%s12229_s1 + $0x538] sm:$0xff] }
  0xec   : > { %1169 = vmatmul.f32.gmra.mxu2 %v9580_v29  ;;  %1198 = vmatmul.f32.gmra.mxu3 %v9566_v39  ;;  %v547_v16 = vld [vmem:[%s12229_s1 + $0x978] sm:$0xff] }
  0xed   : > { %1270 = vmatpush.msrb.mxu2 %v467_v26  ;;  %1298 = vmatpush.msrb.mxu3 %v603_v27  ;;  %v283_v27 = vld [vmem:[%s12229_s1 + $0x138] sm:$0xff] }
  0xee   : > { %1212 = vmatpush.msrb.mxu0 %v594_v40  ;;  %v9602_v42 = vpop.f32.mrf.mxu2  ;;  %1241 = vmatpush.msrb.mxu1 %v339_v30  ;;  %v9622_v59 = vpop.f32.mrf.mxu3  ;;  %v403_v30 = vld [vmem:[%s12229_s1 + $0x4f8] sm:$0xff] }
  0xef   : > { %1271 = vmatpush.msrb.mxu2 %v459_v31  ;;  %1299 = vmatpush.msrb.mxu3 %v595_v32  ;;  %v9704_v31 = vld [vmem:[%s8586_s25 + $0x50] sm:$0xff]  ;;  %v539_v32 = vld [vmem:[%s12229_s1 + $0x938] sm:$0xff] }
  0xf0   : > { %1213 = vmatpush.msrb.mxu0 %v586_v33  ;;  %1242 = vmatpush.msrb.mxu1 %v331_v36  ;;  %v9624_v57 = vpop.f32.mrf.mxu0  ;;  %v530_v33 = vld [vmem:[%s12229_s1 + $0x8f0] sm:$0xff]  ;;  %v9714_v36 = vld [vmem:[%s8586_s25 + $0x58] sm:$0xff] }
  0xf1   : > { %1272 = vmatpush.msrb.mxu2 %v451_v37  ;;  %1300 = vmatpush.msrb.mxu3 %v587_v43  ;;  %v9629_v1 = vpop.f32.mrf.mxu1  ;;  %v9718_v37 = vld [vmem:[%s8586_s25 + $0x48] sm:$0xff]  ;;  %v275_v43 = vld [vmem:[%s12229_s1 + $0xf8] sm:$0xff]  ;;  %s8238_s25 = scalar_lea.hbm %s8237_s14, 1 }
  0xf2   : > { %1214 = vmatpush.msrb.mxu0 %v578_v44  ;;  %1243 = vmatpush.msrb.mxu1 %v323_v45  ;;  %v395_v44 = vld [vmem:[%s12229_s1 + $0x4b8] sm:$0xff]  ;;  %p8239_p11 = scmp.ne.s32.totalorder %s8237_s14, %s8238_s25  ;;  %p8244_p1 = scmp.lt.s32.totalorder %s8242_s23, %s8238_s25 }
  0xf3   : > { %1273 = vmatpush.msrb.mxu2 %v443_v46  ;;  %1301 = vmatpush.msrb.mxu3 %v579_v58  ;;  %v531_v45 = vld [vmem:[%s12229_s1 + $0x8f8] sm:$0xff]  ;;  %v522_v46 = vld [vmem:[%s12229_s1 + $0x8b0] sm:$0xff] }
  0xf4   : > { %1215 = vmatpush.msrb.mxu0 %v570_v47  ;;  %1244 = vmatpush.msrb.mxu1 %v315_v49  ;;  %v267_v58 = vld [vmem:[%s12229_s1 + $0xb8] sm:$0xff]  ;;  %p8240_p12 = pnand %p8239_p11, %p8386_p5  ;;  %p8245_p2 = por %p8244_p1, %p8243_p0 }
  0xf5   : > { %1114 = vmatmul.f32.gmra.mxu0 %v9635_v2  ;;  %1143 = vmatmul.f32.gmra.mxu1 %v9645_v54  ;;  %v387_v47 = vld [vmem:[%s12229_s1 + $0x478] sm:$0xff] }
  0xf6   : > { %1172 = vmatmul.f32.gmra.mxu2 %v9649_v60  ;;  %1201 = vmatmul.f32.gmra.mxu3 %v9635_v2  ;;  %v7774_v9 = vld [vmem:[%s12230_s2 + $0x3f8] sm:$0x3]  ;;  %p8241_p13 = pneg %p8240_p12 }
  0xf7   : > { %1274 = vmatpush.msrb.mxu2 %v435_v50  ;;  %1302 = vmatpush.msrb.mxu3 %v571_v0  ;;  %v9671_v19 = vpop.f32.mrf.mxu2  ;;  %v523_v50 = vld [vmem:[%s12229_s1 + $0x8b8] sm:$0xff]  ;;  %v514_v0 = vld [vmem:[%s12229_s1 + $0x870] sm:$0xff] }
  0xf8   : > { %1216 = vmatpush.msrb.mxu0 %v562_v53  ;;  %1245 = vmatpush.msrb.mxu1 %v307_v61  ;;  %v9691_v24 = vpop.f32.mrf.mxu3  ;;  %v259_v53 = vld [vmem:[%s12229_s1 + $0x78] sm:$0xff]  ;;  %p8246_p3 = pnand %p8245_p2, %p8241_p13 }
  0xf9   : > { %1275 = vmatpush.msrb.mxu2 %v427_v4  ;;  %1303 = vmatpush.msrb.mxu3 %v563_v5  ;;  %v379_v61 = vld [vmem:[%s12229_s1 + $0x438] sm:$0xff]  ;;  %v506_v5 = vld [vmem:[%s12229_s1 + $0x830] sm:$0xff] }
  0xfa   : > { %1217 = vmatpush.msrb.mxu0 %v554_v20  ;;  %1246 = vmatpush.msrb.mxu1 %v299_v7  ;;  %v9693_v26 = vpop.f32.mrf.mxu0  ;;  %v515_v4 = vld [vmem:[%s12229_s1 + $0x878] sm:$0xff] }
  0xfb   : > { %1276 = vmatpush.msrb.mxu2 %v419_v21  ;;  %1304 = vmatpush.msrb.mxu3 %v555_v10  ;;  %v9698_v40 = vpop.f32.mrf.mxu1  ;;  %v251_v21 = vld [vmem:[%s12229_s1 + $0x38] sm:$0xff] }
  0xfc   : > { %1218 = vmatpush.msrb.mxu0 %v546_v11  ;;  %1247 = vmatpush.msrb.mxu1 %v291_v12  ;;  %v507_v11 = vld [vmem:[%s12229_s1 + $0x838] sm:$0xff]  ;;  %v7671_v12 = vld [vmem:[%s12230_s2 + $0xc0] sm:$0x3] }
  0xfd   : > { %1277 = vmatpush.msrb.mxu2 %v411_v13  ;;  %1305 = vmatpush.msrb.mxu3 %v547_v16  ;;  %v7672_v13 = vld [vmem:[%s12230_s2 + $0xc8] sm:$0x3]  ;;  %v7673_v16 = vld [vmem:[%s12230_s2 + $0xd0] sm:$0x3] }
  0xfe   : > { %1219 = vmatpush.msrb.mxu0 %v538_v17  ;;  %1248 = vmatpush.msrb.mxu1 %v283_v27  ;;  %v7674_v17 = vld [vmem:[%s12230_s2 + $0xd8] sm:$0x3] }
  0xff   : > { %1117 = vmatmul.f32.gmra.mxu0 %v9704_v31  ;;  %1146 = vmatmul.f32.gmra.mxu1 %v9714_v36 }
 0x100   : > { %1175 = vmatmul.f32.gmra.mxu2 %v9718_v37  ;;  %1204 = vmatmul.f32.gmra.mxu3 %v9704_v31 }
 0x101   : > { %1278 = vmatpush.msrb.mxu2 %v403_v30  ;;  %1306 = vmatpush.msrb.mxu3 %v539_v32  ;;  %v9740_v49 = vpop.f32.mrf.mxu2  ;;  %v7665_v30 = vld [vmem:[%s12230_s2 + $0x90] sm:$0xff] }
 0x102   : > { %1220 = vmatpush.msrb.mxu0 %v530_v33  ;;  %1249 = vmatpush.msrb.mxu1 %v275_v43  ;;  %v9760_v20 = vpop.f32.mrf.mxu3  ;;  %v7666_v33 = vld [vmem:[%s12230_s2 + $0x98] sm:$0xff] }
 0x103   : > { %1279 = vmatpush.msrb.mxu2 %v395_v44  ;;  %1307 = vmatpush.msrb.mxu3 %v531_v45 }
 0x104   : > { %1221 = vmatpush.msrb.mxu0 %v522_v46  ;;  %1250 = vmatpush.msrb.mxu1 %v267_v58  ;;  %v9762_v7 = vpop.f32.mrf.mxu0  ;;  %v675_v58 = vadd.f32 %v9314_v62, %v9306_v56  ;;  %v7675_v56 = vld [vmem:[%s12230_s2 + $0xe0] sm:$0x3] }
 0x105   : > { %1280 = vmatpush.msrb.mxu2 %v387_v47  ;;  %12240 = vst [vmem:[#allocation12_spill] sm:$0xff] %v9762_v7  ;;  %1308 = vmatpush.msrb.mxu3 %v523_v50  ;;  %v9767_v10 = vpop.f32.mrf.mxu1 }
 0x106   : > { %1222 = vmatpush.msrb.mxu0 %v514_v0  ;;  %1251 = vmatpush.msrb.mxu1 %v259_v53  ;;  %12241 = vst [vmem:[#allocation13_spill] sm:$0xff] %v9767_v10  ;;  %v704_v0 = vadd.f32 %v9344_v8, %v675_v58  ;;  %v7704_v10 = vld [vmem:[%s12230_s2 + $0x1c8] sm:$0x3] }
 0x107   : > { %1281 = vmatpush.msrb.mxu2 %v379_v61  ;;  %1309 = vmatpush.msrb.mxu3 %v515_v4 }
 0x108   : > { %1223 = vmatpush.msrb.mxu0 %v506_v5  ;;  %1252 = vmatpush.msrb.mxu1 %v251_v21 }
 0x109   : > { %1224 = vmatmul.f32.vlgmr.msrb.gmra.mxu0 %v9507_v3  ;;  %1253 = vmatmul.f32.vlgmr.msrb.gmra.mxu1 %v9517_v6  ;;  %v7663_v6 = vld [vmem:[%s12230_s2 + $0x80] sm:$0xff] }
 0x10a   : > { %1282 = vmatmul.f32.vlgmr.msrb.gmra.mxu2 %v9503_v63  ;;  %1310 = vmatpush.msrb.mxu3 %v507_v11  ;;  %v7664_v63 = vld [vmem:[%s12230_s2 + $0x88] sm:$0xff] }
 0x10b   : > { %1427 = vmatpush.xpose.msra.mxu0 %v7671_v12  ;;  %1311 = vmatmul.f32.vlgmr.msrb.gmra.mxu3 %v9507_v3  ;;  %v9788_v27 = vpop.f32.mrf.mxu2  ;;  %v1356_v12 = vld [vmem:[%s12230_s2] sm:$0xff] }
 0x10c   : > { %1447 = vmatpush.xpose.msra.mxu1 %v7672_v13  ;;  %12242 = vst [vmem:[#allocation14_spill] sm:$0xff] %v9788_v27  ;;  %1467 = vmatpush.xpose.msra.mxu2 %v7673_v16  ;;  %v9799_v32 = vpop.f32.mrf.mxu3 }
 0x10d   : > { %1487 = vmatpush.xpose.msra.mxu3 %v7674_v17  ;;  %12243 = vst [vmem:[#allocation15_spill] sm:$0xff] %v9799_v32  ;;  %v7715_v32 = vld [vmem:[%s12230_s2 + $0x220] sm:$0xff] }
 0x10e   : > { %v877_v3 = vpop.f32.mrf.mxu0 }
 0x10f   : > { %1428 = vmatpush.xpose.msra.mxu0 %v7663_v6  ;;  %v906_v43 = vpop.f32.mrf.mxu1 }
 0x110   : > { %1448 = vmatpush.xpose.msra.mxu1 %v7664_v63  ;;  %1468 = vmatpush.xpose.msra.mxu2 %v7665_v30 }
 0x111   : > { %1227 = vmatmul.f32.gmra.mxu0 %v9576_v38  ;;  %1256 = vmatmul.f32.gmra.mxu1 %v9580_v29 }
 0x112   : > { %1285 = vmatmul.f32.gmra.mxu2 %v9566_v39  ;;  %1488 = vmatpush.xpose.msra.mxu3 %v7666_v33  ;;  %v762_v39 = vadd.f32 %v9555_v23, %v9364_v14  ;;  %v9834_v14 = vmax.f32 %v704_v0, 0.0  ;;  %v7668_v0 = vld [vmem:[%s12230_s2 + $0xa8] sm:$0xff] }
 0x113   : > { %1314 = vmatmul.f32.gmra.mxu3 %v9576_v38  ;;  %v849_v38 = vadd.f32 %v9622_v59, %v9602_v42  ;;  %1507 = vmatpush.xpose.msrb.mxu0 %v7675_v56  ;;  %v7667_v59 = vld [vmem:[%s12230_s2 + $0xa0] sm:$0xff] }
 0x115   : > { %v935_v44 = vpop.f32.mrf.mxu2  ;;  %v878_v50 = vadd.f32 %v877_v3, %v849_v38  ;;  %v1368_v38 = vld [vmem:[%s12230_s2 + $0x60] sm:$0x3] }
 0x116   : > { %v964_v45 = vpop.f32.mrf.mxu3  ;;  %v936_v29 = vadd.f32 %v935_v44, %v906_v43 }
 0x117   : > { %v9832_v62 = vmax.f32 %v878_v50, 0.0  ;;  %1508 = vmatpush.xpose.msrb.mxu0 %v7667_v59  ;;  %v1360_v50 = vld [vmem:[%s12230_s2 + $0x20] sm:$0xff] }
 0x118   : > { %v9809_v46 = vpop.f32.mrf.mxu0  ;;  %v7687_v59 = vld [vmem:[%s12230_s2 + $0x140] sm:$0x3] }
 0x119   : > { %1230 = vmatmul.f32.gmra.mxu0 %v9645_v54  ;;  %1259 = vmatmul.f32.gmra.mxu1 %v9649_v60  ;;  %v9815_v47 = vpop.f32.mrf.mxu1  ;;  %v791_v60 = vadd.f32 %v9560_v25, %v762_v39 }
 0x11a   : > { %1288 = vmatmul.f32.gmra.mxu2 %v9635_v2  ;;  %v965_v2 = vadd.f32 %v964_v45, %v936_v29  ;;  %v7676_v29 = vld [vmem:[%s12230_s2 + $0xe8] sm:$0x3] }
 0x11b   : > { %1317 = vmatmul.f32.gmra.mxu3 %v9645_v54  ;;  %v9840_v25 = vmax.f32 %v791_v60, 0.0  ;;  %1527 = vmatpush.xpose.msrb.mxu1 %v7676_v29 }
 0x11c   : > { %v9842_v42 = vmax.f32 %v965_v2, 0.0 }
 0x11d   : > { %v1398_v61 = vrot.slane %v9840_v25, 1 }
 0x11e   : > { %v1400_v4 = vrot.slane %v9842_v42, 1 }
 0x11f   : > { %v9824_v53 = vpop.f32.mrf.mxu2  ;;  %1528 = vmatpush.xpose.msrb.mxu1 %v7668_v0  ;;  %v7695_v0 = vld [vmem:[%s12230_s2 + $0x180] sm:$0xff] }
 0x120   : > { %v9836_v8 = vpop.f32.mrf.mxu3 }
 0x121   : > { %1233 = vmatmul.f32.gmra.mxu0 %v9714_v36  ;;  %1262 = vmatmul.f32.gmra.mxu1 %v9718_v37  ;;  %v1397_v37 = vrot.slane %v9834_v14, 1 }
 0x122   : > { %1291 = vmatmul.f32.gmra.mxu2 %v9704_v31  ;;  %v9838_v23 = vpop.f32.mrf.mxu0  ;;  %v1399_v31 = vrot.slane %v9832_v62, 1 }
 0x123   : > { %1320 = vmatmul.f32.gmra.mxu3 %v9714_v36  ;;  %v9848_v54 = vpop.f32.mrf.mxu1  ;;  %v1364_v36 = vld [vmem:[%s12230_s2 + $0x40] sm:$0x3] }
 0x129   : > { %1429 = vmatmul.f32.vlgmr.msra.gmra.mxu0 %v1397_v37  ;;  %1449 = vmatmul.f32.vlgmr.msra.gmra.mxu1 %v1398_v61  ;;  %v9854_v5 = vpop.f32.mrf.mxu2  ;;  %v1365_v37 = vld [vmem:[%s12230_s2 + $0x48] sm:$0x3]  ;;  %v7679_v61 = vld [vmem:[%s12230_s2 + $0x100] sm:$0xff] }
 0x12a   : > { %1469 = vmatmul.f32.vlgmr.msra.gmra.mxu2 %v1399_v31  ;;  %1587 = vmatpush.xpose.msra.mxu0 %v1364_v36  ;;  %v9859_v21 = vpop.f32.mrf.mxu3 }
 0x12b   : > { %1489 = vmatmul.f32.vlgmr.msra.gmra.mxu3 %v1400_v4  ;;  %1607 = vmatpush.xpose.msra.mxu1 %v1365_v37  ;;  %v1357_v4 = vld [vmem:[%s12230_s2 + $0x8] sm:$0xff] }
 0x12c   : > { %v9861_v11 = vpop.f32.mrf.mxu0 }
 0x12d   : > { %12244 = vst [vmem:[#allocation16_spill] sm:$0xff] %v9861_v11  ;;  %v9866_v13 = vpop.f32.mrf.mxu1  ;;  %v1367_v11 = vld [vmem:[%s12230_s2 + $0x58] sm:$0x3] }
 0x12e   : > { %12245 = vst [vmem:[#allocation17_spill] sm:$0xff] %v9866_v13  ;;  %1588 = vmatpush.xpose.msra.mxu0 %v1356_v12  ;;  %v7691_v12 = vld [vmem:[%s12230_s2 + $0x160] sm:$0x3]  ;;  %v1358_v13 = vld [vmem:[%s12230_s2 + $0x10] sm:$0xff] }
 0x12f   : > { %1608 = vmatpush.xpose.msra.mxu1 %v1357_v4 }
 0x133   : > { %v9868_v16 = vpop.f32.mrf.mxu2 }
 0x134   : > { %12246 = vst [vmem:[#allocation18_spill] sm:$0xff] %v9868_v16  ;;  %v9870_v17 = vpop.f32.mrf.mxu3 }
 0x135   : > { %12247 = vst [vmem:[#allocation19_spill] sm:$0xff] %v9870_v17 }
 0x136   : > { %v993_v6 = vpop.f32.mrf.mxu0 }
 0x137   : > { %v1022_v63 = vpop.f32.mrf.mxu1 }
 0x138   : > { %v1023_v30 = vadd.f32 %v1022_v63, %v993_v6 }
 0x13d   : > { %v1051_v3 = vpop.f32.mrf.mxu2 }
 0x13e   : > { %v1052_v33 = vadd.f32 %v1051_v3, %v1023_v30  ;;  %v1080_v44 = vpop.f32.mrf.mxu3  ;;  %v7683_v3 = vld [vmem:[%s12230_s2 + $0x120] sm:$0xff] }
 0x140   : > { %v9872_v43 = vmax.f32 %v1052_v33, 0.0  ;;  %v9874_v45 = vpop.f32.mrf.mxu0  ;;  %v1750_v33 = vrot.slane %v9834_v14, 2 }
 0x141   : > { %v9876_v58 = vpop.f32.mrf.mxu1 }
 0x142   : > { %v1401_v39 = vrot.slane %v9872_v43, 1  ;;  %v1754_v4 = vrot.slane %v9872_v43, 2 }
 0x144   : > { %1509 = vmatmul.f32.vlgmr.msrb.gmra.mxu0 %v1401_v39  ;;  %v7703_v39 = vld [vmem:[%s12230_s2 + $0x1c0] sm:$0x3] }
 0x145   : > { %1667 = vmatpush.xpose.msrb.mxu0 %v1368_v38 }
 0x147   : > { %v9891_v60 = vpop.f32.mrf.mxu2 }
 0x148   : > { %v9893_v2 = vpop.f32.mrf.mxu3 }
 0x149   : > { %1668 = vmatpush.xpose.msrb.mxu0 %v1360_v50 }
 0x14a   : > { %v9895_v56 = vpop.f32.mrf.mxu0 }
 0x14b   : > { %v9900_v31 = vpop.f32.mrf.mxu1 }
 0x14c   : > { %1589 = vmatmul.f32.vlgmr.msra.gmra.mxu0 %v9834_v14 }
 0x14d   : > { %1780 = vmatpush.xpose.msra.mxu0 %v7687_v59 }
 0x151   : > { %v9912_v36 = vpop.f32.mrf.mxu2  ;;  %1781 = vmatpush.xpose.msra.mxu0 %v7679_v61 }
 0x152   : > { %v9917_v6 = vpop.f32.mrf.mxu3 }
 0x154   : > { %v9919_v63 = vpop.f32.mrf.mxu0  ;;  %1669 = vmatmul.f32.vlgmr.msrb.gmra.mxu0 %v9872_v43 }
 0x155   : > { %12248 = vst [vmem:[#allocation20_spill] sm:$0xff] %v9919_v63  ;;  %1860 = vmatpush.xpose.msrb.mxu0 %v7691_v12  ;;  %v9922_v30 = vpop.f32.mrf.mxu1  ;;  %v7707_v12 = vld [vmem:[%s12230_s2 + $0x1e0] sm:$0x3]  ;;  %v7816_v63 = vld [vmem:[%s12230_s2 + $0x548] sm:$0x3] }
 0x156   : > { %12249 = vst [vmem:[#allocation21_spill] sm:$0xff] %v9922_v30 }
 0x159   : > { %1861 = vmatpush.xpose.msrb.mxu0 %v7683_v3 }
 0x15b   : > { %v9931_v38 = vpop.f32.mrf.mxu2 }
 0x15c   : > { %12250 = vst [vmem:[#allocation22_spill] sm:$0xff] %v9931_v38  ;;  %1782 = vmatmul.f32.vlgmr.msra.gmra.mxu0 %v1750_v33  ;;  %v9933_v29 = vpop.f32.mrf.mxu3 }
 0x15d   : > { %1974 = vmatpush.xpose.msra.mxu0 %v7703_v39  ;;  %12251 = vst [vmem:[#allocation23_spill] sm:$0xff] %v9933_v29 }
 0x15e   : > { %v1109_v50 = vpop.f32.mrf.mxu0 }
 0x15f   : > { %v1110_v59 = vadd.f32 %v1109_v50, %v1080_v44  ;;  %v1138_v37 = vpop.f32.mrf.mxu1  ;;  %v1369_v44 = vld [vmem:[%s12230_s2 + $0x68] sm:$0x3]  ;;  %v7677_v50 = vld [vmem:[%s12230_s2 + $0xf0] sm:$0x3] }
 0x160   : > { %1547 = vmatpush.xpose.msrb.mxu2 %v7677_v50  ;;  %v7719_v50 = vld [vmem:[%s12230_s2 + $0x240] sm:$0x3] }
 0x161   : > { %v1139_v61 = vadd.f32 %v1138_v37, %v1110_v59  ;;  %1975 = vmatpush.xpose.msra.mxu0 %v7695_v0  ;;  %v7699_v0 = vld [vmem:[%s12230_s2 + $0x1a0] sm:$0xff] }
 0x163   : > { %v9942_v3 = vmax.f32 %v1139_v61, 0.0  ;;  %v7669_v61 = vld [vmem:[%s12230_s2 + $0xb0] sm:$0xff] }
 0x164   : > { %1862 = vmatmul.f32.vlgmr.msrb.gmra.mxu0 %v1754_v4  ;;  %v1361_v4 = vld [vmem:[%s12230_s2 + $0x28] sm:$0xff]  ;;  %1548 = vmatpush.xpose.msrb.mxu2 %v7669_v61  ;;  %v7711_v61 = vld [vmem:[%s12230_s2 + $0x200] sm:$0xff] }
 0x165   : > { %v9944_v33 = vpop.f32.mrf.mxu2  ;;  %v1402_v39 = vrot.slane %v9942_v3, 1  ;;  %2054 = vmatpush.xpose.msrb.mxu0 %v7707_v12  ;;  %v1944_v12 = vrot.slane %v9834_v14, 3 }
 0x166   : > { %v9958_v37 = vpop.f32.mrf.mxu3 }
 0x167   : > { %1529 = vmatmul.f32.vlgmr.msrb.gmra.mxu1 %v1402_v39  ;;  %v7688_v39 = vld [vmem:[%s12230_s2 + $0x148] sm:$0x3]  ;;  %v1197_v7 = vadd.f32 %v9958_v37, %v9944_v33  ;;  %v1370_v33 = vld [vmem:[%s12230_s2 + $0x70] sm:$0x3]  ;;  %v2332_v37 = vrot.slane %v9834_v14, 5 }
 0x168   : > { %v9956_v59 = vpop.f32.mrf.mxu0  ;;  %1687 = vmatpush.xpose.msrb.mxu1 %v1369_v44  ;;  %v7678_v44 = vld [vmem:[%s12230_s2 + $0xf8] sm:$0x3]  ;;  %v9979_v17 = vpop.f32.mrf.mxu1 }
 0x169   : > { %2055 = vmatpush.xpose.msrb.mxu0 %v7699_v0  ;;  %v1366_v0 = vld [vmem:[%s12230_s2 + $0x50] sm:$0x3]  ;;  %1567 = vmatpush.xpose.msrb.mxu3 %v7678_v44 }
 0x16a   : > { %1627 = vmatpush.xpose.msra.mxu2 %v1366_v0  ;;  %v1948_v0 = vrot.slane %v9872_v43, 3 }
 0x16c   : > { %1976 = vmatmul.f32.vlgmr.msra.gmra.mxu0 %v1944_v12  ;;  %1688 = vmatpush.xpose.msrb.mxu1 %v1361_v4  ;;  %v7680_v12 = vld [vmem:[%s12230_s2 + $0x108] sm:$0xff] }
 0x16d   : > { %2168 = vmatpush.xpose.msra.mxu0 %v7719_v50  ;;  %v7670_v50 = vld [vmem:[%s12230_s2 + $0xb8] sm:$0xff] }
 0x16e   : > { %1568 = vmatpush.xpose.msrb.mxu3 %v7670_v50  ;;  %1628 = vmatpush.xpose.msra.mxu2 %v1358_v13 }
 0x16f   : > { %v9981_v16 = vpop.f32.mrf.mxu2  ;;  %1609 = vmatmul.f32.vlgmr.msra.gmra.mxu1 %v9840_v25  ;;  %v9998_v44 = vpop.f32.mrf.mxu3 }
 0x170   : > { %1800 = vmatpush.xpose.msra.mxu1 %v7688_v39  ;;  %v7723_v39 = vld [vmem:[%s12230_s2 + $0x260] sm:$0x3] }
 0x171   : > { %2169 = vmatpush.xpose.msra.mxu0 %v7711_v61  ;;  %v7692_v61 = vld [vmem:[%s12230_s2 + $0x168] sm:$0x3] }
 0x172   : > { %v9987_v4 = vpop.f32.mrf.mxu0  ;;  %1647 = vmatpush.xpose.msra.mxu3 %v1367_v11  ;;  %v10014_v50 = vpop.f32.mrf.mxu1  ;;  %v7735_v11 = vld [vmem:[%s12230_s2 + $0x2c0] sm:$0x3] }
 0x174   : > { %2056 = vmatmul.f32.vlgmr.msrb.gmra.mxu0 %v1948_v0  ;;  %1801 = vmatpush.xpose.msra.mxu1 %v7680_v12  ;;  %v1359_v12 = vld [vmem:[%s12230_s2 + $0x18] sm:$0xff]  ;;  %v7684_v0 = vld [vmem:[%s12230_s2 + $0x128] sm:$0xff] }
 0x175   : > { %2248 = vmatpush.xpose.msrb.mxu0 %v7723_v39  ;;  %v2138_v39 = vrot.slane %v9834_v14, 4 }
 0x176   : > { %1648 = vmatpush.xpose.msra.mxu3 %v1359_v12  ;;  %v7696_v12 = vld [vmem:[%s12230_s2 + $0x188] sm:$0xff] }
 0x177   : > { %1689 = vmatmul.f32.vlgmr.msrb.gmra.mxu1 %v9942_v3 }
 0x178   : > { %1880 = vmatpush.xpose.msrb.mxu1 %v7692_v61  ;;  %v1751_v61 = vrot.slane %v9840_v25, 2 }
 0x179   : > { %v10016_v13 = vpop.f32.mrf.mxu2  ;;  %2249 = vmatpush.xpose.msrb.mxu0 %v7715_v32  ;;  %v10030_v29 = vpop.f32.mrf.mxu3  ;;  %v7727_v32 = vld [vmem:[%s12230_s2 + $0x280] sm:$0xff] }
 0x17c   : > { %v10028_v27 = vpop.f32.mrf.mxu0  ;;  %2170 = vmatmul.f32.vlgmr.msra.gmra.mxu0 %v2138_v39  ;;  %1881 = vmatpush.xpose.msrb.mxu1 %v7684_v0  ;;  %v10042_v39 = vpop.f32.mrf.mxu1 }
 0x17d   : > { %12252 = vst [vmem:[#allocation24_spill] sm:$0xff] %v10028_v27  ;;  %2362 = vmatpush.xpose.msra.mxu0 %v7735_v11  ;;  %v2142_v27 = vrot.slane %v9872_v43, 4  ;;  %v7739_v11 = vld [vmem:[%s12230_s2 + $0x2e0] sm:$0x3] }
 0x17e   : > { %12253 = vst [vmem:[#allocation25_spill] sm:$0xff] %v10042_v39 }
 0x17f   : > { %1802 = vmatmul.f32.vlgmr.msra.gmra.mxu1 %v1751_v61  ;;  %v1755_v61 = vrot.slane %v9942_v3, 2 }
 0x180   : > { %1994 = vmatpush.xpose.msra.mxu1 %v7704_v10 }
 0x181   : > { %2363 = vmatpush.xpose.msra.mxu0 %v7727_v32  ;;  %v7708_v32 = vld [vmem:[%s12230_s2 + $0x1e8] sm:$0x3] }
 0x183   : > { %v10044_v0 = vpop.f32.mrf.mxu2 }
 0x184   : > { %12254 = vst [vmem:[#allocation26_spill] sm:$0xff] %v10044_v0  ;;  %2250 = vmatmul.f32.vlgmr.msrb.gmra.mxu0 %v2142_v27  ;;  %1995 = vmatpush.xpose.msra.mxu1 %v7696_v12  ;;  %v10056_v0 = vpop.f32.mrf.mxu3  ;;  %v7751_v12 = vld [vmem:[%s12230_s2 + $0x340] sm:$0x3] }
 0x185   : > { %2442 = vmatpush.xpose.msrb.mxu0 %v7739_v11  ;;  %12255 = vst [vmem:[#allocation27_spill] sm:$0xff] %v10056_v0  ;;  %v1362_v0 = vld [vmem:[%s12230_s2 + $0x30] sm:$0xff] }
 0x186   : > { %v1225_v10 = vpop.f32.mrf.mxu0 }
 0x187   : > { %v1226_v39 = vadd.f32 %v1225_v10, %v1197_v7  ;;  %1882 = vmatmul.f32.vlgmr.msrb.gmra.mxu1 %v1755_v61  ;;  %v7700_v7 = vld [vmem:[%s12230_s2 + $0x1a8] sm:$0xff]  ;;  %v1945_v10 = vrot.slane %v9840_v25, 3 }
 0x188   : > { %2074 = vmatpush.xpose.msrb.mxu1 %v7708_v32  ;;  %v7720_v61 = vld [vmem:[%s12230_s2 + $0x248] sm:$0x3] }
 0x189   : > { %v10061_v38 = vmax.f32 %v1226_v39, 0.0  ;;  %2443 = vmatpush.xpose.msrb.mxu0 %v7731_v22  ;;  %v1254_v39 = vpop.f32.mrf.mxu1 }
 0x18b   : > { %v1403_v27 = vrot.slane %v10061_v38, 1 }
 0x18c   : > { %2364 = vmatmul.f32.vlgmr.msra.gmra.mxu0 %v2332_v37  ;;  %2075 = vmatpush.xpose.msrb.mxu1 %v7700_v7  ;;  %v7689_v37 = vld [vmem:[%s12230_s2 + $0x150] sm:$0x3]  ;;  %v2336_v7 = vrot.slane %v9872_v43, 5 }
 0x18d   : > { %v1283_v11 = vpop.f32.mrf.mxu2  ;;  %1549 = vmatmul.f32.vlgmr.msrb.gmra.mxu2 %v1403_v27  ;;  %2556 = vmatpush.xpose.msra.mxu0 %v7751_v12  ;;  %v7743_v27 = vld [vmem:[%s12230_s2 + $0x300] sm:$0xff]  ;;  %v1371_v12 = vld [vmem:[%s12230_s2 + $0x78] sm:$0x3] }
 0x18e   : > { %v1284_v22 = vadd.f32 %v1283_v11, %v1254_v39  ;;  %1707 = vmatpush.xpose.msrb.mxu2 %v1370_v33  ;;  %v1312_v32 = vpop.f32.mrf.mxu3  ;;  %v7712_v11 = vld [vmem:[%s12230_s2 + $0x208] sm:$0xff] }
 0x18f   : > { %1996 = vmatmul.f32.vlgmr.msra.gmra.mxu1 %v1945_v10  ;;  %v7681_v10 = vld [vmem:[%s12230_s2 + $0x110] sm:$0xff] }
 0x190   : > { %v1313_v30 = vadd.f32 %v1312_v32, %v1284_v22  ;;  %2188 = vmatpush.xpose.msra.mxu1 %v7720_v61  ;;  %v7724_v22 = vld [vmem:[%s12230_s2 + $0x268] sm:$0x3]  ;;  %v1363_v61 = vld [vmem:[%s12230_s2 + $0x38] sm:$0xff]  ;;  %v7747_v32 = vld [vmem:[%s12230_s2 + $0x320] sm:$0xff] }
 0x191   : > { %2557 = vmatpush.xpose.msra.mxu0 %v7743_v27  ;;  %v7693_v27 = vld [vmem:[%s12230_s2 + $0x170] sm:$0x3] }
 0x192   : > { %v10084_v33 = vmax.f32 %v1313_v30, 0.0  ;;  %1708 = vmatpush.xpose.msrb.mxu2 %v1362_v0  ;;  %v7755_v30 = vld [vmem:[%s12230_s2 + $0x360] sm:$0x3]  ;;  %v1949_v0 = vrot.slane %v9942_v3, 3 }
 0x194   : > { %v1404_v39 = vrot.slane %v10084_v33, 1  ;;  %2444 = vmatmul.f32.vlgmr.msrb.gmra.mxu0 %v2336_v7  ;;  %2189 = vmatpush.xpose.msra.mxu1 %v7712_v11  ;;  %v10118_v7 = vpop.f32.mrf.mxu0  ;;  %v7767_v11 = vld [vmem:[%s12230_s2 + $0x3c0] sm:$0x3] }
 0x195   : > { %1629 = vmatmul.f32.vlgmr.msra.gmra.mxu2 %v9832_v62  ;;  %2636 = vmatpush.xpose.msrb.mxu0 %v7755_v30  ;;  %v2139_v30 = vrot.slane %v9840_v25, 4 }
 0x196   : > { %1569 = vmatmul.f32.vlgmr.msrb.gmra.mxu3 %v1404_v39  ;;  %1820 = vmatpush.xpose.msra.mxu2 %v7689_v37  ;;  %v2526_v37 = vrot.slane %v9834_v14, 6  ;;  %v7690_v39 = vld [vmem:[%s12230_s2 + $0x158] sm:$0x3] }
 0x197   : > { %1727 = vmatpush.xpose.msrb.mxu3 %v1371_v12  ;;  %2076 = vmatmul.f32.vlgmr.msrb.gmra.mxu1 %v1949_v0  ;;  %v7716_v12 = vld [vmem:[%s12230_s2 + $0x228] sm:$0xff] }
 0x198   : > { %2268 = vmatpush.xpose.msrb.mxu1 %v7724_v22  ;;  %v7736_v0 = vld [vmem:[%s12230_s2 + $0x2c8] sm:$0x3]  ;;  %v7685_v22 = vld [vmem:[%s12230_s2 + $0x130] sm:$0xff] }
 0x199   : > { %2637 = vmatpush.xpose.msrb.mxu0 %v7747_v32  ;;  %v1752_v32 = vrot.slane %v9832_v62, 2 }
 0x19a   : > { %1821 = vmatpush.xpose.msra.mxu2 %v7681_v10  ;;  %v7682_v10 = vld [vmem:[%s12230_s2 + $0x118] sm:$0xff] }
 0x19b   : > { %1728 = vmatpush.xpose.msrb.mxu3 %v1363_v61  ;;  %v7759_v61 = vld [vmem:[%s12230_s2 + $0x380] sm:$0xff] }
 0x19c   : > { %2558 = vmatmul.f32.vlgmr.msra.gmra.mxu0 %v2526_v37  ;;  %2269 = vmatpush.xpose.msrb.mxu1 %v7716_v12  ;;  %v2530_v37 = vrot.slane %v9872_v43, 6  ;;  %v7728_v12 = vld [vmem:[%s12230_s2 + $0x288] sm:$0xff] }
 0x19d   : > { %1709 = vmatmul.f32.vlgmr.msrb.gmra.mxu2 %v10061_v38  ;;  %2750 = vmatpush.xpose.msra.mxu0 %v7767_v11  ;;  %v7771_v11 = vld [vmem:[%s12230_s2 + $0x3e0] sm:$0x3] }
 0x19e   : > { %1649 = vmatmul.f32.vlgmr.msra.gmra.mxu3 %v9842_v42  ;;  %1900 = vmatpush.xpose.msrb.mxu2 %v7693_v27  ;;  %v7705_v27 = vld [vmem:[%s12230_s2 + $0x1d0] sm:$0x3] }
 0x19f   : > { %1840 = vmatpush.xpose.msra.mxu3 %v7690_v39  ;;  %2190 = vmatmul.f32.vlgmr.msra.gmra.mxu1 %v2139_v30  ;;  %v7694_v39 = vld [vmem:[%s12230_s2 + $0x178] sm:$0x3]  ;;  %v10158_v30 = vpop.f32.mrf.mxu0 }
 0x1a0   : > { %2382 = vmatpush.xpose.msra.mxu1 %v7736_v0  ;;  %v2143_v0 = vrot.slane %v9942_v3, 4 }
 0x1a1   : > { %2751 = vmatpush.xpose.msra.mxu0 %v7759_v61  ;;  %v7686_v61 = vld [vmem:[%s12230_s2 + $0x138] sm:$0xff] }
 0x1a2   : > { %1901 = vmatpush.xpose.msrb.mxu2 %v7685_v22  ;;  %v7740_v22 = vld [vmem:[%s12230_s2 + $0x2e8] sm:$0x3] }
 0x1a3   : > { %1841 = vmatpush.xpose.msra.mxu3 %v7682_v10  ;;  %v7697_v10 = vld [vmem:[%s12230_s2 + $0x190] sm:$0xff] }
 0x1a4   : > { %2638 = vmatmul.f32.vlgmr.msrb.gmra.mxu0 %v2530_v37  ;;  %2383 = vmatpush.xpose.msra.mxu1 %v7728_v12  ;;  %v7709_v37 = vld [vmem:[%s12230_s2 + $0x1f0] sm:$0x3]  ;;  %v1753_v12 = vrot.slane %v9842_v42, 2 }
 0x1a5   : > { %1822 = vmatmul.f32.vlgmr.msra.gmra.mxu2 %v1752_v32  ;;  %2830 = vmatpush.xpose.msrb.mxu0 %v7771_v11  ;;  %v7763_v32 = vld [vmem:[%s12230_s2 + $0x3a0] sm:$0xff]  ;;  %v7706_v11 = vld [vmem:[%s12230_s2 + $0x1d8] sm:$0x3] }
 0x1a6   : > { %1729 = vmatmul.f32.vlgmr.msrb.gmra.mxu3 %v10084_v33  ;;  %2014 = vmatpush.xpose.msra.mxu2 %v7705_v27  ;;  %v1756_v27 = vrot.slane %v10061_v38, 2 }
 0x1a7   : > { %1920 = vmatpush.xpose.msrb.mxu3 %v7694_v39  ;;  %2270 = vmatmul.f32.vlgmr.msrb.gmra.mxu1 %v2143_v0  ;;  %v2720_v39 = vrot.slane %v9834_v14, 7  ;;  %v7732_v0 = vld [vmem:[%s12230_s2 + $0x2a8] sm:$0xff]  ;;  %v2333_v14 = vrot.slane %v9840_v25, 5 }
 0x1a8   : > { %2462 = vmatpush.xpose.msrb.mxu1 %v7740_v22  ;;  %v7783_v22 = vld [vmem:[%s12230_s2 + $0x440] sm:$0x3] }
 0x1a9   : > { %2831 = vmatpush.xpose.msrb.mxu0 %v7763_v32  ;;  %v10196_v32 = vpop.f32.mrf.mxu0 }
 0x1aa   : > { %2015 = vmatpush.xpose.msra.mxu2 %v7697_v10  ;;  %v7752_v10 = vld [vmem:[%s12230_s2 + $0x348] sm:$0x3]  ;;  %12256 = vst [vmem:[#allocation28_spill] sm:$0xff] %v10196_v32  ;;  %v7733_v32 = vld [vmem:[%s12230_s2 + $0x2b0] sm:$0xff] }
 0x1ab   : > { %1921 = vmatpush.xpose.msrb.mxu3 %v7686_v61  ;;  %v7701_v61 = vld [vmem:[%s12230_s2 + $0x1b0] sm:$0xff] }
 0x1ac   : > { %2752 = vmatmul.f32.vlgmr.msra.gmra.mxu0 %v2720_v39  ;;  %2463 = vmatpush.xpose.msrb.mxu1 %v7732_v0  ;;  %v678_v39 = vadd.f32 %v9374_v18, %v9366_v15  ;;  %v2724_v0 = vrot.slane %v9872_v43, 7  ;;  %v7787_v15 = vld [vmem:[%s12230_s2 + $0x460] sm:$0x3]  ;;  %v2337_v18 = vrot.slane %v9942_v3, 5  ;;  %v7756_v43 = vld [vmem:[%s12230_s2 + $0x368] sm:$0x3] }
 0x1ad   : > { %1902 = vmatmul.f32.vlgmr.msrb.gmra.mxu2 %v1756_v27  ;;  %v7698_v27 = vld [vmem:[%s12230_s2 + $0x198] sm:$0xff]  ;;  %2928 = vmatpush.xpose.msra.mxu0 %v7783_v22  ;;  %v1757_v22 = vrot.slane %v10084_v33, 2 }
 0x1ae   : > { %1842 = vmatmul.f32.vlgmr.msra.gmra.mxu3 %v1753_v12  ;;  %2094 = vmatpush.xpose.msrb.mxu2 %v7709_v37  ;;  %v7775_v37 = vld [vmem:[%s12230_s2 + $0x400] sm:$0xff]  ;;  %v1946_v12 = vrot.slane %v9832_v62, 3 }
 0x1af   : > { %2034 = vmatpush.xpose.msra.mxu3 %v7706_v11  ;;  %2384 = vmatmul.f32.vlgmr.msra.gmra.mxu1 %v2333_v14  ;;  %v7721_v11 = vld [vmem:[%s12230_s2 + $0x250] sm:$0x3]  ;;  %v7710_v14 = vld [vmem:[%s12230_s2 + $0x1f8] sm:$0x3] }
 0x1b0   : > { %2576 = vmatpush.xpose.msra.mxu1 %v7752_v10  ;;  %v7744_v10 = vld [vmem:[%s12230_s2 + $0x308] sm:$0xff] }
 0x1b1   : > { %2929 = vmatpush.xpose.msra.mxu0 %v7775_v37  ;;  %v7702_v37 = vld [vmem:[%s12230_s2 + $0x1b8] sm:$0xff] }
 0x1b2   : > { %2095 = vmatpush.xpose.msrb.mxu2 %v7701_v61  ;;  %v707_v61 = vadd.f32 %v9404_v28, %v678_v39  ;;  %v1026_v39 = vadd.f32 %v9876_v58, %v9874_v45  ;;  %v7799_v45 = vld [vmem:[%s12230_s2 + $0x4c0] sm:$0x3]  ;;  %v2527_v58 = vrot.slane %v9840_v25, 6 }
 0x1b3   : > { %2035 = vmatpush.xpose.msra.mxu3 %v7698_v27  ;;  %v7713_v27 = vld [vmem:[%s12230_s2 + $0x210] sm:$0xff] }
 0x1b4   : > { %2832 = vmatmul.f32.vlgmr.msrb.gmra.mxu0 %v2724_v0  ;;  %2577 = vmatpush.xpose.msra.mxu1 %v7744_v10  ;;  %v10237_v28 = vmax.f32 %v707_v61, 0.0  ;;  %v1950_v0 = vrot.slane %v10061_v38, 3  ;;  %v7722_v10 = vld [vmem:[%s12230_s2 + $0x258] sm:$0x3]  ;;  %v10261_v61 = vpop.f32.mrf.mxu1 }
 0x1b5   : > { %2016 = vmatmul.f32.vlgmr.msra.gmra.mxu2 %v1946_v12  ;;  %3008 = vmatpush.xpose.msrb.mxu0 %v7787_v15  ;;  %v7779_v12 = vld [vmem:[%s12230_s2 + $0x420] sm:$0xff]  ;;  %v7748_v15 = vld [vmem:[%s12230_s2 + $0x328] sm:$0xff] }
 0x1b6   : > { %1922 = vmatmul.f32.vlgmr.msrb.gmra.mxu3 %v1757_v22  ;;  %2208 = vmatpush.xpose.msra.mxu2 %v7721_v11  ;;  %v10235_v11 = vpop.f32.mrf.mxu0  ;;  %v7725_v22 = vld [vmem:[%s12230_s2 + $0x270] sm:$0x3] }
 0x1b7   : > { %2114 = vmatpush.xpose.msrb.mxu3 %v7710_v14  ;;  %2464 = vmatmul.f32.vlgmr.msrb.gmra.mxu1 %v2337_v18  ;;  %v1947_v14 = vrot.slane %v9842_v42, 3  ;;  %v7768_v18 = vld [vmem:[%s12230_s2 + $0x3c8] sm:$0x3] }
 0x1b8   : > { %2656 = vmatpush.xpose.msrb.mxu1 %v7756_v43  ;;  %v1055_v43 = vadd.f32 %v9891_v60, %v1026_v39 }
 0x1b9   : > { %3009 = vmatpush.xpose.msrb.mxu0 %v7779_v12  ;;  %v7791_v12 = vld [vmem:[%s12230_s2 + $0x480] sm:$0xff] }
 0x1ba   : > { %2209 = vmatpush.xpose.msra.mxu2 %v7713_v27  ;;  %v7717_v27 = vld [vmem:[%s12230_s2 + $0x230] sm:$0xff]  ;;  %v10274_v39 = vmax.f32 %v1055_v43, 0.0 }
 0x1bb   : > { %2115 = vmatpush.xpose.msrb.mxu3 %v7702_v37  ;;  %v7714_v37 = vld [vmem:[%s12230_s2 + $0x218] sm:$0xff]  ;;  %v7729_v43 = vld [vmem:[%s12230_s2 + $0x290] sm:$0xff] }
 0x1bc   : > { %2930 = vmatmul.f32.vlgmr.msra.gmra.mxu0 %v10237_v28  ;;  %2657 = vmatpush.xpose.msrb.mxu1 %v7748_v15  ;;  %v7760_v15 = vld [vmem:[%s12230_s2 + $0x388] sm:$0xff] }
 0x1bd   : > { %2096 = vmatmul.f32.vlgmr.msrb.gmra.mxu2 %v1950_v0  ;;  %3130 = vmatpush.xpose.msra.mxu0 %v7799_v45  ;;  %v2140_v0 = vrot.slane %v9832_v62, 4  ;;  %v7803_v45 = vld [vmem:[%s12230_s2 + $0x4e0] sm:$0x3] }
 0x1be   : > { %2036 = vmatmul.f32.vlgmr.msra.gmra.mxu3 %v1947_v14  ;;  %2288 = vmatpush.xpose.msrb.mxu2 %v7725_v22  ;;  %v7737_v22 = vld [vmem:[%s12230_s2 + $0x2d0] sm:$0x3]  ;;  %v1951_v14 = vrot.slane %v10084_v33, 3 }
 0x1bf   : > { %2228 = vmatpush.xpose.msra.mxu3 %v7722_v10  ;;  %2578 = vmatmul.f32.vlgmr.msra.gmra.mxu1 %v2527_v58  ;;  %v7726_v10 = vld [vmem:[%s12230_s2 + $0x278] sm:$0x3]  ;;  %v2531_v58 = vrot.slane %v9942_v3, 6 }
 0x1c0   : > { %2770 = vmatpush.xpose.msra.mxu1 %v7768_v18  ;;  %v7772_v18 = vld [vmem:[%s12230_s2 + $0x3e8] sm:$0x3] }
 0x1c1   : > { %v10272_v60 = vpop.f32.mrf.mxu0  ;;  %3131 = vmatpush.xpose.msra.mxu0 %v7791_v12  ;;  %v7795_v12 = vld [vmem:[%s12230_s2 + $0x4a0] sm:$0xff] }
 0x1c2   : > { %2289 = vmatpush.xpose.msrb.mxu2 %v7717_v27  ;;  %v7718_v27 = vld [vmem:[%s12230_s2 + $0x238] sm:$0xff] }
 0x1c3   : > { %2229 = vmatpush.xpose.msra.mxu3 %v7714_v37  ;;  %v10301_v37 = vpop.f32.mrf.mxu1 }
 0x1c4   : > { %3010 = vmatmul.f32.vlgmr.msrb.gmra.mxu0 %v10274_v39  ;;  %2771 = vmatpush.xpose.msra.mxu1 %v7760_v15  ;;  %v2141_v15 = vrot.slane %v9842_v42, 4 }
 0x1c5   : > { %2210 = vmatmul.f32.vlgmr.msra.gmra.mxu2 %v2140_v0  ;;  %3210 = vmatpush.xpose.msrb.mxu0 %v7803_v45  ;;  %v7738_v45 = vld [vmem:[%s12230_s2 + $0x2d8] sm:$0x3] }
 0x1c6   : > { %2116 = vmatmul.f32.vlgmr.msrb.gmra.mxu3 %v1951_v14  ;;  %2402 = vmatpush.xpose.msra.mxu2 %v7737_v22  ;;  %v2144_v22 = vrot.slane %v10061_v38, 4  ;;  %v7741_v14 = vld [vmem:[%s12230_s2 + $0x2f0] sm:$0x3] }
 0x1c7   : > { %2308 = vmatpush.xpose.msrb.mxu3 %v7726_v10  ;;  %2658 = vmatmul.f32.vlgmr.msrb.gmra.mxu1 %v2531_v58  ;;  %v3100_v10 = vrot.slane %v10237_v28, 1  ;;  %v7764_v58 = vld [vmem:[%s12230_s2 + $0x3a8] sm:$0xff] }
 0x1c8   : > { %2850 = vmatpush.xpose.msrb.mxu1 %v7772_v18  ;;  %v7815_v18 = vld [vmem:[%s12230_s2 + $0x540] sm:$0x3] }
 0x1c9   : > { %v10306_v0 = vpop.f32.mrf.mxu0  ;;  %3211 = vmatpush.xpose.msrb.mxu0 %v7795_v12  ;;  %v7730_v12 = vld [vmem:[%s12230_s2 + $0x298] sm:$0xff] }
 0x1ca   : > { %2403 = vmatpush.xpose.msra.mxu2 %v7729_v43  ;;  %v2721_v43 = vrot.slane %v9840_v25, 7  ;;  %v7807_v25 = vld [vmem:[%s12230_s2 + $0x500] sm:$0xff] }
 0x1cb   : > { %2309 = vmatpush.xpose.msrb.mxu3 %v7718_v27  ;;  %v7784_v27 = vld [vmem:[%s12230_s2 + $0x448] sm:$0x3] }
 0x1cc   : > { %3132 = vmatmul.f32.vlgmr.msra.gmra.mxu0 %v3100_v10  ;;  %2851 = vmatpush.xpose.msrb.mxu1 %v7764_v58  ;;  %v2334_v10 = vrot.slane %v9832_v62, 5  ;;  %v2145_v58 = vrot.slane %v10084_v33, 4 }
 0x1cd   : > { %2290 = vmatmul.f32.vlgmr.msrb.gmra.mxu2 %v2144_v22  ;;  %3324 = vmatpush.xpose.msra.mxu0 %v7815_v18  ;;  %v7742_v18 = vld [vmem:[%s12230_s2 + $0x2f8] sm:$0x3] }
 0x1ce   : > { %2230 = vmatmul.f32.vlgmr.msra.gmra.mxu3 %v2141_v15  ;;  %2482 = vmatpush.xpose.msrb.mxu2 %v7741_v14  ;;  %v10338_v14 = vpop.f32.mrf.mxu1  ;;  %v7753_v15 = vld [vmem:[%s12230_s2 + $0x350] sm:$0x3] }
 0x1cf   : > { %2422 = vmatpush.xpose.msra.mxu3 %v7738_v45  ;;  %2772 = vmatmul.f32.vlgmr.msra.gmra.mxu1 %v2721_v43  ;;  %12257 = vst [vmem:[#allocation29_spill] sm:$0xff] %v10338_v14  ;;  %v3104_v45 = vrot.slane %v10274_v39, 1  ;;  %v7819_v43 = vld [vmem:[%s12230_s2 + $0x560] sm:$0x3]  ;;  %v7788_v14 = vld [vmem:[%s12230_s2 + $0x468] sm:$0x3] }
 0x1d0   : > { %2948 = vmatpush.xpose.msra.mxu1 %v7784_v27  ;;  %v765_v27 = vadd.f32 %v9624_v57, %v9424_v34  ;;  %v7811_v34 = vld [vmem:[%s12230_s2 + $0x520] sm:$0xff] }
 0x1d1   : > { %v10336_v22 = vpop.f32.mrf.mxu0  ;;  %3325 = vmatpush.xpose.msra.mxu0 %v7807_v25  ;;  %v7745_v25 = vld [vmem:[%s12230_s2 + $0x310] sm:$0xff] }
 0x1d2   : > { %2483 = vmatpush.xpose.msrb.mxu2 %v7733_v32  ;;  %v7776_v32 = vld [vmem:[%s12230_s2 + $0x408] sm:$0xff]  ;;  %v794_v57 = vadd.f32 %v9629_v1, %v765_v27 }
 0x1d3   : > { %2423 = vmatpush.xpose.msra.mxu3 %v7730_v12  ;;  %v2725_v12 = vrot.slane %v9942_v3, 7  ;;  %v7780_v1 = vld [vmem:[%s12230_s2 + $0x428] sm:$0xff] }
 0x1d4   : > { %3212 = vmatmul.f32.vlgmr.msrb.gmra.mxu0 %v3104_v45  ;;  %2949 = vmatpush.xpose.msra.mxu1 %v7776_v32  ;;  %v7757_v45 = vld [vmem:[%s12230_s2 + $0x370] sm:$0x3]  ;;  %v10390_v27 = vmax.f32 %v794_v57, 0.0 }
 0x1d5   : > { %2404 = vmatmul.f32.vlgmr.msra.gmra.mxu2 %v2334_v10  ;;  %v7734_v10 = vld [vmem:[%s12230_s2 + $0x2b8] sm:$0xff]  ;;  %3404 = vmatpush.xpose.msrb.mxu0 %v7819_v43  ;;  %v7831_v43 = vld [vmem:[%s12230_s2 + $0x5c0] sm:$0x3] }
 0x1d6   : > { %2310 = vmatmul.f32.vlgmr.msrb.gmra.mxu3 %v2145_v58  ;;  %2596 = vmatpush.xpose.msra.mxu2 %v7753_v15  ;;  %v2338_v15 = vrot.slane %v10061_v38, 5  ;;  %v3294_v58 = vrot.slane %v10237_v28, 2  ;;  %v10385_v32 = vpop.f32.mrf.mxu1 }
 0x1d7   : > { %2502 = vmatpush.xpose.msrb.mxu3 %v7742_v18  ;;  %2852 = vmatmul.f32.vlgmr.msrb.gmra.mxu1 %v2725_v12  ;;  %v7754_v18 = vld [vmem:[%s12230_s2 + $0x358] sm:$0x3]  ;;  %v1113_v12 = vadd.f32 %v9956_v59, %v9893_v2  ;;  %v7823_v2 = vld [vmem:[%s12230_s2 + $0x580] sm:$0xff] }
 0x1d8   : > { %3028 = vmatpush.xpose.msrb.mxu1 %v7788_v14  ;;  %v2335_v14 = vrot.slane %v9842_v42, 5 }
 0x1d9   : > { %v10371_v3 = vpop.f32.mrf.mxu0  ;;  %3405 = vmatpush.xpose.msrb.mxu0 %v7811_v34  ;;  %v7746_v34 = vld [vmem:[%s12230_s2 + $0x318] sm:$0xff]  ;;  %v1142_v59 = vadd.f32 %v9979_v17, %v1113_v12  ;;  %v7792_v17 = vld [vmem:[%s12230_s2 + $0x488] sm:$0xff] }
 0x1da   : > { %2597 = vmatpush.xpose.msra.mxu2 %v7745_v25  ;;  %v7800_v25 = vld [vmem:[%s12230_s2 + $0x4c8] sm:$0x3] }
 0x1db   : > { %2503 = vmatpush.xpose.msrb.mxu3 %v7734_v10  ;;  %v7749_v10 = vld [vmem:[%s12230_s2 + $0x330] sm:$0xff]  ;;  %v10427_v12 = vmax.f32 %v1142_v59, 0.0  ;;  %v10442_v59 = vpop.f32.mrf.mxu2 }
 0x1dc   : > { %3326 = vmatmul.f32.vlgmr.msra.gmra.mxu0 %v3294_v58  ;;  %3029 = vmatpush.xpose.msrb.mxu1 %v7780_v1  ;;  %v3298_v58 = vrot.slane %v10274_v39, 2 }
 0x1dd   : > { %2484 = vmatmul.f32.vlgmr.msrb.gmra.mxu2 %v2338_v15  ;;  %3518 = vmatpush.xpose.msra.mxu0 %v7831_v43  ;;  %v2528_v15 = vrot.slane %v9832_v62, 6  ;;  %v7835_v43 = vld [vmem:[%s12230_s2 + $0x5e0] sm:$0x3]  ;;  %v3105_v55 = vrot.slane %v10427_v12, 1 }
 0x1de   : > { %2424 = vmatmul.f32.vlgmr.msra.gmra.mxu3 %v2335_v14  ;;  %2676 = vmatpush.xpose.msrb.mxu2 %v7757_v45  ;;  %v7769_v45 = vld [vmem:[%s12230_s2 + $0x3d0] sm:$0x3]  ;;  %v2339_v14 = vrot.slane %v10084_v33, 5 }
 0x1df   : > { %2616 = vmatpush.xpose.msra.mxu3 %v7754_v18  ;;  %2950 = vmatmul.f32.vlgmr.msra.gmra.mxu1 %v10390_v27  ;;  %v7758_v18 = vld [vmem:[%s12230_s2 + $0x378] sm:$0x3] }
 0x1e0   : > { %3150 = vmatpush.xpose.msra.mxu1 %v7800_v25  ;;  %v7804_v25 = vld [vmem:[%s12230_s2 + $0x4e8] sm:$0x3] }
 0x1e1   : > { %v10408_v57 = vpop.f32.mrf.mxu0  ;;  %3519 = vmatpush.xpose.msra.mxu0 %v7823_v2  ;;  %v7827_v2 = vld [vmem:[%s12230_s2 + $0x5a0] sm:$0xff] }
 0x1e2   : > { %2677 = vmatpush.xpose.msrb.mxu2 %v7749_v10  ;;  %v7761_v10 = vld [vmem:[%s12230_s2 + $0x390] sm:$0xff] }
 0x1e3   : > { %2617 = vmatpush.xpose.msra.mxu3 %v7746_v34  ;;  %v7750_v34 = vld [vmem:[%s12230_s2 + $0x338] sm:$0xff] }
 0x1e4   : > { %v10422_v1 = vpop.f32.mrf.mxu1  ;;  %3406 = vmatmul.f32.vlgmr.msrb.gmra.mxu0 %v3298_v58  ;;  %3151 = vmatpush.xpose.msra.mxu1 %v7792_v17  ;;  %v7773_v58 = vld [vmem:[%s12230_s2 + $0x3f0] sm:$0x3]  ;;  %v7770_v17 = vld [vmem:[%s12230_s2 + $0x3d8] sm:$0x3] }
 0x1e5   : > { %2598 = vmatmul.f32.vlgmr.msra.gmra.mxu2 %v2528_v15  ;;  %3598 = vmatpush.xpose.msrb.mxu0 %v7835_v43  ;;  %v7796_v43 = vld [vmem:[%s12230_s2 + $0x4a8] sm:$0xff] }
 0x1e6   : > { %2504 = vmatmul.f32.vlgmr.msrb.gmra.mxu3 %v2339_v14  ;;  %2790 = vmatpush.xpose.msra.mxu2 %v7769_v45  ;;  %v2532_v45 = vrot.slane %v10061_v38, 6  ;;  %v3488_v14 = vrot.slane %v10237_v28, 3 }
 0x1e7   : > { %2696 = vmatpush.xpose.msrb.mxu3 %v7758_v18  ;;  %3030 = vmatmul.f32.vlgmr.msrb.gmra.mxu1 %v10427_v12  ;;  %v2529_v18 = vrot.slane %v9842_v42, 6 }
 0x1e8   : > { %3230 = vmatpush.xpose.msrb.mxu1 %v7804_v25 }
 0x1e9   : > { %v10444_v15 = vpop.f32.mrf.mxu0  ;;  %3599 = vmatpush.xpose.msrb.mxu0 %v7827_v2  ;;  %v7765_v2 = vld [vmem:[%s12230_s2 + $0x3b0] sm:$0xff] }
 0x1ea   : > { %2791 = vmatpush.xpose.msra.mxu2 %v7761_v10  ;;  %v7847_v10 = vld [vmem:[%s12230_s2 + $0x640] sm:$0x3] }
 0x1eb   : > { %2697 = vmatpush.xpose.msrb.mxu3 %v7750_v34  ;;  %v3101_v34 = vrot.slane %v10390_v27, 1 }
 0x1ec   : > { %v10458_v25 = vpop.f32.mrf.mxu1  ;;  %3520 = vmatmul.f32.vlgmr.msra.gmra.mxu0 %v3488_v14  ;;  %3231 = vmatpush.xpose.msrb.mxu1 %v7796_v43  ;;  %v10473_v14 = vpop.f32.mrf.mxu3  ;;  %v7785_v43 = vld [vmem:[%s12230_s2 + $0x450] sm:$0x3] }
 0x1ed   : > { %2678 = vmatmul.f32.vlgmr.msrb.gmra.mxu2 %v2532_v45  ;;  %v7762_v45 = vld [vmem:[%s12230_s2 + $0x398] sm:$0xff]  ;;  %3712 = vmatpush.xpose.msra.mxu0 %v7847_v10  ;;  %v10485_v10 = vpop.f32.mrf.mxu2 }
 0x1ee   : > { %2618 = vmatmul.f32.vlgmr.msra.gmra.mxu3 %v2529_v18  ;;  %2870 = vmatpush.xpose.msrb.mxu2 %v7773_v58  ;;  %v7839_v58 = vld [vmem:[%s12230_s2 + $0x600] sm:$0xff]  ;;  %12258 = vst [vmem:[#allocation30_spill] sm:$0xff] %v10485_v10  ;;  %v3295_v10 = vrot.slane %v10390_v27, 2 }
 0x1ef   : > { %2810 = vmatpush.xpose.msra.mxu3 %v7770_v17  ;;  %3152 = vmatmul.f32.vlgmr.msra.gmra.mxu1 %v3101_v34  ;;  %v2722_v17 = vrot.slane %v9832_v62, 7  ;;  %v3492_v34 = vrot.slane %v10274_v39, 3 }
 0x1f0   : > { %3344 = vmatpush.xpose.msra.mxu1 %v7816_v63  ;;  %v2533_v63 = vrot.slane %v10084_v33, 6 }
 0x1f1   : > { %v10478_v18 = vpop.f32.mrf.mxu0  ;;  %3713 = vmatpush.xpose.msra.mxu0 %v7839_v58  ;;  %v7777_v58 = vld [vmem:[%s12230_s2 + $0x410] sm:$0xff] }
 0x1f2   : > { %2871 = vmatpush.xpose.msrb.mxu2 %v7765_v2  ;;  %v7808_v2 = vld [vmem:[%s12230_s2 + $0x508] sm:$0xff] }
 0x1f3   : > { %2811 = vmatpush.xpose.msra.mxu3 %v7762_v45  ;;  %v7851_v45 = vld [vmem:[%s12230_s2 + $0x660] sm:$0x3] }
 0x1f4   : > { %v10494_v62 = vpop.f32.mrf.mxu1  ;;  %3600 = vmatmul.f32.vlgmr.msrb.gmra.mxu0 %v3492_v34  ;;  %3345 = vmatpush.xpose.msra.mxu1 %v7808_v2  ;;  %v3682_v2 = vrot.slane %v10237_v28, 4 }
 0x1f5   : > { %2792 = vmatmul.f32.vlgmr.msra.gmra.mxu2 %v2722_v17  ;;  %v7766_v17 = vld [vmem:[%s12230_s2 + $0x3b8] sm:$0xff]  ;;  %3792 = vmatpush.xpose.msrb.mxu0 %v7851_v45 }
 0x1f6   : > { %2698 = vmatmul.f32.vlgmr.msrb.gmra.mxu3 %v2533_v63  ;;  %2968 = vmatpush.xpose.msra.mxu2 %v7785_v43  ;;  %v7843_v43 = vld [vmem:[%s12230_s2 + $0x620] sm:$0xff]  ;;  %v2726_v63 = vrot.slane %v10061_v38, 7  ;;  %v7786_v45 = vld [vmem:[%s12230_s2 + $0x458] sm:$0x3]  ;;  %v852_v38 = vadd.f32 %v9691_v24, %v9671_v19  ;;  %v7781_v24 = vld [vmem:[%s12230_s2 + $0x430] sm:$0xff] }
 0x1f7   : > { %2890 = vmatpush.xpose.msrb.mxu3 %v7774_v9  ;;  %3232 = vmatmul.f32.vlgmr.msrb.gmra.mxu1 %v3105_v55  ;;  %v10514_v9 = vpop.f32.mrf.mxu3  ;;  %v7789_v55 = vld [vmem:[%s12230_s2 + $0x470] sm:$0x3] }
 0x1f8   : > { %3424 = vmatpush.xpose.msrb.mxu1 %v7820_v52  ;;  %12259 = vst [vmem:[#allocation31_spill] sm:$0xff] %v10514_v9  ;;  %v2723_v52 = vrot.slane %v9842_v42, 7  ;;  %v7863_v42 = vld [vmem:[%s12230_s2 + $0x6c0] sm:$0x3]  ;;  %v10535_v9 = vpop.f32.mrf.mxu2  ;;  %v881_v19 = vadd.f32 %v9809_v46, %v852_v38  ;;  %v7790_v38 = vld [vmem:[%s12230_s2 + $0x478] sm:$0x3] }
 0x1f9   : > { %v10512_v34 = vpop.f32.mrf.mxu0  ;;  %3793 = vmatpush.xpose.msrb.mxu0 %v7843_v43  ;;  %v7832_v43 = vld [vmem:[%s12230_s2 + $0x5c8] sm:$0x3] }
 0x1fa   : > { %2969 = vmatpush.xpose.msra.mxu2 %v7777_v58  ;;  %v7812_v58 = vld [vmem:[%s12230_s2 + $0x528] sm:$0xff]  ;;  %v10553_v46 = vmax.f32 %v881_v19, 0.0 }
 0x1fb   : > { %2891 = vmatpush.xpose.msrb.mxu3 %v7766_v17 }
 0x1fc   : > { %v10530_v17 = vpop.f32.mrf.mxu1  ;;  %3714 = vmatmul.f32.vlgmr.msra.gmra.mxu0 %v3682_v2  ;;  %3425 = vmatpush.xpose.msrb.mxu1 %v7812_v58  ;;  %v2727_v58 = vrot.slane %v10084_v33, 7  ;;  %v7836_v33 = vld [vmem:[%s12230_s2 + $0x5e8] sm:$0x3] }
 0x1fd   : > { %2872 = vmatmul.f32.vlgmr.msrb.gmra.mxu2 %v2726_v63  ;;  %v7778_v63 = vld [vmem:[%s12230_s2 + $0x418] sm:$0xff]  ;;  %3906 = vmatpush.xpose.msra.mxu0 %v7863_v42  ;;  %v7824_v42 = vld [vmem:[%s12230_s2 + $0x588] sm:$0xff] }
 0x1fe   : > { %2812 = vmatmul.f32.vlgmr.msra.gmra.mxu3 %v2723_v52  ;;  %3048 = vmatpush.xpose.msrb.mxu2 %v7789_v55  ;;  %v7855_v55 = vld [vmem:[%s12230_s2 + $0x680] sm:$0xff]  ;;  %v3686_v52 = vrot.slane %v10274_v39, 4 }
 0x1ff   : > { %2988 = vmatpush.xpose.msra.mxu3 %v7786_v45  ;;  %3346 = vmatmul.f32.vlgmr.msra.gmra.mxu1 %v3295_v10  ;;  %v7801_v10 = vld [vmem:[%s12230_s2 + $0x4d0] sm:$0x3]  ;;  %v939_v45 = vadd.f32 %v9824_v53, %v9815_v47  ;;  %v10570_v19 = vpop.f32.mrf.mxu3  ;;  %v7867_v47 = vld [vmem:[%s12230_s2 + $0x6e0] sm:$0x3]  ;;  %v3299_v53 = vrot.slane %v10427_v12, 2 }
 0x200   : > { %3538 = vmatpush.xpose.msra.mxu1 %v7832_v43  ;;  %v1200_v43 = vadd.f32 %v9998_v44, %v9981_v16  ;;  %v7793_v44 = vld [vmem:[%s12230_s2 + $0x490] sm:$0xff] }
 0x201   : > { %v10551_v2 = vpop.f32.mrf.mxu0  ;;  %3907 = vmatpush.xpose.msra.mxu0 %v7855_v55  ;;  %v1470_v55 = vpop.f32.mrf.mxu2 }
 0x202   : > { %3049 = vmatpush.xpose.msrb.mxu2 %v7781_v24  ;;  %v1229_v16 = vadd.f32 %v10118_v7, %v1200_v43  ;;  %v7859_v7 = vld [vmem:[%s12230_s2 + $0x6a0] sm:$0xff]  ;;  %v7802_v43 = vld [vmem:[%s12230_s2 + $0x4d8] sm:$0x3] }
 0x203   : > { %2989 = vmatpush.xpose.msra.mxu3 %v7778_v63  ;;  %v968_v63 = vadd.f32 %v9836_v8, %v939_v45  ;;  %v7805_v8 = vld [vmem:[%s12230_s2 + $0x4f0] sm:$0x3]  ;;  %v3876_v45 = vrot.slane %v10237_v28, 5 }
 0x204   : > { %v10573_v24 = vpop.f32.mrf.mxu1  ;;  %3794 = vmatmul.f32.vlgmr.msrb.gmra.mxu0 %v3686_v52  ;;  %3539 = vmatpush.xpose.msra.mxu1 %v7824_v42  ;;  %v1287_v42 = vadd.f32 %v10442_v59, %v10261_v61  ;;  %v1451_v61 = vadd.f32 %v10385_v32, %v10235_v11  ;;  %v3489_v59 = vrot.slane %v10390_v27, 3  ;;  %v7794_v32 = vld [vmem:[%s12230_s2 + $0x498] sm:$0xff] }
 0x205   : > { %2970 = vmatmul.f32.vlgmr.msra.gmra.mxu2 %v10553_v46  ;;  %3986 = vmatpush.xpose.msrb.mxu0 %v7867_v47  ;;  %v7828_v47 = vld [vmem:[%s12230_s2 + $0x5a8] sm:$0xff] }
 0x206   : > { %2892 = vmatmul.f32.vlgmr.msrb.gmra.mxu3 %v2727_v58  ;;  %3170 = vmatpush.xpose.msra.mxu2 %v7801_v10  ;;  %v7782_v10 = vld [vmem:[%s12230_s2 + $0x438] sm:$0xff]  ;;  %v10595_v58 = vmax.f32 %v1229_v16, 0.0  ;;  %v7848_v16 = vld [vmem:[%s12230_s2 + $0x648] sm:$0x3] }
 0x207   : > { %3068 = vmatpush.xpose.msrb.mxu3 %v7790_v38  ;;  %3426 = vmatmul.f32.vlgmr.msrb.gmra.mxu1 %v3299_v53  ;;  %v10601_v38 = vmax.f32 %v968_v63, 0.0  ;;  %v7797_v63 = vld [vmem:[%s12230_s2 + $0x4b0] sm:$0xff] }
 0x208   : > { %3618 = vmatpush.xpose.msrb.mxu1 %v7836_v33  ;;  %v7879_v33 = vld [vmem:[%s12230_s2 + $0x740] sm:$0x3] }
 0x209   : > { %v10593_v52 = vpop.f32.mrf.mxu0  ;;  %3987 = vmatpush.xpose.msrb.mxu0 %v7859_v7  ;;  %v1471_v7 = vadd.f32 %v1470_v55, %v1451_v61  ;;  %v3880_v55 = vrot.slane %v10274_v39, 5  ;;  %v7806_v61 = vld [vmem:[%s12230_s2 + $0x4f8] sm:$0x3] }
 0x20a   : > { %3171 = vmatpush.xpose.msra.mxu2 %v7793_v44  ;;  %v1490_v44 = vpop.f32.mrf.mxu3 }
 0x20b   : > { %3069 = vmatpush.xpose.msrb.mxu3 %v7782_v10  ;;  %v1316_v10 = vadd.f32 %v10473_v14, %v1287_v42  ;;  %v7817_v14 = vld [vmem:[%s12230_s2 + $0x550] sm:$0x3] }
 0x20c   : > { %v10612_v53 = vpop.f32.mrf.mxu1  ;;  %3908 = vmatmul.f32.vlgmr.msra.gmra.mxu0 %v3876_v45  ;;  %3619 = vmatpush.xpose.msrb.mxu1 %v7828_v47  ;;  %v1491_v45 = vadd.f32 %v1490_v44, %v1471_v7  ;;  %v3102_v47 = vrot.slane %v10553_v46, 1  ;;  %v7883_v44 = vld [vmem:[%s12230_s2 + $0x760] sm:$0x3]  ;;  %v7809_v7 = vld [vmem:[%s12230_s2 + $0x510] sm:$0xff] }
 0x20d   : > { %3050 = vmatmul.f32.vlgmr.msrb.gmra.mxu2 %v10595_v58  ;;  %4100 = vmatpush.xpose.msra.mxu0 %v7879_v33  ;;  %v10641_v42 = vmax.f32 %v1316_v10, 0.0  ;;  %v7852_v10 = vld [vmem:[%s12230_s2 + $0x668] sm:$0x3] }
 0x20e   : > { %2990 = vmatmul.f32.vlgmr.msra.gmra.mxu3 %v10601_v38  ;;  %3250 = vmatpush.xpose.msrb.mxu2 %v7805_v8  ;;  %v7871_v8 = vld [vmem:[%s12230_s2 + $0x700] sm:$0xff]  ;;  %v1511_v33 = vadd.f32 %v10272_v60, %v1491_v45  ;;  %v3493_v60 = vrot.slane %v10427_v12, 3 }
 0x20f   : > { %3190 = vmatpush.xpose.msra.mxu3 %v7802_v43  ;;  %3540 = vmatmul.f32.vlgmr.msra.gmra.mxu1 %v3489_v59  ;;  %v7840_v59 = vld [vmem:[%s12230_s2 + $0x608] sm:$0xff] }
 0x210   : > { %v1550_v11 = vpop.f32.mrf.mxu2  ;;  %3732 = vmatpush.xpose.msra.mxu1 %v7848_v16 }
 0x211   : > { %v10634_v43 = vpop.f32.mrf.mxu0  ;;  %4101 = vmatpush.xpose.msra.mxu0 %v7871_v8 }
 0x212   : > { %3251 = vmatpush.xpose.msrb.mxu2 %v7797_v63  ;;  %v1531_v63 = vadd.f32 %v10422_v1, %v1511_v33  ;;  %v7798_v1 = vld [vmem:[%s12230_s2 + $0x4b8] sm:$0xff]  ;;  %v3106_v33 = vrot.slane %v10595_v58, 1 }
 0x213   : > { %3191 = vmatpush.xpose.msra.mxu3 %v7794_v32 }
 0x214   : > { %v10650_v16 = vpop.f32.mrf.mxu1  ;;  %3988 = vmatmul.f32.vlgmr.msrb.gmra.mxu0 %v3880_v55  ;;  %3733 = vmatpush.xpose.msra.mxu1 %v7840_v59  ;;  %v1551_v32 = vadd.f32 %v1550_v11, %v1531_v63  ;;  %v7821_v11 = vld [vmem:[%s12230_s2 + $0x570] sm:$0x3]  ;;  %v7818_v63 = vld [vmem:[%s12230_s2 + $0x558] sm:$0x3] }
 0x215   : > { %3172 = vmatmul.f32.vlgmr.msra.gmra.mxu2 %v3102_v47  ;;  %4180 = vmatpush.xpose.msrb.mxu0 %v7883_v44  ;;  %v7875_v47 = vld [vmem:[%s12230_s2 + $0x720] sm:$0xff]  ;;  %v3103_v44 = vrot.slane %v10601_v38, 1 }
 0x216   : > { %3070 = vmatmul.f32.vlgmr.msrb.gmra.mxu3 %v10641_v42  ;;  %3364 = vmatpush.xpose.msra.mxu2 %v7817_v14 }
 0x217   : > { %3270 = vmatpush.xpose.msrb.mxu3 %v7806_v61  ;;  %3620 = vmatmul.f32.vlgmr.msrb.gmra.mxu1 %v3493_v60  ;;  %v4070_v61 = vrot.slane %v10237_v28, 6  ;;  %v7844_v60 = vld [vmem:[%s12230_s2 + $0x628] sm:$0xff] }
 0x218   : > { %v1630_v8 = vpop.f32.mrf.mxu2  ;;  %3812 = vmatpush.xpose.msrb.mxu1 %v7852_v10 }
 0x219   : > { %v1570_v45 = vpop.f32.mrf.mxu3  ;;  %v10670_v55 = vpop.f32.mrf.mxu0  ;;  %4181 = vmatpush.xpose.msrb.mxu0 %v7875_v47 }
 0x21a   : > { %v1571_v14 = vadd.f32 %v1570_v45, %v1551_v32  ;;  %3365 = vmatpush.xpose.msra.mxu2 %v7809_v7  ;;  %v7895_v7 = vld [vmem:[%s12230_s2 + $0x7c0] sm:$0x3]  ;;  %v3683_v32 = vrot.slane %v10390_v27, 4  ;;  %v7813_v45 = vld [vmem:[%s12230_s2 + $0x530] sm:$0xff] }
 0x21b   : > { %3271 = vmatpush.xpose.msrb.mxu3 %v7798_v1  ;;  %v7864_v1 = vld [vmem:[%s12230_s2 + $0x6c8] sm:$0x3] }
 0x21c   : > { %v1591_v59 = vadd.f32 %v10306_v0, %v1571_v14  ;;  %v10685_v10 = vpop.f32.mrf.mxu1  ;;  %4102 = vmatmul.f32.vlgmr.msra.gmra.mxu0 %v4070_v61  ;;  %3813 = vmatpush.xpose.msrb.mxu1 %v7844_v60 }
 0x21d   : > { %3252 = vmatmul.f32.vlgmr.msrb.gmra.mxu2 %v3106_v33  ;;  %4294 = vmatpush.xpose.msra.mxu0 %v7895_v7  ;;  %v3107_v7 = vrot.slane %v10641_v42, 1 }
 0x21e   : > { %v1611_v0 = vadd.f32 %v10458_v25, %v1591_v59  ;;  %3192 = vmatmul.f32.vlgmr.msra.gmra.mxu3 %v3103_v44  ;;  %3444 = vmatpush.xpose.msrb.mxu2 %v7821_v11  ;;  %v7810_v25 = vld [vmem:[%s12230_s2 + $0x518] sm:$0xff]  ;;  %v7887_v11 = vld [vmem:[%s12230_s2 + $0x780] sm:$0xff]  ;;  %v3296_v44 = vrot.slane %v10553_v46, 2 }
 0x21f   : > { %3384 = vmatpush.xpose.msra.mxu3 %v7818_v63  ;;  %3734 = vmatmul.f32.vlgmr.msra.gmra.mxu1 %v3683_v32  ;;  %v4074_v63 = vrot.slane %v10274_v39, 6  ;;  %v7856_v32 = vld [vmem:[%s12230_s2 + $0x688] sm:$0xff] }
 0x220   : > { %v1631_v47 = vadd.f32 %v1630_v8, %v1611_v0  ;;  %v1710_v14 = vpop.f32.mrf.mxu2  ;;  %3926 = vmatpush.xpose.msra.mxu1 %v7864_v1  ;;  %v7833_v8 = vld [vmem:[%s12230_s2 + $0x5d0] sm:$0x3]  ;;  %v7822_v0 = vld [vmem:[%s12230_s2 + $0x578] sm:$0x3] }
 0x221   : > { %v1650_v33 = vpop.f32.mrf.mxu3  ;;  %v10704_v59 = vpop.f32.mrf.mxu0  ;;  %4295 = vmatpush.xpose.msra.mxu0 %v7887_v11  ;;  %v7825_v11 = vld [vmem:[%s12230_s2 + $0x590] sm:$0xff] }
 0x222   : > { %v1651_v61 = vadd.f32 %v1650_v33, %v1631_v47  ;;  %3445 = vmatpush.xpose.msrb.mxu2 %v7813_v45  ;;  %v7899_v45 = vld [vmem:[%s12230_s2 + $0x7e0] sm:$0x3]  ;;  %v3687_v47 = vrot.slane %v10427_v12, 4  ;;  %v1804_v33 = vadd.f32 %v10530_v17, %v10371_v3 }
 0x223   : > { %3385 = vmatpush.xpose.msra.mxu3 %v7810_v25  ;;  %v7868_v25 = vld [vmem:[%s12230_s2 + $0x6e8] sm:$0x3]  ;;  %v7891_v3 = vld [vmem:[%s12230_s2 + $0x7a0] sm:$0xff] }
 0x224   : > { %v1671_v60 = vadd.f32 %v10336_v22, %v1651_v61  ;;  %v10719_v1 = vpop.f32.mrf.mxu1  ;;  %4182 = vmatmul.f32.vlgmr.msrb.gmra.mxu0 %v4074_v63  ;;  %3927 = vmatpush.xpose.msra.mxu1 %v7856_v32  ;;  %v3297_v32 = vrot.slane %v10601_v38, 2 }
 0x225   : > { %3366 = vmatmul.f32.vlgmr.msra.gmra.mxu2 %v3296_v44  ;;  %4374 = vmatpush.xpose.msrb.mxu0 %v7899_v45  ;;  %v7834_v45 = vld [vmem:[%s12230_s2 + $0x5d8] sm:$0x3] }
 0x226   : > { %v1691_v22 = vadd.f32 %v10494_v62, %v1671_v60  ;;  %3272 = vmatmul.f32.vlgmr.msrb.gmra.mxu3 %v3107_v7  ;;  %3558 = vmatpush.xpose.msra.mxu2 %v7833_v8  ;;  %v7814_v62 = vld [vmem:[%s12230_s2 + $0x538] sm:$0xff]  ;;  %v7837_v7 = vld [vmem:[%s12230_s2 + $0x5f0] sm:$0x3] }
 0x227   : > { %3464 = vmatpush.xpose.msrb.mxu3 %v7822_v0  ;;  %3814 = vmatmul.f32.vlgmr.msrb.gmra.mxu1 %v3687_v47  ;;  %v4264_v0 = vrot.slane %v10237_v28, 7  ;;  %v3877_v28 = vrot.slane %v10390_v27, 5 }
 0x228   : > { %v1711_v61 = vadd.f32 %v1710_v14, %v1691_v22  ;;  %v1823_v44 = vpop.f32.mrf.mxu2  ;;  %4006 = vmatpush.xpose.msrb.mxu1 %v7868_v25  ;;  %v3300_v14 = vrot.slane %v10595_v58, 2  ;;  %v7860_v22 = vld [vmem:[%s12230_s2 + $0x6a8] sm:$0xff]  ;;  %v7911_v25 = vld [vmem:[%s12230_s2 + $0x840] sm:$0x3] }
 0x229   : > { %v1730_v8 = vpop.f32.mrf.mxu3  ;;  %v1824_v63 = vadd.f32 %v1823_v44, %v1804_v33  ;;  %v10742_v60 = vpop.f32.mrf.mxu0  ;;  %4375 = vmatpush.xpose.msrb.mxu0 %v7891_v3  ;;  %v7880_v33 = vld [vmem:[%s12230_s2 + $0x748] sm:$0x3]  ;;  %v7826_v44 = vld [vmem:[%s12230_s2 + $0x598] sm:$0xff] }
 0x22a   : > { %v10740_v17 = vadd.f32 %v1730_v8, %v1711_v61  ;;  %3559 = vmatpush.xpose.msra.mxu2 %v7825_v11  ;;  %v7829_v11 = vld [vmem:[%s12230_s2 + $0x5b0] sm:$0xff]  ;;  %v7903_v8 = vld [vmem:[%s12230_s2 + $0x800] sm:$0xff] }
 0x22b   : > { %3465 = vmatpush.xpose.msrb.mxu3 %v7814_v62 }
 0x22c   : > { %v10756_v47 = vpop.f32.mrf.mxu1  ;;  %4296 = vmatmul.f32.vlgmr.msra.gmra.mxu0 %v4264_v0  ;;  %4007 = vmatpush.xpose.msrb.mxu1 %v7860_v22  ;;  %v3490_v0 = vrot.slane %v10553_v46, 3 }
 0x22d   : > { %3446 = vmatmul.f32.vlgmr.msrb.gmra.mxu2 %v3300_v14  ;;  %4472 = vmatpush.xpose.msra.mxu0 %v7911_v25  ;;  %v3301_v25 = vrot.slane %v10641_v42, 2 }
 0x22e   : > { %3386 = vmatmul.f32.vlgmr.msra.gmra.mxu3 %v3297_v32  ;;  %3638 = vmatpush.xpose.msrb.mxu2 %v7837_v7  ;;  %v681_v7 = vadd.f32 %v9434_v41, %v9426_v35  ;;  %v7849_v32 = vld [vmem:[%s12230_s2 + $0x650] sm:$0x3]  ;;  %v7872_v35 = vld [vmem:[%s12230_s2 + $0x708] sm:$0xff] }
 0x22f   : > { %3578 = vmatpush.xpose.msra.mxu3 %v7834_v45  ;;  %3928 = vmatmul.f32.vlgmr.msra.gmra.mxu1 %v3877_v28  ;;  %v4268_v45 = vrot.slane %v10274_v39, 7  ;;  %v7915_v39 = vld [vmem:[%s12230_s2 + $0x860] sm:$0x3]  ;;  %v3881_v28 = vrot.slane %v10427_v12, 5 }
 0x230   : > { %v1903_v61 = vpop.f32.mrf.mxu2  ;;  %4120 = vmatpush.xpose.msra.mxu1 %v7880_v33  ;;  %v7884_v33 = vld [vmem:[%s12230_s2 + $0x768] sm:$0x3] }
 0x231   : > { %v1843_v62 = vpop.f32.mrf.mxu3  ;;  %v10774_v14 = vpop.f32.mrf.mxu0  ;;  %4473 = vmatpush.xpose.msra.mxu0 %v7903_v8 }
 0x232   : > { %v1844_v3 = vadd.f32 %v1843_v62, %v1824_v63  ;;  %3639 = vmatpush.xpose.msrb.mxu2 %v7829_v11  ;;  %v7838_v63 = vld [vmem:[%s12230_s2 + $0x5f8] sm:$0x3]  ;;  %v710_v11 = vadd.f32 %v9464_v48, %v681_v7  ;;  %v7841_v62 = vld [vmem:[%s12230_s2 + $0x610] sm:$0xff]  ;;  %v7907_v48 = vld [vmem:[%s12230_s2 + $0x820] sm:$0xff] }
 0x233   : > { %3579 = vmatpush.xpose.msra.mxu3 %v7826_v44  ;;  %v1998_v44 = vadd.f32 %v10612_v53, %v10444_v15 }
 0x234   : > { %v1864_v22 = vadd.f32 %v10408_v57, %v1844_v3  ;;  %v10791_v41 = vpop.f32.mrf.mxu1  ;;  %4376 = vmatmul.f32.vlgmr.msrb.gmra.mxu0 %v4268_v45  ;;  %4121 = vmatpush.xpose.msra.mxu1 %v7872_v35  ;;  %v7830_v3 = vld [vmem:[%s12230_s2 + $0x5b8] sm:$0xff]  ;;  %v10815_v7 = vmax.f32 %v710_v11, 0.0  ;;  %v3494_v45 = vrot.slane %v10595_v58, 3 }
 0x235   : > { %3560 = vmatmul.f32.vlgmr.msra.gmra.mxu2 %v3490_v0  ;;  %4552 = vmatpush.xpose.msrb.mxu0 %v7915_v39  ;;  %v7850_v35 = vld [vmem:[%s12230_s2 + $0x658] sm:$0x3]  ;;  %v4071_v39 = vrot.slane %v10390_v27, 6 }
 0x236   : > { %v1884_v57 = vadd.f32 %v10573_v24, %v1864_v22  ;;  %3466 = vmatmul.f32.vlgmr.msrb.gmra.mxu3 %v3301_v25  ;;  %3752 = vmatpush.xpose.msra.mxu2 %v7849_v32  ;;  %v7853_v22 = vld [vmem:[%s12230_s2 + $0x670] sm:$0x3] }
 0x237   : > { %3658 = vmatpush.xpose.msrb.mxu3 %v7838_v63  ;;  %4008 = vmatmul.f32.vlgmr.msrb.gmra.mxu1 %v3881_v28  ;;  %v3491_v63 = vrot.slane %v10601_v38, 3 }
 0x238   : > { %v1904_v24 = vadd.f32 %v1903_v61, %v1884_v57  ;;  %v2017_v8 = vpop.f32.mrf.mxu2  ;;  %4200 = vmatpush.xpose.msrb.mxu1 %v7884_v33  ;;  %v1029_v61 = vadd.f32 %v9900_v31, %v9895_v56  ;;  %v7876_v56 = vld [vmem:[%s12230_s2 + $0x728] sm:$0xff]  ;;  %v7845_v33 = vld [vmem:[%s12230_s2 + $0x630] sm:$0xff] }
 0x239   : > { %v1923_v0 = vpop.f32.mrf.mxu3  ;;  %v2018_v32 = vadd.f32 %v2017_v8, %v1998_v44  ;;  %v10813_v53 = vpop.f32.mrf.mxu0  ;;  %4553 = vmatpush.xpose.msrb.mxu0 %v7907_v48  ;;  %v7896_v57 = vld [vmem:[%s12230_s2 + $0x7c8] sm:$0x3]  ;;  %v7842_v44 = vld [vmem:[%s12230_s2 + $0x618] sm:$0xff]  ;;  %v7865_v48 = vld [vmem:[%s12230_s2 + $0x6d0] sm:$0x3] }
 0x23a   : > { %v1924_v15 = vadd.f32 %v1923_v0, %v1904_v24  ;;  %3753 = vmatpush.xpose.msra.mxu2 %v7841_v62  ;;  %v1058_v28 = vadd.f32 %v9912_v36, %v1029_v61  ;;  %v7919_v24 = vld [vmem:[%s12230_s2 + $0x880] sm:$0xff]  ;;  %v3684_v0 = vrot.slane %v10553_v46, 4  ;;  %v3495_v61 = vrot.slane %v10641_v42, 3 }
 0x23b   : > { %3659 = vmatpush.xpose.msrb.mxu3 %v7830_v3 }
 0x23c   : > { %v10824_v25 = vadd.f32 %v1924_v15, %v10740_v17  ;;  %v10833_v31 = vpop.f32.mrf.mxu1  ;;  %4474 = vmatmul.f32.vlgmr.msra.gmra.mxu0 %v10815_v7  ;;  %v7927_v17 = vld [vmem:[%s12230_s2 + $0x8c0] sm:$0x3]  ;;  %4201 = vmatpush.xpose.msrb.mxu1 %v7876_v56  ;;  %v10855_v3 = vmax.f32 %v1058_v28, 0.0  ;;  %v7900_v56 = vld [vmem:[%s12230_s2 + $0x7e8] sm:$0x3] }
 0x23d   : > { %3640 = vmatmul.f32.vlgmr.msrb.gmra.mxu2 %v3494_v45  ;;  %4674 = vmatpush.xpose.msra.mxu0 %v7927_v17  ;;  %v7888_v45 = vld [vmem:[%s12230_s2 + $0x788] sm:$0xff]  ;;  %v2192_v17 = vadd.f32 %v10685_v10, %v10512_v34  ;;  %v7923_v34 = vld [vmem:[%s12230_s2 + $0x8a0] sm:$0xff] }
 0x23e   : > { %3580 = vmatmul.f32.vlgmr.msra.gmra.mxu3 %v3491_v63  ;;  %3832 = vmatpush.xpose.msrb.mxu2 %v7853_v22 }
 0x23f   : > { %3772 = vmatpush.xpose.msra.mxu3 %v7850_v35  ;;  %4122 = vmatmul.f32.vlgmr.msra.gmra.mxu1 %v4071_v39  ;;  %v4075_v35 = vrot.slane %v10427_v12, 6  ;;  %v7857_v39 = vld [vmem:[%s12230_s2 + $0x690] sm:$0xff] }
 0x240   : > { %v2097_v11 = vpop.f32.mrf.mxu2  ;;  %4314 = vmatpush.xpose.msra.mxu1 %v7896_v57 }
 0x241   : > { %v2037_v62 = vpop.f32.mrf.mxu3  ;;  %v10853_v8 = vpop.f32.mrf.mxu0  ;;  %4675 = vmatpush.xpose.msra.mxu0 %v7919_v24  ;;  %v7869_v24 = vld [vmem:[%s12230_s2 + $0x6f0] sm:$0x3] }
 0x242   : > { %v2038_v36 = vadd.f32 %v2037_v62, %v2018_v32  ;;  %3833 = vmatpush.xpose.msrb.mxu2 %v7845_v33  ;;  %v7854_v32 = vld [vmem:[%s12230_s2 + $0x678] sm:$0x3] }
 0x243   : > { %3773 = vmatpush.xpose.msra.mxu3 %v7842_v44 }
 0x244   : > { %v2058_v15 = vadd.f32 %v10478_v18, %v2038_v36  ;;  %v10869_v22 = vpop.f32.mrf.mxu1  ;;  %4554 = vmatmul.f32.vlgmr.msrb.gmra.mxu0 %v10855_v3  ;;  %v7931_v18 = vld [vmem:[%s12230_s2 + $0x8e0] sm:$0x3]  ;;  %4315 = vmatpush.xpose.msra.mxu1 %v7888_v45  ;;  %v4644_v36 = vrot.slane %v10815_v7, 1  ;;  %v4265_v45 = vrot.slane %v10390_v27, 7 }
 0x245   : > { %3754 = vmatmul.f32.vlgmr.msra.gmra.mxu2 %v3684_v0  ;;  %4754 = vmatpush.xpose.msrb.mxu0 %v7931_v18  ;;  %v7912_v18 = vld [vmem:[%s12230_s2 + $0x848] sm:$0x3]  ;;  %v7935_v27 = vld [vmem:[%s12230_s2 + $0x900] sm:$0xff] }
 0x246   : > { %v2078_v63 = vadd.f32 %v10650_v16, %v2058_v15  ;;  %3660 = vmatmul.f32.vlgmr.msrb.gmra.mxu3 %v3495_v61  ;;  %3946 = vmatpush.xpose.msra.mxu2 %v7865_v48  ;;  %v7846_v16 = vld [vmem:[%s12230_s2 + $0x638] sm:$0xff]  ;;  %v3685_v48 = vrot.slane %v10601_v38, 4  ;;  %v7892_v61 = vld [vmem:[%s12230_s2 + $0x7a8] sm:$0xff] }
 0x247   : > { %3852 = vmatpush.xpose.msrb.mxu3 %v7854_v32  ;;  %4202 = vmatmul.f32.vlgmr.msrb.gmra.mxu1 %v4075_v35  ;;  %v7866_v15 = vld [vmem:[%s12230_s2 + $0x6d8] sm:$0x3] }
 0x248   : > { %v2098_v57 = vadd.f32 %v2097_v11, %v2078_v63  ;;  %v2211_v28 = vpop.f32.mrf.mxu2  ;;  %4394 = vmatpush.xpose.msrb.mxu1 %v7900_v56  ;;  %v3688_v11 = vrot.slane %v10595_v58, 4  ;;  %v7861_v63 = vld [vmem:[%s12230_s2 + $0x6b0] sm:$0xff]  ;;  %v7858_v56 = vld [vmem:[%s12230_s2 + $0x698] sm:$0xff] }
 0x249   : > { %v2117_v33 = vpop.f32.mrf.mxu3  ;;  %v2212_v44 = vadd.f32 %v2211_v28, %v2192_v17  ;;  %v10891_v62 = vpop.f32.mrf.mxu0  ;;  %4755 = vmatpush.xpose.msrb.mxu0 %v7923_v34  ;;  %v3878_v28 = vrot.slane %v10553_v46, 5 }
 0x24a   : > { %v2118_v10 = vadd.f32 %v2117_v33, %v2098_v57  ;;  %3947 = vmatpush.xpose.msra.mxu2 %v7857_v39  ;;  %v4648_v33 = vrot.slane %v10855_v3, 1 }
 0x24b   : > { %3853 = vmatpush.xpose.msrb.mxu3 %v7846_v16  ;;  %v7881_v16 = vld [vmem:[%s12230_s2 + $0x750] sm:$0x3] }
 0x24c   : > { %v10899_v0 = vadd.f32 %v2118_v10, %v10824_v25  ;;  %v10908_v32 = vpop.f32.mrf.mxu1  ;;  %4676 = vmatmul.f32.vlgmr.msra.gmra.mxu0 %v4644_v36  ;;  %v7943_v25 = vld [vmem:[%s12230_s2 + $0x940] sm:$0x3]  ;;  %4395 = vmatpush.xpose.msrb.mxu1 %v7892_v61  ;;  %v3689_v10 = vrot.slane %v10641_v42, 4  ;;  %v7916_v61 = vld [vmem:[%s12230_s2 + $0x868] sm:$0x3] }
 0x24d   : > { %3834 = vmatmul.f32.vlgmr.msrb.gmra.mxu2 %v3688_v11  ;;  %4868 = vmatpush.xpose.msra.mxu0 %v7943_v25  ;;  %v7904_v11 = vld [vmem:[%s12230_s2 + $0x808] sm:$0xff]  ;;  %v7947_v36 = vld [vmem:[%s12230_s2 + $0x960] sm:$0x3]  ;;  %v2386_v25 = vadd.f32 %v10756_v47, %v10593_v52 }
 0x24e   : > { %3774 = vmatmul.f32.vlgmr.msra.gmra.mxu3 %v3685_v48  ;;  %4026 = vmatpush.xpose.msrb.mxu2 %v7869_v24  ;;  %v7939_v52 = vld [vmem:[%s12230_s2 + $0x920] sm:$0xff] }
 0x24f   : > { %3966 = vmatpush.xpose.msra.mxu3 %v7866_v15  ;;  %4316 = vmatmul.f32.vlgmr.msra.gmra.mxu1 %v4265_v45  ;;  %v4269_v15 = vrot.slane %v10427_v12, 7  ;;  %v7873_v45 = vld [vmem:[%s12230_s2 + $0x710] sm:$0xff]  ;;  %v7862_v12 = vld [vmem:[%s12230_s2 + $0x6b8] sm:$0xff] }
 0x250   : > { %v2291_v35 = vpop.f32.mrf.mxu2  ;;  %4492 = vmatpush.xpose.msra.mxu1 %v7912_v18 }
 0x251   : > { %v2231_v17 = vpop.f32.mrf.mxu3  ;;  %v10926_v57 = vpop.f32.mrf.mxu0  ;;  %4869 = vmatpush.xpose.msra.mxu0 %v7935_v27  ;;  %v4838_v27 = vrot.slane %v10815_v7, 2 }
 0x252   : > { %v2232_v39 = vadd.f32 %v2231_v17, %v2212_v44  ;;  %4027 = vmatpush.xpose.msrb.mxu2 %v7861_v63  ;;  %v7870_v44 = vld [vmem:[%s12230_s2 + $0x6f8] sm:$0x3]  ;;  %v7885_v17 = vld [vmem:[%s12230_s2 + $0x770] sm:$0x3] }
 0x253   : > { %3967 = vmatpush.xpose.msra.mxu3 %v7858_v56 }
 0x254   : > { %v2252_v34 = vadd.f32 %v10551_v2, %v2232_v39  ;;  %v10941_v24 = vpop.f32.mrf.mxu1  ;;  %4756 = vmatmul.f32.vlgmr.msrb.gmra.mxu0 %v4648_v33  ;;  %v768_v2 = vadd.f32 %v9693_v26, %v9484_v51  ;;  %4493 = vmatpush.xpose.msra.mxu1 %v7904_v11  ;;  %v7877_v11 = vld [vmem:[%s12230_s2 + $0x730] sm:$0xff] }
 0x255   : > { %3948 = vmatmul.f32.vlgmr.msra.gmra.mxu2 %v3878_v28  ;;  %4948 = vmatpush.xpose.msrb.mxu0 %v7947_v36  ;;  %v3879_v28 = vrot.slane %v10601_v38, 5 }
 0x256   : > { %v2272_v48 = vadd.f32 %v10719_v1, %v2252_v34  ;;  %3854 = vmatmul.f32.vlgmr.msrb.gmra.mxu3 %v3689_v10  ;;  %4140 = vmatpush.xpose.msra.mxu2 %v7881_v16  ;;  %v797_v47 = vadd.f32 %v9698_v40, %v768_v2  ;;  %v7882_v40 = vld [vmem:[%s12230_s2 + $0x758] sm:$0x3]  ;;  %v7908_v16 = vld [vmem:[%s12230_s2 + $0x828] sm:$0xff]  ;;  %v1116_v10 = vadd.f32 %v9987_v4, %v9917_v6  ;;  %v7951_v4 = vld [vmem:[%s12230_s2 + $0x980] sm:$0xff] }
 0x257   : > { %4046 = vmatpush.xpose.msrb.mxu3 %v7870_v44  ;;  %4396 = vmatmul.f32.vlgmr.msrb.gmra.mxu1 %v4269_v15  ;;  %v7928_v44 = vld [vmem:[%s12230_s2 + $0x8c8] sm:$0x3]  ;;  %v7874_v2 = vld [vmem:[%s12230_s2 + $0x718] sm:$0xff] }
 0x258   : > { %v2292_v51 = vadd.f32 %v2291_v35, %v2272_v48  ;;  %v2405_v26 = vpop.f32.mrf.mxu2  ;;  %4572 = vmatpush.xpose.msrb.mxu1 %v7916_v61  ;;  %v3882_v35 = vrot.slane %v10595_v58, 5  ;;  %v10987_v34 = vmax.f32 %v797_v47, 0.0  ;;  %v1145_v48 = vadd.f32 %v10014_v50, %v1116_v10  ;;  %v7886_v50 = vld [vmem:[%s12230_s2 + $0x778] sm:$0x3] }
 0x259   : > { %v2311_v1 = vpop.f32.mrf.mxu3  ;;  %v2406_v18 = vadd.f32 %v2405_v26, %v2386_v25  ;;  %v10965_v56 = vpop.f32.mrf.mxu0  ;;  %4949 = vmatpush.xpose.msrb.mxu0 %v7939_v52  ;;  %v4072_v25 = vrot.slane %v10553_v46, 6  ;;  %v7963_v52 = vld [vmem:[%s12230_s2 + $0x9e0] sm:$0x3]  ;;  %v4076_v10 = vrot.slane %v10595_v58, 6 }
 0x25a   : > { %v2312_v63 = vadd.f32 %v2311_v1, %v2292_v51  ;;  %4141 = vmatpush.xpose.msra.mxu2 %v7873_v45  ;;  %v7897_v45 = vld [vmem:[%s12230_s2 + $0x7d0] sm:$0x3]  ;;  %v4842_v51 = vrot.slane %v10855_v3, 2  ;;  %v7920_v1 = vld [vmem:[%s12230_s2 + $0x888] sm:$0xff] }
 0x25b   : > { %4047 = vmatpush.xpose.msrb.mxu3 %v7862_v12  ;;  %v3883_v12 = vrot.slane %v10641_v42, 5 }
 0x25c   : > { %v10973_v39 = vadd.f32 %v2312_v63, %v10899_v0  ;;  %v10982_v33 = vpop.f32.mrf.mxu1  ;;  %4870 = vmatmul.f32.vlgmr.msra.gmra.mxu0 %v4838_v27  ;;  %v7959_v0 = vld [vmem:[%s12230_s2 + $0x9c0] sm:$0x3]  ;;  %4573 = vmatpush.xpose.msrb.mxu1 %v7908_v16  ;;  %v7932_v63 = vld [vmem:[%s12230_s2 + $0x8e8] sm:$0x3] }
 0x25d   : > { %4028 = vmatmul.f32.vlgmr.msrb.gmra.mxu2 %v3882_v35  ;;  %5062 = vmatpush.xpose.msra.mxu0 %v7959_v0  ;;  %v2580_v35 = vadd.f32 %v10833_v31, %v10670_v55  ;;  %v7955_v55 = vld [vmem:[%s12230_s2 + $0x9a0] sm:$0xff] }
 0x25e   : > { %3968 = vmatmul.f32.vlgmr.msra.gmra.mxu3 %v3879_v28  ;;  %4220 = vmatpush.xpose.msrb.mxu2 %v7885_v17  ;;  %v7889_v17 = vld [vmem:[%s12230_s2 + $0x790] sm:$0xff] }
 0x25f   : > { %4160 = vmatpush.xpose.msra.mxu3 %v7882_v40  ;;  %4494 = vmatmul.f32.vlgmr.msra.gmra.mxu1 %v10987_v34 }
 0x260   : > { %v2485_v36 = vpop.f32.mrf.mxu2  ;;  %4694 = vmatpush.xpose.msra.mxu1 %v7928_v44  ;;  %v7901_v44 = vld [vmem:[%s12230_s2 + $0x7f0] sm:$0x3] }
 0x261   : > { %v2425_v6 = vpop.f32.mrf.mxu3  ;;  %v11005_v61 = vpop.f32.mrf.mxu0  ;;  %5063 = vmatpush.xpose.msra.mxu0 %v7951_v4  ;;  %v7924_v4 = vld [vmem:[%s12230_s2 + $0x8a8] sm:$0xff] }
 0x262   : > { %v2426_v15 = vadd.f32 %v2425_v6, %v2406_v18  ;;  %4221 = vmatpush.xpose.msrb.mxu2 %v7877_v11  ;;  %v5032_v11 = vrot.slane %v10815_v7, 3  ;;  %v7898_v6 = vld [vmem:[%s12230_s2 + $0x7d8] sm:$0x3] }
 0x263   : > { %4161 = vmatpush.xpose.msra.mxu3 %v7874_v2  ;;  %v4073_v2 = vrot.slane %v10601_v38, 6 }
 0x264   : > { %v2446_v26 = vadd.f32 %v10634_v43, %v2426_v15  ;;  %v11020_v18 = vpop.f32.mrf.mxu1  ;;  %4950 = vmatmul.f32.vlgmr.msrb.gmra.mxu0 %v4842_v51  ;;  %v11025_v43 = vmax.f32 %v1145_v48, 0.0  ;;  %4695 = vmatpush.xpose.msra.mxu1 %v7920_v1  ;;  %v4645_v15 = vrot.slane %v10987_v34, 1 }
 0x265   : > { %4142 = vmatmul.f32.vlgmr.msra.gmra.mxu2 %v4072_v25  ;;  %5142 = vmatpush.xpose.msrb.mxu0 %v7963_v52  ;;  %v7944_v25 = vld [vmem:[%s12230_s2 + $0x948] sm:$0x3] }
 0x266   : > { %v2466_v47 = vadd.f32 %v10791_v41, %v2446_v26  ;;  %4048 = vmatmul.f32.vlgmr.msrb.gmra.mxu3 %v3883_v12  ;;  %4334 = vmatpush.xpose.msra.mxu2 %v7897_v45  ;;  %v7878_v41 = vld [vmem:[%s12230_s2 + $0x738] sm:$0xff]  ;;  %v7893_v45 = vld [vmem:[%s12230_s2 + $0x7b0] sm:$0xff] }
 0x267   : > { %4240 = vmatpush.xpose.msrb.mxu3 %v7886_v50  ;;  %4574 = vmatmul.f32.vlgmr.msrb.gmra.mxu1 %v11025_v43  ;;  %v7890_v26 = vld [vmem:[%s12230_s2 + $0x798] sm:$0xff]  ;;  %v7967_v50 = vld [vmem:[%s12230_s2 + $0xa00] sm:$0xff] }
 0x268   : > { %v2486_v27 = vadd.f32 %v2485_v36, %v2466_v47  ;;  %v2599_v28 = vpop.f32.mrf.mxu2  ;;  %4774 = vmatpush.xpose.msrb.mxu1 %v7932_v63  ;;  %v4266_v47 = vrot.slane %v10553_v46, 7  ;;  %v7913_v63 = vld [vmem:[%s12230_s2 + $0x850] sm:$0x3] }
 0x269   : > { %v2505_v40 = vpop.f32.mrf.mxu3  ;;  %v2600_v16 = vadd.f32 %v2599_v28, %v2580_v35  ;;  %v11043_v0 = vpop.f32.mrf.mxu0  ;;  %5143 = vmatpush.xpose.msrb.mxu0 %v7955_v55  ;;  %v5036_v35 = vrot.slane %v10855_v3, 3  ;;  %v7902_v28 = vld [vmem:[%s12230_s2 + $0x7f8] sm:$0x3]  ;;  %v7948_v55 = vld [vmem:[%s12230_s2 + $0x968] sm:$0x3] }
 0x26a   : > { %v2506_v31 = vadd.f32 %v2505_v40, %v2486_v27  ;;  %4335 = vmatpush.xpose.msra.mxu2 %v7889_v17  ;;  %v4077_v27 = vrot.slane %v10641_v42, 6  ;;  %v7979_v40 = vld [vmem:[%s12230_s2 + $0xa60] sm:$0x3] }
 0x26b   : > { %4241 = vmatpush.xpose.msrb.mxu3 %v7878_v41  ;;  %v7936_v41 = vld [vmem:[%s12230_s2 + $0x908] sm:$0xff] }
 0x26c   : > { %v11051_v36 = vadd.f32 %v2506_v31, %v10973_v39  ;;  %v11060_v48 = vpop.f32.mrf.mxu1  ;;  %5064 = vmatmul.f32.vlgmr.msra.gmra.mxu0 %v5032_v11  ;;  %v7975_v39 = vld [vmem:[%s12230_s2 + $0xa40] sm:$0x3]  ;;  %4775 = vmatpush.xpose.msrb.mxu1 %v7924_v4  ;;  %v2774_v31 = vadd.f32 %v10908_v32, %v10742_v60 }
 0x26d   : > { %4222 = vmatmul.f32.vlgmr.msrb.gmra.mxu2 %v4076_v10  ;;  %5256 = vmatpush.xpose.msra.mxu0 %v7975_v39  ;;  %v7905_v10 = vld [vmem:[%s12230_s2 + $0x810] sm:$0xff]  ;;  %v7971_v60 = vld [vmem:[%s12230_s2 + $0xa20] sm:$0xff]  ;;  %v4270_v39 = vrot.slane %v10595_v58, 7  ;;  %v7940_v58 = vld [vmem:[%s12230_s2 + $0x928] sm:$0xff] }
 0x26e   : > { %4162 = vmatmul.f32.vlgmr.msra.gmra.mxu3 %v4073_v2  ;;  %4414 = vmatpush.xpose.msrb.mxu2 %v7901_v44 }
 0x26f   : > { %4354 = vmatpush.xpose.msra.mxu3 %v7898_v6  ;;  %4696 = vmatmul.f32.vlgmr.msra.gmra.mxu1 %v4645_v15  ;;  %v7917_v15 = vld [vmem:[%s12230_s2 + $0x870] sm:$0x3] }
 0x270   : > { %v2679_v51 = vpop.f32.mrf.mxu2  ;;  %4888 = vmatpush.xpose.msra.mxu1 %v7944_v25  ;;  %v5226_v25 = vrot.slane %v10815_v7, 4 }
 0x271   : > { %v2619_v12 = vpop.f32.mrf.mxu3  ;;  %v11078_v52 = vpop.f32.mrf.mxu0  ;;  %5257 = vmatpush.xpose.msra.mxu0 %v7967_v50 }
 0x272   : > { %v2620_v1 = vadd.f32 %v2619_v12, %v2600_v16  ;;  %4415 = vmatpush.xpose.msrb.mxu2 %v7893_v45  ;;  %v4649_v16 = vrot.slane %v11025_v43, 1  ;;  %v855_v12 = vadd.f32 %v9760_v20, %v9740_v49  ;;  %v7909_v49 = vld [vmem:[%s12230_s2 + $0x830] sm:$0xff] }
 0x273   : > { %4355 = vmatpush.xpose.msra.mxu3 %v7890_v26  ;;  %v7914_v26 = vld [vmem:[%s12230_s2 + $0x858] sm:$0x3] }
 0x274   : > { %v2640_v17 = vadd.f32 %v10704_v59, %v2620_v1  ;;  %v11093_v46 = vpop.f32.mrf.mxu1  ;;  %5144 = vmatmul.f32.vlgmr.msrb.gmra.mxu0 %v5036_v35  ;;  %4889 = vmatpush.xpose.msra.mxu1 %v7936_v41  ;;  %v7960_v1 = vld [vmem:[%s12230_s2 + $0x9c8] sm:$0x3]  ;;  %v7929_v41 = vld [vmem:[%s12230_s2 + $0x8d0] sm:$0x3] }
 0x275   : > { %4336 = vmatmul.f32.vlgmr.msra.gmra.mxu2 %v4266_v47  ;;  %5336 = vmatpush.xpose.msrb.mxu0 %v7979_v40  ;;  %v884_v47 = vadd.f32 %v9838_v23, %v855_v12  ;;  %v5230_v40 = vrot.slane %v10855_v3, 4 }
 0x276   : > { %v2660_v59 = vadd.f32 %v10869_v22, %v2640_v17  ;;  %4242 = vmatmul.f32.vlgmr.msrb.gmra.mxu3 %v4077_v27  ;;  %4512 = vmatpush.xpose.msra.mxu2 %v7913_v63  ;;  %v7894_v22 = vld [vmem:[%s12230_s2 + $0x7b8] sm:$0xff]  ;;  %v7983_v17 = vld [vmem:[%s12230_s2 + $0xa80] sm:$0xff] }
 0x277   : > { %4434 = vmatpush.xpose.msrb.mxu3 %v7902_v28  ;;  %4776 = vmatmul.f32.vlgmr.msrb.gmra.mxu1 %v4649_v16  ;;  %v7906_v63 = vld [vmem:[%s12230_s2 + $0x818] sm:$0xff]  ;;  %v11154_v28 = vmax.f32 %v884_v47, 0.0  ;;  %v7976_v47 = vld [vmem:[%s12230_s2 + $0xa48] sm:$0x3] }
 0x278   : > { %v2680_v44 = vadd.f32 %v2679_v51, %v2660_v59  ;;  %v2793_v11 = vpop.f32.mrf.mxu2  ;;  %4968 = vmatpush.xpose.msrb.mxu1 %v7948_v55  ;;  %v4267_v51 = vrot.slane %v10601_v38, 7  ;;  %v7991_v38 = vld [vmem:[%s12230_s2 + $0xac0] sm:$0x3]  ;;  %v942_v59 = vadd.f32 %v9854_v5, %v9848_v54  ;;  %v4271_v55 = vrot.slane %v10641_v42, 7 }
 0x279   : > { %v2699_v2 = vpop.f32.mrf.mxu3  ;;  %v2794_v6 = vadd.f32 %v2793_v11, %v2774_v31  ;;  %v11114_v4 = vpop.f32.mrf.mxu0  ;;  %5337 = vmatpush.xpose.msrb.mxu0 %v7971_v60  ;;  %v7918_v31 = vld [vmem:[%s12230_s2 + $0x878] sm:$0x3]  ;;  %v7995_v54 = vld [vmem:[%s12230_s2 + $0xae0] sm:$0x3]  ;;  %v4843_v42 = vrot.slane %v11025_v43, 2 }
 0x27a   : > { %v2700_v32 = vadd.f32 %v2699_v2, %v2680_v44  ;;  %4513 = vmatpush.xpose.msra.mxu2 %v7905_v10  ;;  %v7952_v10 = vld [vmem:[%s12230_s2 + $0x988] sm:$0xff]  ;;  %v1203_v44 = vadd.f32 %v10030_v29, %v10016_v13  ;;  %v2952_v13 = vadd.f32 %v10982_v33, %v10813_v53  ;;  %v7910_v60 = vld [vmem:[%s12230_s2 + $0x838] sm:$0xff]  ;;  %v7987_v53 = vld [vmem:[%s12230_s2 + $0xaa0] sm:$0xff] }
 0x27b   : > { %4435 = vmatpush.xpose.msrb.mxu3 %v7894_v22  ;;  %v7921_v22 = vld [vmem:[%s12230_s2 + $0x890] sm:$0xff] }
 0x27c   : > { %v11122_v45 = vadd.f32 %v2700_v32, %v11051_v36  ;;  %v11133_v50 = vpop.f32.mrf.mxu1  ;;  %5258 = vmatmul.f32.vlgmr.msra.gmra.mxu0 %v5226_v25  ;;  %v4839_v36 = vrot.slane %v10987_v34, 2  ;;  %4969 = vmatpush.xpose.msrb.mxu1 %v7940_v58  ;;  %v1232_v29 = vadd.f32 %v10158_v30, %v1203_v44  ;;  %v5420_v25 = vrot.slane %v10815_v7, 5 }
 0x27d   : > { %4416 = vmatmul.f32.vlgmr.msrb.gmra.mxu2 %v4270_v39  ;;  %5450 = vmatpush.xpose.msra.mxu0 %v7991_v38  ;;  %v7930_v38 = vld [vmem:[%s12230_s2 + $0x8d8] sm:$0x3] }
 0x27e   : > { %4356 = vmatmul.f32.vlgmr.msra.gmra.mxu3 %v4267_v51  ;;  %4592 = vmatpush.xpose.msrb.mxu2 %v7917_v15  ;;  %v7933_v15 = vld [vmem:[%s12230_s2 + $0x8f0] sm:$0x3] }
 0x27f   : > { %4532 = vmatpush.xpose.msra.mxu3 %v7914_v26  ;;  %4890 = vmatmul.f32.vlgmr.msra.gmra.mxu1 %v4839_v36  ;;  %v12260_v26 = vld [vmem:[#allocation30_spill] sm:$0xff]  ;;  %v7956_v36 = vld [vmem:[%s12230_s2 + $0x9a8] sm:$0xff] }
 0x280   : > { %v2873_v20 = vpop.f32.mrf.mxu2  ;;  %5082 = vmatpush.xpose.msra.mxu1 %v7960_v1  ;;  %v1290_v58 = vadd.f32 %v12260_v26, %v10301_v37  ;;  %v8007_v37 = vld [vmem:[%s12230_s2 + $0xb40] sm:$0x3] }
 0x281   : > { %v2813_v35 = vpop.f32.mrf.mxu3  ;;  %v11152_v27 = vpop.f32.mrf.mxu0  ;;  %5451 = vmatpush.xpose.msra.mxu0 %v7983_v17  ;;  %v7922_v17 = vld [vmem:[%s12230_s2 + $0x898] sm:$0xff] }
 0x282   : > { %v2814_v23 = vadd.f32 %v2813_v35, %v2794_v6  ;;  %4593 = vmatpush.xpose.msrb.mxu2 %v7909_v49  ;;  %v7925_v49 = vld [vmem:[%s12230_s2 + $0x8b0] sm:$0xff] }
 0x283   : > { %4533 = vmatpush.xpose.msra.mxu3 %v7906_v63 }
 0x284   : > { %v2834_v16 = vadd.f32 %v10774_v14, %v2814_v23  ;;  %v11173_v11 = vpop.f32.mrf.mxu1  ;;  %5338 = vmatmul.f32.vlgmr.msrb.gmra.mxu0 %v5230_v40  ;;  %v7964_v14 = vld [vmem:[%s12230_s2 + $0x9e8] sm:$0x3]  ;;  %5083 = vmatpush.xpose.msra.mxu1 %v7952_v10 }
 0x285   : > { %4514 = vmatmul.f32.vlgmr.msra.gmra.mxu2 %v11154_v28  ;;  %5530 = vmatpush.xpose.msrb.mxu0 %v7995_v54  ;;  %v7934_v54 = vld [vmem:[%s12230_s2 + $0x8f8] sm:$0x3] }
 0x286   : > { %v2854_v5 = vadd.f32 %v10941_v24, %v2834_v16  ;;  %4436 = vmatmul.f32.vlgmr.msrb.gmra.mxu3 %v4271_v55  ;;  %4714 = vmatpush.xpose.msra.mxu2 %v7929_v41  ;;  %v971_v24 = vadd.f32 %v9859_v21, %v942_v59  ;;  %v11198_v21 = vmax.f32 %v1232_v29, 0.0  ;;  %v7999_v41 = vld [vmem:[%s12230_s2 + $0xb00] sm:$0xff]  ;;  %v4646_v16 = vrot.slane %v11154_v28, 1  ;;  %v7945_v55 = vld [vmem:[%s12230_s2 + $0x950] sm:$0x3] }
 0x287   : > { %4612 = vmatpush.xpose.msrb.mxu3 %v7918_v31  ;;  %4970 = vmatmul.f32.vlgmr.msrb.gmra.mxu1 %v4843_v42  ;;  %v5424_v31 = vrot.slane %v10855_v3, 5 }
 0x288   : > { %v2874_v2 = vadd.f32 %v2873_v20, %v2854_v5  ;;  %v2971_v6 = vpop.f32.mrf.mxu2  ;;  %5162 = vmatpush.xpose.msrb.mxu1 %v7964_v14  ;;  %v11204_v51 = vmax.f32 %v971_v24, 0.0  ;;  %v12261_v20 = vld [vmem:[#allocation31_spill] sm:$0xff]  ;;  %v7968_v5 = vld [vmem:[%s12230_s2 + $0xa08] sm:$0xff]  ;;  %v7937_v24 = vld [vmem:[%s12230_s2 + $0x910] sm:$0xff] }
 0x289   : > { %v2893_v30 = vpop.f32.mrf.mxu3  ;;  %v2972_v32 = vadd.f32 %v2971_v6, %v2952_v13  ;;  %v11196_v39 = vpop.f32.mrf.mxu0  ;;  %5531 = vmatpush.xpose.msrb.mxu0 %v7987_v53  ;;  %v1319_v63 = vadd.f32 %v12261_v20, %v1290_v58  ;;  %v8011_v14 = vld [vmem:[%s12230_s2 + $0xb60] sm:$0x3]  ;;  %v7980_v13 = vld [vmem:[%s12230_s2 + $0xa68] sm:$0x3]  ;;  %v7926_v6 = vld [vmem:[%s12230_s2 + $0x8b8] sm:$0xff]  ;;  %v4650_v53 = vrot.slane %v11198_v21, 1 }
 0x28a   : > { %v2894_v33 = vadd.f32 %v2893_v30, %v2874_v2  ;;  %4715 = vmatpush.xpose.msra.mxu2 %v7921_v22  ;;  %v3154_v22 = vadd.f32 %v11060_v48, %v10891_v62  ;;  %v8003_v62 = vld [vmem:[%s12230_s2 + $0xb20] sm:$0xff]  ;;  %v4647_v26 = vrot.slane %v11204_v51, 1  ;;  %v7946_v58 = vld [vmem:[%s12230_s2 + $0x958] sm:$0x3] }
 0x28b   : > { %4613 = vmatpush.xpose.msrb.mxu3 %v7910_v60  ;;  %v11245_v10 = vmax.f32 %v1319_v63, 0.0  ;;  %v7938_v20 = vld [vmem:[%s12230_s2 + $0x918] sm:$0xff] }
 0x28c   : > { %v11209_v12 = vadd.f32 %v2894_v33, %v11122_v45  ;;  %v11218_v1 = vpop.f32.mrf.mxu1  ;;  %5452 = vmatmul.f32.vlgmr.msra.gmra.mxu0 %v5420_v25  ;;  %v5033_v45 = vrot.slane %v10987_v34, 3  ;;  %5163 = vmatpush.xpose.msrb.mxu1 %v7956_v36  ;;  %v7949_v33 = vld [vmem:[%s12230_s2 + $0x970] sm:$0x3] }
 0x28d   : > { %4594 = vmatmul.f32.vlgmr.msrb.gmra.mxu2 %v11198_v21  ;;  %5644 = vmatpush.xpose.msra.mxu0 %v8007_v37  ;;  %v5227_v37 = vrot.slane %v10987_v34, 4 }
 0x28e   : > { %4534 = vmatmul.f32.vlgmr.msra.gmra.mxu3 %v11204_v51  ;;  %4794 = vmatpush.xpose.msrb.mxu2 %v7933_v15  ;;  %v5614_v15 = vrot.slane %v10815_v7, 6 }
 0x28f   : > { %4734 = vmatpush.xpose.msra.mxu3 %v7930_v38  ;;  %5084 = vmatmul.f32.vlgmr.msra.gmra.mxu1 %v5033_v45  ;;  %v7972_v38 = vld [vmem:[%s12230_s2 + $0xa28] sm:$0xff] }
 0x290   : > { %v3051_v35 = vpop.f32.mrf.mxu2  ;;  %5276 = vmatpush.xpose.msra.mxu1 %v7976_v47  ;;  %v7992_v45 = vld [vmem:[%s12230_s2 + $0xac8] sm:$0x3]  ;;  %v7941_v47 = vld [vmem:[%s12230_s2 + $0x930] sm:$0xff] }
 0x291   : > { %v2991_v23 = vpop.f32.mrf.mxu3  ;;  %v11238_v59 = vpop.f32.mrf.mxu0  ;;  %5645 = vmatpush.xpose.msra.mxu0 %v7999_v41  ;;  %v4840_v41 = vrot.slane %v11154_v28, 2 }
 0x292   : > { %v2992_v40 = vadd.f32 %v2991_v23, %v2972_v32  ;;  %4795 = vmatpush.xpose.msrb.mxu2 %v7925_v49 }
 0x293   : > { %4735 = vmatpush.xpose.msra.mxu3 %v7922_v17 }
 0x294   : > { %v3012_v44 = vadd.f32 %v10853_v8, %v2992_v40  ;;  %v11254_v42 = vpop.f32.mrf.mxu1  ;;  %5532 = vmatmul.f32.vlgmr.msrb.gmra.mxu0 %v5424_v31  ;;  %v5037_v8 = vrot.slane %v11025_v43, 3  ;;  %5277 = vmatpush.xpose.msra.mxu1 %v7968_v5  ;;  %v7961_v40 = vld [vmem:[%s12230_s2 + $0x9d0] sm:$0x3]  ;;  %v4651_v31 = vrot.slane %v11245_v10, 1 }
 0x295   : > { %4716 = vmatmul.f32.vlgmr.msra.gmra.mxu2 %v4646_v16  ;;  %5724 = vmatpush.xpose.msrb.mxu0 %v8011_v14  ;;  %v5618_v16 = vrot.slane %v10855_v3, 6  ;;  %v8027_v14 = vld [vmem:[%s12230_s2 + $0xbe0] sm:$0x3] }
 0x296   : > { %v3032_v29 = vadd.f32 %v11020_v18, %v3012_v44  ;;  %4614 = vmatmul.f32.vlgmr.msrb.gmra.mxu3 %v11245_v10  ;;  %4908 = vmatpush.xpose.msra.mxu2 %v7945_v55  ;;  %v7950_v44 = vld [vmem:[%s12230_s2 + $0x978] sm:$0x3] }
 0x297   : > { %4814 = vmatpush.xpose.msrb.mxu3 %v7934_v54  ;;  %5164 = vmatmul.f32.vlgmr.msrb.gmra.mxu1 %v5037_v8  ;;  %v7984_v54 = vld [vmem:[%s12230_s2 + $0xa88] sm:$0xff] }
 0x298   : > { %v3052_v2 = vadd.f32 %v3051_v35, %v3032_v29  ;;  %v3173_v18 = vpop.f32.mrf.mxu2  ;;  %5356 = vmatpush.xpose.msrb.mxu1 %v7980_v13  ;;  %v8015_v35 = vld [vmem:[%s12230_s2 + $0xb80] sm:$0xff]  ;;  %v5231_v29 = vrot.slane %v11025_v43, 4  ;;  %v7996_v8 = vld [vmem:[%s12230_s2 + $0xae8] sm:$0x3]  ;;  %v3348_v13 = vadd.f32 %v11133_v50, %v10965_v56 }
 0x299   : > { %v3071_v60 = vpop.f32.mrf.mxu3  ;;  %v3174_v30 = vadd.f32 %v3173_v18, %v3154_v22  ;;  %v11276_v32 = vpop.f32.mrf.mxu0  ;;  %5725 = vmatpush.xpose.msrb.mxu0 %v8003_v62  ;;  %v7953_v22 = vld [vmem:[%s12230_s2 + $0x990] sm:$0xff]  ;;  %v8019_v56 = vld [vmem:[%s12230_s2 + $0xba0] sm:$0xff] }
 0x29a   : > { %v3072_v48 = vadd.f32 %v3071_v60, %v3052_v2  ;;  %4909 = vmatpush.xpose.msra.mxu2 %v7937_v24  ;;  %v7965_v62 = vld [vmem:[%s12230_s2 + $0x9f0] sm:$0x3] }
 0x29b   : > { %4815 = vmatpush.xpose.msrb.mxu3 %v7926_v6 }
 0x29c   : > { %v11284_v25 = vadd.f32 %v3072_v48, %v11209_v12  ;;  %v11293_v36 = vpop.f32.mrf.mxu1  ;;  %5646 = vmatmul.f32.vlgmr.msra.gmra.mxu0 %v5614_v15  ;;  %v8023_v12 = vld [vmem:[%s12230_s2 + $0xbc0] sm:$0x3]  ;;  %5357 = vmatpush.xpose.msrb.mxu1 %v7972_v38  ;;  %v5808_v48 = vrot.slane %v10815_v7, 7  ;;  %v7962_v15 = vld [vmem:[%s12230_s2 + $0x9d8] sm:$0x3] }
 0x29d   : > { %4796 = vmatmul.f32.vlgmr.msrb.gmra.mxu2 %v4650_v53  ;;  %5838 = vmatpush.xpose.msra.mxu0 %v8023_v12  ;;  %v8039_v7 = vld [vmem:[%s12230_s2 + $0xc40] sm:$0x3]  ;;  %v8008_v38 = vld [vmem:[%s12230_s2 + $0xb48] sm:$0x3]  ;;  %v7957_v12 = vld [vmem:[%s12230_s2 + $0x9b0] sm:$0xff] }
 0x29e   : > { %4736 = vmatmul.f32.vlgmr.msra.gmra.mxu3 %v4647_v26  ;;  %4988 = vmatpush.xpose.msrb.mxu2 %v7949_v33  ;;  %v4841_v33 = vrot.slane %v11204_v51, 2  ;;  %v7988_v26 = vld [vmem:[%s12230_s2 + $0xaa8] sm:$0xff] }
 0x29f   : > { %4928 = vmatpush.xpose.msra.mxu3 %v7946_v58  ;;  %5278 = vmatmul.f32.vlgmr.msra.gmra.mxu1 %v5227_v37 }
 0x2a0   : > { %v3253_v49 = vpop.f32.mrf.mxu2  ;;  %5470 = vmatpush.xpose.msra.mxu1 %v7992_v45  ;;  %v7954_v45 = vld [vmem:[%s12230_s2 + $0x998] sm:$0xff] }
 0x2a1   : > { %v3193_v63 = vpop.f32.mrf.mxu3  ;;  %v11311_v23 = vpop.f32.mrf.mxu0  ;;  %5839 = vmatpush.xpose.msra.mxu0 %v8015_v35  ;;  %v12262_v35 = vld [vmem:[#allocation8_spill] sm:$0xff] }
 0x2a2   : > { %v3194_v17 = vadd.f32 %v3193_v63, %v3174_v30  ;;  %4989 = vmatpush.xpose.msrb.mxu2 %v7941_v47  ;;  %v4844_v30 = vrot.slane %v11198_v21, 2 }
 0x2a3   : > { %4929 = vmatpush.xpose.msra.mxu3 %v7938_v20 }
 0x2a4   : > { %v3214_v55 = vadd.f32 %v10926_v57, %v3194_v17  ;;  %v11326_v5 = vpop.f32.mrf.mxu1  ;;  %5726 = vmatmul.f32.vlgmr.msrb.gmra.mxu0 %v5618_v16  ;;  %5471 = vmatpush.xpose.msra.mxu1 %v7984_v54  ;;  %v12263_v17 = vld [vmem:[#allocation9_spill] sm:$0xff]  ;;  %v7966_v54 = vld [vmem:[%s12230_s2 + $0x9f8] sm:$0x3] }
 0x2a5   : > { %4910 = vmatmul.f32.vlgmr.msra.gmra.mxu2 %v4840_v41  ;;  %5918 = vmatpush.xpose.msrb.mxu0 %v8027_v14  ;;  %v684_v41 = vadd.f32 %v12263_v17, %v12262_v35  ;;  %v7977_v16 = vld [vmem:[%s12230_s2 + $0xa50] sm:$0x3]  ;;  %v8000_v14 = vld [vmem:[%s12230_s2 + $0xb08] sm:$0xff] }
 0x2a6   : > { %v3234_v57 = vadd.f32 %v11093_v46, %v3214_v55  ;;  %4816 = vmatmul.f32.vlgmr.msrb.gmra.mxu3 %v4651_v31  ;;  %5102 = vmatpush.xpose.msra.mxu2 %v7961_v40  ;;  %v7942_v46 = vld [vmem:[%s12230_s2 + $0x938] sm:$0xff]  ;;  %v5034_v40 = vrot.slane %v11154_v28, 3  ;;  %v5812_v55 = vrot.slane %v10855_v3, 7  ;;  %v8043_v3 = vld [vmem:[%s12230_s2 + $0xc60] sm:$0x3]  ;;  %v7973_v35 = vld [vmem:[%s12230_s2 + $0xa30] sm:$0xff] }
 0x2a7   : > { %5008 = vmatpush.xpose.msrb.mxu3 %v7950_v44  ;;  %5358 = vmatmul.f32.vlgmr.msrb.gmra.mxu1 %v5231_v29  ;;  %v4845_v44 = vrot.slane %v11245_v10, 2  ;;  %v5425_v29 = vrot.slane %v11025_v43, 5 }
 0x2a8   : > { %v3254_v24 = vadd.f32 %v3253_v49, %v3234_v57  ;;  %v3367_v2 = vpop.f32.mrf.mxu2  ;;  %5550 = vmatpush.xpose.msrb.mxu1 %v7996_v8  ;;  %v8031_v49 = vld [vmem:[%s12230_s2 + $0xc00] sm:$0xff]  ;;  %v8012_v8 = vld [vmem:[%s12230_s2 + $0xb68] sm:$0x3] }
 0x2a9   : > { %v3273_v18 = vpop.f32.mrf.mxu3  ;;  %v3368_v6 = vadd.f32 %v3367_v2, %v3348_v13  ;;  %v11347_v60 = vpop.f32.mrf.mxu0  ;;  %5919 = vmatpush.xpose.msrb.mxu0 %v8019_v56  ;;  %v12264_v13 = vld [vmem:[#allocation10_spill] sm:$0xff] }
 0x2aa   : > { %v3274_v50 = vadd.f32 %v3273_v18, %v3254_v24  ;;  %5103 = vmatpush.xpose.msra.mxu2 %v7953_v22  ;;  %v713_v22 = vadd.f32 %v12264_v13, %v684_v41  ;;  %v3542_v24 = vadd.f32 %v11218_v1, %v11043_v0  ;;  %v7969_v2 = vld [vmem:[%s12230_s2 + $0xa10] sm:$0xff]  ;;  %v7958_v18 = vld [vmem:[%s12230_s2 + $0x9b8] sm:$0xff]  ;;  %v8035_v0 = vld [vmem:[%s12230_s2 + $0xc20] sm:$0xff] }
 0x2ab   : > { %5009 = vmatpush.xpose.msrb.mxu3 %v7942_v46  ;;  %v7970_v41 = vld [vmem:[%s12230_s2 + $0xa18] sm:$0xff] }
 0x2ac   : > { %v11355_v53 = vadd.f32 %v3274_v50, %v11284_v25  ;;  %v11364_v58 = vpop.f32.mrf.mxu1  ;;  %5840 = vmatmul.f32.vlgmr.msra.gmra.mxu0 %v5808_v48  ;;  %v5421_v25 = vrot.slane %v10987_v34, 5  ;;  %5551 = vmatpush.xpose.msrb.mxu1 %v7988_v26  ;;  %v12266_v48 = vld [vmem:[#allocation21_spill] sm:$0xff] }
 0x2ad   : > { %4990 = vmatmul.f32.vlgmr.msrb.gmra.mxu2 %v4844_v30  ;;  %6016 = vmatpush.xpose.msra.mxu0 %v8039_v7  ;;  %v11423_v30 = vmax.f32 %v713_v22, 0.0  ;;  %v7981_v26 = vld [vmem:[%s12230_s2 + $0xa70] sm:$0x3] }
 0x2ae   : > { %4930 = vmatmul.f32.vlgmr.msra.gmra.mxu3 %v4841_v33  ;;  %5182 = vmatpush.xpose.msrb.mxu2 %v7965_v62  ;;  %v12265_v62 = vld [vmem:[#allocation20_spill] sm:$0xff] }
 0x2af   : > { %5122 = vmatpush.xpose.msra.mxu3 %v7962_v15  ;;  %5472 = vmatmul.f32.vlgmr.msra.gmra.mxu1 %v5421_v25  ;;  %v1032_v33 = vadd.f32 %v12266_v48, %v12265_v62  ;;  %v5038_v15 = vrot.slane %v11198_v21, 3  ;;  %v5035_v25 = vrot.slane %v11204_v51, 3  ;;  %v5232_v62 = vrot.slane %v11198_v21, 4  ;;  %v7997_v48 = vld [vmem:[%s12230_s2 + $0xaf0] sm:$0x3] }
 0x2b0   : > { %v3447_v37 = vpop.f32.mrf.mxu2  ;;  %5664 = vmatpush.xpose.msra.mxu1 %v8008_v38  ;;  %v7978_v38 = vld [vmem:[%s12230_s2 + $0xa58] sm:$0x3] }
 0x2b1   : > { %v3387_v47 = vpop.f32.mrf.mxu3  ;;  %v11382_v63 = vpop.f32.mrf.mxu0  ;;  %6017 = vmatpush.xpose.msra.mxu0 %v8031_v49  ;;  %v12267_v49 = vld [vmem:[#allocation22_spill] sm:$0xff] }
 0x2b2   : > { %v3388_v20 = vadd.f32 %v3387_v47, %v3368_v6  ;;  %5183 = vmatpush.xpose.msrb.mxu2 %v7957_v12  ;;  %v8004_v12 = vld [vmem:[%s12230_s2 + $0xb28] sm:$0xff] }
 0x2b3   : > { %5123 = vmatpush.xpose.msra.mxu3 %v7954_v45  ;;  %v5615_v45 = vrot.slane %v10987_v34, 6  ;;  %v8024_v47 = vld [vmem:[%s12230_s2 + $0xbc8] sm:$0x3] }
 0x2b4   : > { %v3408_v31 = vadd.f32 %v11005_v61, %v3388_v20  ;;  %v11399_v57 = vpop.f32.mrf.mxu1  ;;  %5920 = vmatmul.f32.vlgmr.msrb.gmra.mxu0 %v5812_v55  ;;  %5665 = vmatpush.xpose.msra.mxu1 %v8000_v14  ;;  %v1061_v20 = vadd.f32 %v12267_v49, %v1032_v33  ;;  %v7993_v14 = vld [vmem:[%s12230_s2 + $0xad0] sm:$0x3]  ;;  %v6188_v33 = vrot.slane %v11423_v30, 1 }
 0x2b5   : > { %5104 = vmatmul.f32.vlgmr.msra.gmra.mxu2 %v5034_v40  ;;  %6096 = vmatpush.xpose.msrb.mxu0 %v8043_v3 }
 0x2b6   : > { %v3428_v61 = vadd.f32 %v11173_v11, %v3408_v31  ;;  %5010 = vmatmul.f32.vlgmr.msrb.gmra.mxu3 %v4845_v44  ;;  %5296 = vmatpush.xpose.msra.mxu2 %v7977_v16  ;;  %v8047_v16 = vld [vmem:[%s12230_s2 + $0xc80] sm:$0xff]  ;;  %v11463_v44 = vmax.f32 %v1061_v20, 0.0  ;;  %v7986_v20 = vld [vmem:[%s12230_s2 + $0xa98] sm:$0xff] }
 0x2b7   : > { %5202 = vmatpush.xpose.msrb.mxu3 %v7966_v54  ;;  %5552 = vmatmul.f32.vlgmr.msrb.gmra.mxu1 %v5425_v29  ;;  %v5228_v54 = vrot.slane %v11154_v28, 4  ;;  %v7982_v29 = vld [vmem:[%s12230_s2 + $0xa78] sm:$0x3] }
 0x2b8   : > { %v3448_v11 = vadd.f32 %v3447_v37, %v3428_v61  ;;  %v3561_v46 = vpop.f32.mrf.mxu2  ;;  %5744 = vmatpush.xpose.msrb.mxu1 %v8012_v8  ;;  %v5039_v61 = vrot.slane %v11245_v10, 3  ;;  %v8016_v8 = vld [vmem:[%s12230_s2 + $0xb88] sm:$0xff] }
 0x2b9   : > { %v3467_v6 = vpop.f32.mrf.mxu3  ;;  %v3562_v56 = vadd.f32 %v3561_v46, %v3542_v24  ;;  %v11421_v50 = vpop.f32.mrf.mxu0  ;;  %6097 = vmatpush.xpose.msrb.mxu0 %v8035_v0  ;;  %v5619_v24 = vrot.slane %v11025_v43, 6  ;;  %v7985_v46 = vld [vmem:[%s12230_s2 + $0xa90] sm:$0xff] }
 0x2ba   : > { %v3468_v1 = vadd.f32 %v3467_v6, %v3448_v11  ;;  %5297 = vmatpush.xpose.msra.mxu2 %v7969_v2  ;;  %v8028_v2 = vld [vmem:[%s12230_s2 + $0xbe8] sm:$0x3]  ;;  %v3736_v11 = vadd.f32 %v11293_v36, %v11114_v4  ;;  %v8051_v4 = vld [vmem:[%s12230_s2 + $0xca0] sm:$0xff] }
 0x2bb   : > { %5203 = vmatpush.xpose.msrb.mxu3 %v7958_v18 }
 0x2bc   : > { %v11432_v7 = vadd.f32 %v3468_v1, %v11355_v53  ;;  %v11441_v37 = vpop.f32.mrf.mxu1  ;;  %6018 = vmatmul.f32.vlgmr.msra.gmra.mxu0 %v11423_v30  ;;  %v8055_v53 = vld [vmem:[%s12230_s2 + $0xcc0] sm:$0x3]  ;;  %5745 = vmatpush.xpose.msrb.mxu1 %v8004_v12 }
 0x2bd   : > { %5184 = vmatmul.f32.vlgmr.msrb.gmra.mxu2 %v5038_v15  ;;  %6218 = vmatpush.xpose.msra.mxu0 %v8055_v53  ;;  %v5809_v53 = vrot.slane %v10987_v34, 7  ;;  %v8063_v34 = vld [vmem:[%s12230_s2 + $0xd00] sm:$0xff] }
 0x2be   : > { %5124 = vmatmul.f32.vlgmr.msra.gmra.mxu3 %v5035_v25  ;;  %5376 = vmatpush.xpose.msrb.mxu2 %v7981_v26  ;;  %v5229_v26 = vrot.slane %v11204_v51, 4  ;;  %v7994_v25 = vld [vmem:[%s12230_s2 + $0xad8] sm:$0x3] }
 0x2bf   : > { %5316 = vmatpush.xpose.msra.mxu3 %v7978_v38  ;;  %5666 = vmatmul.f32.vlgmr.msra.gmra.mxu1 %v5615_v45  ;;  %v8020_v38 = vld [vmem:[%s12230_s2 + $0xba8] sm:$0xff] }
 0x2c0   : > { %v3641_v17 = vpop.f32.mrf.mxu2  ;;  %5858 = vmatpush.xpose.msra.mxu1 %v8024_v47  ;;  %v8040_v45 = vld [vmem:[%s12230_s2 + $0xc48] sm:$0x3]  ;;  %v7989_v47 = vld [vmem:[%s12230_s2 + $0xab0] sm:$0xff] }
 0x2c1   : > { %v3581_v40 = vpop.f32.mrf.mxu3  ;;  %v11461_v31 = vpop.f32.mrf.mxu0  ;;  %6219 = vmatpush.xpose.msra.mxu0 %v8047_v16 }
 0x2c2   : > { %v3582_v55 = vadd.f32 %v3581_v40, %v3562_v56  ;;  %5377 = vmatpush.xpose.msrb.mxu2 %v7973_v35  ;;  %v8009_v40 = vld [vmem:[%s12230_s2 + $0xb50] sm:$0x3] }
 0x2c3   : > { %5317 = vmatpush.xpose.msra.mxu3 %v7970_v41  ;;  %v5422_v41 = vrot.slane %v11154_v28, 5 }
 0x2c4   : > { %v3602_v3 = vadd.f32 %v11078_v52, %v3582_v55  ;;  %v11477_v13 = vpop.f32.mrf.mxu1  ;;  %6098 = vmatmul.f32.vlgmr.msrb.gmra.mxu0 %v11463_v44  ;;  %v8059_v52 = vld [vmem:[%s12230_s2 + $0xce0] sm:$0x3]  ;;  %5859 = vmatpush.xpose.msra.mxu1 %v8016_v8  ;;  %v6192_v55 = vrot.slane %v11463_v44, 1 }
 0x2c5   : > { %5298 = vmatmul.f32.vlgmr.msra.gmra.mxu2 %v5228_v54  ;;  %6298 = vmatpush.xpose.msrb.mxu0 %v8059_v52  ;;  %v8075_v8 = vld [vmem:[%s12230_s2 + $0xd60] sm:$0x3]  ;;  %v12269_v52 = vld [vmem:[#allocation12_spill] sm:$0xff] }
 0x2c6   : > { %v3622_v22 = vadd.f32 %v11254_v42, %v3602_v3  ;;  %5204 = vmatmul.f32.vlgmr.msrb.gmra.mxu3 %v5039_v61  ;;  %5490 = vmatpush.xpose.msra.mxu2 %v7993_v14  ;;  %v7974_v42 = vld [vmem:[%s12230_s2 + $0xa38] sm:$0xff]  ;;  %v5233_v14 = vrot.slane %v11245_v10, 4  ;;  %v8032_v61 = vld [vmem:[%s12230_s2 + $0xc08] sm:$0xff] }
 0x2c7   : > { %5396 = vmatpush.xpose.msrb.mxu3 %v7982_v29  ;;  %5746 = vmatmul.f32.vlgmr.msrb.gmra.mxu1 %v5619_v24  ;;  %v7998_v3 = vld [vmem:[%s12230_s2 + $0xaf8] sm:$0x3] }
 0x2c8   : > { %v3642_v18 = vadd.f32 %v3641_v17, %v3622_v22  ;;  %v3755_v6 = vpop.f32.mrf.mxu2  ;;  %5938 = vmatpush.xpose.msrb.mxu1 %v8028_v2  ;;  %v5813_v2 = vrot.slane %v11025_v43, 7  ;;  %v7990_v43 = vld [vmem:[%s12230_s2 + $0xab8] sm:$0xff] }
 0x2c9   : > { %v3661_v56 = vpop.f32.mrf.mxu3  ;;  %v3756_v0 = vadd.f32 %v3755_v6, %v3736_v11  ;;  %v11499_v1 = vpop.f32.mrf.mxu0  ;;  %6299 = vmatpush.xpose.msrb.mxu0 %v8051_v4  ;;  %v8044_v11 = vld [vmem:[%s12230_s2 + $0xc68] sm:$0x3] }
 0x2ca   : > { %v3662_v36 = vadd.f32 %v3661_v56, %v3642_v18  ;;  %5491 = vmatpush.xpose.msra.mxu2 %v7985_v46  ;;  %v3930_v46 = vadd.f32 %v11364_v58, %v11196_v39  ;;  %v8001_v18 = vld [vmem:[%s12230_s2 + $0xb10] sm:$0xff]  ;;  %v8067_v39 = vld [vmem:[%s12230_s2 + $0xd20] sm:$0xff] }
 0x2cb   : > { %5397 = vmatpush.xpose.msrb.mxu3 %v7974_v42  ;;  %v12270_v58 = vld [vmem:[#allocation13_spill] sm:$0xff] }
 0x2cc   : > { %v11507_v15 = vadd.f32 %v3662_v36, %v11432_v7  ;;  %v11516_v12 = vpop.f32.mrf.mxu1  ;;  %6220 = vmatmul.f32.vlgmr.msra.gmra.mxu0 %v6188_v33  ;;  %v8071_v7 = vld [vmem:[%s12230_s2 + $0xd40] sm:$0x3]  ;;  %5939 = vmatpush.xpose.msrb.mxu1 %v8020_v38  ;;  %v5426_v36 = vrot.slane %v11198_v21, 5  ;;  %v8036_v38 = vld [vmem:[%s12230_s2 + $0xc28] sm:$0xff] }
 0x2cd   : > { %5378 = vmatmul.f32.vlgmr.msrb.gmra.mxu2 %v5232_v62  ;;  %6412 = vmatpush.xpose.msra.mxu0 %v8071_v7  ;;  %v8013_v62 = vld [vmem:[%s12230_s2 + $0xb70] sm:$0x3] }
 0x2ce   : > { %5318 = vmatmul.f32.vlgmr.msra.gmra.mxu3 %v5229_v26  ;;  %5570 = vmatpush.xpose.msrb.mxu2 %v7997_v48  ;;  %v6382_v48 = vrot.slane %v11423_v30, 2  ;;  %v5423_v26 = vrot.slane %v11204_v51, 5 }
 0x2cf   : > { %5510 = vmatpush.xpose.msra.mxu3 %v7994_v25  ;;  %5860 = vmatmul.f32.vlgmr.msra.gmra.mxu1 %v5809_v53  ;;  %v8010_v25 = vld [vmem:[%s12230_s2 + $0xb58] sm:$0x3] }
 0x2d0   : > { %v3835_v49 = vpop.f32.mrf.mxu2  ;;  %6036 = vmatpush.xpose.msra.mxu1 %v8040_v45 }
 0x2d1   : > { %v3775_v35 = vpop.f32.mrf.mxu3  ;;  %v11538_v16 = vpop.f32.mrf.mxu0  ;;  %6413 = vmatpush.xpose.msra.mxu0 %v8063_v34  ;;  %v8005_v34 = vld [vmem:[%s12230_s2 + $0xb30] sm:$0xff] }
 0x2d2   : > { %v3776_v17 = vadd.f32 %v3775_v35, %v3756_v0  ;;  %5571 = vmatpush.xpose.msrb.mxu2 %v7989_v47  ;;  %v12271_v47 = vld [vmem:[#allocation23_spill] sm:$0xff]  ;;  %v8056_v35 = vld [vmem:[%s12230_s2 + $0xcc8] sm:$0x3] }
 0x2d3   : > { %5511 = vmatpush.xpose.msra.mxu3 %v7986_v20 }
 0x2d4   : > { %v3796_v54 = vadd.f32 %v11152_v27, %v3776_v17  ;;  %v11549_v29 = vpop.f32.mrf.mxu1  ;;  %6300 = vmatmul.f32.vlgmr.msrb.gmra.mxu0 %v6192_v55  ;;  %v12268_v27 = vld [vmem:[#allocation11_spill] sm:$0xff]  ;;  %6037 = vmatpush.xpose.msra.mxu1 %v8032_v61  ;;  %v5616_v61 = vrot.slane %v11154_v28, 6 }
 0x2d5   : > { %5492 = vmatmul.f32.vlgmr.msra.gmra.mxu2 %v5422_v41  ;;  %v771_v22 = vadd.f32 %v12269_v52, %v12268_v27  ;;  %6492 = vmatpush.xpose.msrb.mxu0 %v8075_v8  ;;  %v8002_v41 = vld [vmem:[%s12230_s2 + $0xb18] sm:$0xff]  ;;  %v8079_v55 = vld [vmem:[%s12230_s2 + $0xd80] sm:$0xff]  ;;  %v8025_v8 = vld [vmem:[%s12230_s2 + $0xbd0] sm:$0x3]  ;;  %v6386_v27 = vrot.slane %v11463_v44, 2 }
 0x2d6   : > { %v3816_v24 = vadd.f32 %v11326_v5, %v3796_v54  ;;  %5398 = vmatmul.f32.vlgmr.msrb.gmra.mxu3 %v5233_v14  ;;  %5684 = vmatpush.xpose.msra.mxu2 %v8009_v40  ;;  %v12273_v54 = vld [vmem:[#allocation25_spill] sm:$0xff] }
 0x2d7   : > { %5590 = vmatpush.xpose.msrb.mxu3 %v7998_v3  ;;  %5940 = vmatmul.f32.vlgmr.msrb.gmra.mxu1 %v5813_v2  ;;  %v800_v0 = vadd.f32 %v12270_v58, %v771_v22  ;;  %v5427_v22 = vrot.slane %v11245_v10, 5  ;;  %v8048_v2 = vld [vmem:[%s12230_s2 + $0xc88] sm:$0xff] }
 0x2d8   : > { %v3836_v6 = vadd.f32 %v3835_v49, %v3816_v24  ;;  %v3949_v42 = vpop.f32.mrf.mxu2  ;;  %6116 = vmatpush.xpose.msrb.mxu1 %v8044_v11  ;;  %v12272_v49 = vld [vmem:[#allocation24_spill] sm:$0xff]  ;;  %v8014_v24 = vld [vmem:[%s12230_s2 + $0xb78] sm:$0x3] }
 0x2d9   : > { %v3855_v5 = vpop.f32.mrf.mxu3  ;;  %v3950_v56 = vadd.f32 %v3949_v42, %v3930_v46  ;;  %6493 = vmatpush.xpose.msrb.mxu0 %v8067_v39  ;;  %v11590_v53 = vpop.f32.mrf.mxu0  ;;  %v11595_v45 = vmax.f32 %v800_v0, 0.0  ;;  %v1119_v20 = vadd.f32 %v12272_v49, %v12271_v47  ;;  %v8091_v46 = vld [vmem:[%s12230_s2 + $0xde0] sm:$0x3]  ;;  %v4124_v42 = vadd.f32 %v11441_v37, %v11276_v32  ;;  %v8072_v49 = vld [vmem:[%s12230_s2 + $0xd48] sm:$0x3] }
 0x2da   : > { %v3856_v4 = vadd.f32 %v3855_v5, %v3836_v6  ;;  %5685 = vmatpush.xpose.msra.mxu2 %v8001_v18  ;;  %v8060_v6 = vld [vmem:[%s12230_s2 + $0xce8] sm:$0x3]  ;;  %v8017_v5 = vld [vmem:[%s12230_s2 + $0xb90] sm:$0xff]  ;;  %v8083_v32 = vld [vmem:[%s12230_s2 + $0xda0] sm:$0xff] }
 0x2db   : > { %5591 = vmatpush.xpose.msrb.mxu3 %v7990_v43  ;;  %v1148_v14 = vadd.f32 %v12273_v54, %v1119_v20  ;;  %v6189_v47 = vrot.slane %v11595_v45, 1  ;;  %v8021_v20 = vld [vmem:[%s12230_s2 + $0xbb0] sm:$0xff]  ;;  %v5810_v54 = vrot.slane %v11154_v28, 7 }
 0x2dc   : > { %v11579_v33 = vadd.f32 %v3856_v4, %v11507_v15  ;;  %v11588_v7 = vpop.f32.mrf.mxu1  ;;  %6414 = vmatmul.f32.vlgmr.msra.gmra.mxu0 %v6382_v48  ;;  %v8087_v15 = vld [vmem:[%s12230_s2 + $0xdc0] sm:$0x3]  ;;  %6117 = vmatpush.xpose.msrb.mxu1 %v8036_v38  ;;  %v5620_v4 = vrot.slane %v11198_v21, 6  ;;  %v8052_v38 = vld [vmem:[%s12230_s2 + $0xca8] sm:$0xff] }
 0x2dd   : > { %5572 = vmatmul.f32.vlgmr.msrb.gmra.mxu2 %v5426_v36  ;;  %6606 = vmatpush.xpose.msra.mxu0 %v8087_v15  ;;  %v8029_v36 = vld [vmem:[%s12230_s2 + $0xbf0] sm:$0x3] }
 0x2de   : > { %5512 = vmatmul.f32.vlgmr.msra.gmra.mxu3 %v5423_v26  ;;  %5764 = vmatpush.xpose.msrb.mxu2 %v8013_v62  ;;  %v6576_v62 = vrot.slane %v11423_v30, 3  ;;  %v5617_v26 = vrot.slane %v11204_v51, 6 }
 0x2df   : > { %5704 = vmatpush.xpose.msra.mxu3 %v8010_v25  ;;  %6038 = vmatmul.f32.vlgmr.msra.gmra.mxu1 %v11595_v45  ;;  %v8026_v25 = vld [vmem:[%s12230_s2 + $0xbd8] sm:$0x3] }
 0x2e0   : > { %v4029_v17 = vpop.f32.mrf.mxu2  ;;  %6238 = vmatpush.xpose.msra.mxu1 %v8056_v35 }
 0x2e1   : > { %v3969_v40 = vpop.f32.mrf.mxu3  ;;  %6607 = vmatpush.xpose.msra.mxu0 %v8079_v55  ;;  %v11639_v43 = vpop.f32.mrf.mxu0 }
 0x2e2   : > { %v3970_v3 = vadd.f32 %v3969_v40, %v3950_v56  ;;  %5765 = vmatpush.xpose.msrb.mxu2 %v8005_v34  ;;  %v8018_v34 = vld [vmem:[%s12230_s2 + $0xb98] sm:$0xff]  ;;  %v8095_v40 = vld [vmem:[%s12230_s2 + $0xe00] sm:$0xff] }
 0x2e3   : > { %5705 = vmatpush.xpose.msra.mxu3 %v8002_v41 }
 0x2e4   : > { %v3990_v52 = vadd.f32 %v11238_v59, %v3970_v3  ;;  %v11626_v11 = vpop.f32.mrf.mxu1  ;;  %6494 = vmatmul.f32.vlgmr.msrb.gmra.mxu0 %v6386_v27  ;;  %v11631_v59 = vmax.f32 %v1148_v14, 0.0  ;;  %6239 = vmatpush.xpose.msra.mxu1 %v8048_v2  ;;  %v8041_v14 = vld [vmem:[%s12230_s2 + $0xc50] sm:$0x3]  ;;  %v6580_v3 = vrot.slane %v11463_v44, 3  ;;  %v8030_v27 = vld [vmem:[%s12230_s2 + $0xbf8] sm:$0x3] }
 0x2e5   : > { %5686 = vmatmul.f32.vlgmr.msra.gmra.mxu2 %v5616_v61  ;;  %6686 = vmatpush.xpose.msrb.mxu0 %v8091_v46  ;;  %v8076_v2 = vld [vmem:[%s12230_s2 + $0xd68] sm:$0x3]  ;;  %v4318_v46 = vadd.f32 %v11516_v12, %v11347_v60  ;;  %v8099_v60 = vld [vmem:[%s12230_s2 + $0xe20] sm:$0xff] }
 0x2e6   : > { %v4010_v18 = vadd.f32 %v11399_v57, %v3990_v52  ;;  %5592 = vmatmul.f32.vlgmr.msrb.gmra.mxu3 %v5427_v22  ;;  %5878 = vmatpush.xpose.msra.mxu2 %v8025_v8  ;;  %v8006_v57 = vld [vmem:[%s12230_s2 + $0xb38] sm:$0xff]  ;;  %v5621_v8 = vrot.slane %v11245_v10, 6  ;;  %v8064_v52 = vld [vmem:[%s12230_s2 + $0xd08] sm:$0xff]  ;;  %v8107_v22 = vld [vmem:[%s12230_s2 + $0xe60] sm:$0x3] }
 0x2e7   : > { %5784 = vmatpush.xpose.msrb.mxu3 %v8014_v24  ;;  %6118 = vmatmul.f32.vlgmr.msrb.gmra.mxu1 %v11631_v59  ;;  %v6193_v24 = vrot.slane %v11631_v59, 1 }
 0x2e8   : > { %v4030_v56 = vadd.f32 %v4029_v17, %v4010_v18  ;;  %v4143_v39 = vpop.f32.mrf.mxu2  ;;  %6318 = vmatpush.xpose.msrb.mxu1 %v8060_v6  ;;  %v8033_v18 = vld [vmem:[%s12230_s2 + $0xc10] sm:$0xff] }
 0x2e9   : > { %v4049_v58 = vpop.f32.mrf.mxu3  ;;  %v4144_v0 = vadd.f32 %v4143_v39, %v4124_v42  ;;  %6687 = vmatpush.xpose.msrb.mxu0 %v8083_v32  ;;  %v11681_v41 = vpop.f32.mrf.mxu0  ;;  %v5814_v39 = vrot.slane %v11198_v21, 7  ;;  %v8068_v21 = vld [vmem:[%s12230_s2 + $0xd28] sm:$0xff] }
 0x2ea   : > { %v4050_v37 = vadd.f32 %v4049_v58, %v4030_v56  ;;  %5879 = vmatpush.xpose.msra.mxu2 %v8017_v5  ;;  %v8045_v58 = vld [vmem:[%s12230_s2 + $0xc70] sm:$0x3] }
 0x2eb   : > { %5785 = vmatpush.xpose.msrb.mxu3 %v8006_v57 }
 0x2ec   : > { %v11657_v48 = vadd.f32 %v4050_v37, %v11579_v33  ;;  %v11666_v15 = vpop.f32.mrf.mxu1  ;;  %6608 = vmatmul.f32.vlgmr.msra.gmra.mxu0 %v6576_v62  ;;  %v8103_v33 = vld [vmem:[%s12230_s2 + $0xe40] sm:$0x3]  ;;  %6319 = vmatpush.xpose.msrb.mxu1 %v8052_v38  ;;  %v5811_v37 = vrot.slane %v11204_v51, 7  ;;  %v8088_v38 = vld [vmem:[%s12230_s2 + $0xdc8] sm:$0x3] }
 0x2ed   : > { %5766 = vmatmul.f32.vlgmr.msrb.gmra.mxu2 %v5620_v4  ;;  %6800 = vmatpush.xpose.msra.mxu0 %v8103_v33  ;;  %v8042_v4 = vld [vmem:[%s12230_s2 + $0xc58] sm:$0x3]  ;;  %v12275_v62 = vld [vmem:[#allocation15_spill] sm:$0xff]  ;;  %v12276_v33 = vld [vmem:[#allocation16_spill] sm:$0xff] }
 0x2ee   : > { %5706 = vmatmul.f32.vlgmr.msra.gmra.mxu3 %v5617_v26  ;;  %5958 = vmatpush.xpose.msrb.mxu2 %v8029_v36  ;;  %v12274_v36 = vld [vmem:[#allocation14_spill] sm:$0xff]  ;;  %v8119_v51 = vld [vmem:[%s12230_s2 + $0xec0] sm:$0x3] }
 0x2ef   : > { %5898 = vmatpush.xpose.msra.mxu3 %v8026_v25  ;;  %6240 = vmatmul.f32.vlgmr.msra.gmra.mxu1 %v6189_v47  ;;  %v858_v26 = vadd.f32 %v12275_v62, %v12274_v36  ;;  %v8061_v62 = vld [vmem:[%s12230_s2 + $0xcf0] sm:$0x3] }
 0x2f0   : > { %v4223_v35 = vpop.f32.mrf.mxu2  ;;  %6432 = vmatpush.xpose.msra.mxu1 %v8072_v49  ;;  %v8037_v49 = vld [vmem:[%s12230_s2 + $0xc30] sm:$0xff] }
 0x2f1   : > { %v4163_v17 = vpop.f32.mrf.mxu3  ;;  %6801 = vmatpush.xpose.msra.mxu0 %v8095_v40  ;;  %v11721_v57 = vpop.f32.mrf.mxu0  ;;  %v887_v47 = vadd.f32 %v12276_v33, %v858_v26  ;;  %v6964_v26 = vrot.slane %v11423_v30, 5 }
 0x2f2   : > { %v4164_v55 = vadd.f32 %v4163_v17, %v4144_v0  ;;  %5959 = vmatpush.xpose.msrb.mxu2 %v8021_v20  ;;  %v6770_v0 = vrot.slane %v11423_v30, 4  ;;  %v8111_v17 = vld [vmem:[%s12230_s2 + $0xe80] sm:$0xff] }
 0x2f3   : > { %5899 = vmatpush.xpose.msra.mxu3 %v8018_v34 }
 0x2f4   : > { %v4184_v61 = vadd.f32 %v11311_v23, %v4164_v55  ;;  %v11699_v28 = vpop.f32.mrf.mxu1  ;;  %6688 = vmatmul.f32.vlgmr.msrb.gmra.mxu0 %v6580_v3  ;;  %6433 = vmatpush.xpose.msra.mxu1 %v8064_v52  ;;  %v11758_v55 = vmax.f32 %v887_v47, 0.0  ;;  %v12277_v3 = vld [vmem:[#allocation17_spill] sm:$0xff]  ;;  %v5815_v52 = vrot.slane %v11245_v10, 7  ;;  %v8123_v10 = vld [vmem:[%s12230_s2 + $0xee0] sm:$0x3] }
 0x2f5   : > { %5880 = vmatmul.f32.vlgmr.msra.gmra.mxu2 %v5810_v54  ;;  %6880 = vmatpush.xpose.msrb.mxu0 %v8107_v22  ;;  %v8057_v54 = vld [vmem:[%s12230_s2 + $0xcd0] sm:$0x3]  ;;  %v8046_v22 = vld [vmem:[%s12230_s2 + $0xc78] sm:$0x3] }
 0x2f6   : > { %v4204_v23 = vadd.f32 %v11477_v13, %v4184_v61  ;;  %5786 = vmatmul.f32.vlgmr.msrb.gmra.mxu3 %v5621_v8  ;;  %6056 = vmatpush.xpose.msra.mxu2 %v8041_v14  ;;  %v8022_v13 = vld [vmem:[%s12230_s2 + $0xbb8] sm:$0xff]  ;;  %v6774_v14 = vrot.slane %v11463_v44, 4 }
 0x2f7   : > { %5978 = vmatpush.xpose.msrb.mxu3 %v8030_v27  ;;  %6320 = vmatmul.f32.vlgmr.msrb.gmra.mxu1 %v6193_v24  ;;  %v12278_v61 = vld [vmem:[#allocation18_spill] sm:$0xff] }
 0x2f8   : > { %v4224_v6 = vadd.f32 %v4223_v35, %v4204_v23  ;;  %v4337_v42 = vpop.f32.mrf.mxu2  ;;  %6512 = vmatpush.xpose.msrb.mxu1 %v8076_v2  ;;  %v8034_v35 = vld [vmem:[%s12230_s2 + $0xc18] sm:$0xff]  ;;  %v945_v8 = vadd.f32 %v12278_v61, %v12277_v3  ;;  %v8080_v23 = vld [vmem:[%s12230_s2 + $0xd88] sm:$0xff]  ;;  %v8127_v61 = vld [vmem:[%s12230_s2 + $0xf00] sm:$0xff] }
 0x2f9   : > { %v4243_v5 = vpop.f32.mrf.mxu3  ;;  %v4338_v56 = vadd.f32 %v4337_v42, %v4318_v46  ;;  %6881 = vmatpush.xpose.msrb.mxu0 %v8099_v60  ;;  %v12279_v24 = vld [vmem:[#allocation26_spill] sm:$0xff]  ;;  %v12280_v2 = vld [vmem:[#allocation27_spill] sm:$0xff]  ;;  %v6387_v42 = vrot.slane %v11631_v59, 2  ;;  %v4496_v60 = vadd.f32 %v11588_v7, %v11421_v50 }
 0x2fa   : > { %v4244_v12 = vadd.f32 %v4243_v5, %v4224_v6  ;;  %6057 = vmatpush.xpose.msra.mxu2 %v8033_v18  ;;  %v1206_v46 = vadd.f32 %v12280_v2, %v12279_v24  ;;  %v11777_v18 = vpop.f32.mrf.mxu0  ;;  %v12281_v5 = vld [vmem:[#allocation28_spill] sm:$0xff]  ;;  %v8058_v47 = vld [vmem:[%s12230_s2 + $0xcd8] sm:$0x3] }
 0x2fb   : > { %5979 = vmatpush.xpose.msrb.mxu3 %v8022_v13  ;;  %v8092_v13 = vld [vmem:[%s12230_s2 + $0xde8] sm:$0x3]  ;;  %v8115_v50 = vld [vmem:[%s12230_s2 + $0xea0] sm:$0xff]  ;;  %v8062_v24 = vld [vmem:[%s12230_s2 + $0xcf8] sm:$0x3] }
 0x2fc   : > { %v11728_v32 = vadd.f32 %v4244_v12, %v11657_v48  ;;  %v11739_v25 = vpop.f32.mrf.mxu1  ;;  %6802 = vmatmul.f32.vlgmr.msra.gmra.mxu0 %v6770_v0  ;;  %v6383_v48 = vrot.slane %v11595_v45, 2  ;;  %6513 = vmatpush.xpose.msrb.mxu1 %v8068_v21  ;;  %v8049_v12 = vld [vmem:[%s12230_s2 + $0xc90] sm:$0xff]  ;;  %v8096_v2 = vld [vmem:[%s12230_s2 + $0xe08] sm:$0xff] }
 0x2fd   : > { %5960 = vmatmul.f32.vlgmr.msrb.gmra.mxu2 %v5814_v39  ;;  %6994 = vmatpush.xpose.msra.mxu0 %v8119_v51 }
 0x2fe   : > { %5900 = vmatmul.f32.vlgmr.msra.gmra.mxu3 %v5811_v37  ;;  %6136 = vmatpush.xpose.msrb.mxu2 %v8045_v58  ;;  %v8038_v37 = vld [vmem:[%s12230_s2 + $0xc38] sm:$0xff] }
 0x2ff   : > { %6076 = vmatpush.xpose.msra.mxu3 %v8042_v4  ;;  %6434 = vmatmul.f32.vlgmr.msra.gmra.mxu1 %v6383_v48  ;;  %v12283_v48 = vld [vmem:[#allocation29_spill] sm:$0xff] }
 0x300   : > { %v4417_v20 = vpop.f32.mrf.mxu2  ;;  %6626 = vmatpush.xpose.msra.mxu1 %v8088_v38  ;;  %v1293_v38 = vadd.f32 %v10535_v9, %v12283_v48  ;;  %v8135_v9 = vld [vmem:[%s12230_s2 + $0xf40] sm:$0x3] }
 0x301   : > { %v4357_v34 = vpop.f32.mrf.mxu3  ;;  %6995 = vmatpush.xpose.msra.mxu0 %v8111_v17  ;;  %v8053_v17 = vld [vmem:[%s12230_s2 + $0xcb0] sm:$0xff] }
 0x302   : > { %v4358_v40 = vadd.f32 %v4357_v34, %v4338_v56  ;;  %6137 = vmatpush.xpose.msrb.mxu2 %v8037_v49  ;;  %v1235_v56 = vadd.f32 %v12281_v5, %v1206_v46  ;;  %v8084_v49 = vld [vmem:[%s12230_s2 + $0xda8] sm:$0xff]  ;;  %v11832_v34 = vpop.f32.mrf.mxu0  ;;  %v8065_v5 = vld [vmem:[%s12230_s2 + $0xd10] sm:$0xff] }
 0x303   : > { %6077 = vmatpush.xpose.msra.mxu3 %v8034_v35  ;;  %v8104_v35 = vld [vmem:[%s12230_s2 + $0xe48] sm:$0x3] }
 0x304   : > { %v4378_v27 = vadd.f32 %v11382_v63, %v4358_v40  ;;  %v11779_v6 = vpop.f32.mrf.mxu1  ;;  %6882 = vmatmul.f32.vlgmr.msrb.gmra.mxu0 %v6774_v14  ;;  %6627 = vmatpush.xpose.msra.mxu1 %v8080_v23  ;;  %v11802_v36 = vmax.f32 %v1235_v56, 0.0  ;;  %v1322_v40 = vadd.f32 %v10570_v19, %v1293_v38  ;;  %v8050_v14 = vld [vmem:[%s12230_s2 + $0xc98] sm:$0xff]  ;;  %v8073_v19 = vld [vmem:[%s12230_s2 + $0xd50] sm:$0x3]  ;;  %v6771_v38 = vrot.slane %v11595_v45, 4 }
 0x305   : > { %6058 = vmatmul.f32.vlgmr.msra.gmra.mxu2 %v11758_v55  ;;  %7074 = vmatpush.xpose.msrb.mxu0 %v8123_v10  ;;  %v8139_v10 = vld [vmem:[%s12230_s2 + $0xf60] sm:$0x3] }
 0x306   : > { %v4398_v63 = vadd.f32 %v11549_v29, %v4378_v27  ;;  %5980 = vmatmul.f32.vlgmr.msrb.gmra.mxu3 %v5815_v52  ;;  %6258 = vmatpush.xpose.msra.mxu2 %v8057_v54  ;;  %v12282_v29 = vld [vmem:[#allocation19_spill] sm:$0xff]  ;;  %v6190_v27 = vrot.slane %v11758_v55, 1  ;;  %v6968_v52 = vrot.slane %v11463_v44, 5 }
 0x307   : > { %6156 = vmatpush.xpose.msrb.mxu3 %v8046_v22  ;;  %v974_v39 = vadd.f32 %v12282_v29, %v945_v8  ;;  %6514 = vmatmul.f32.vlgmr.msrb.gmra.mxu1 %v6387_v42  ;;  %v11849_v22 = vmax.f32 %v1322_v40, 0.0  ;;  %v8108_v42 = vld [vmem:[%s12230_s2 + $0xe68] sm:$0x3]  ;;  %v6384_v40 = vrot.slane %v11758_v55, 2 }
 0x308   : > { %v4418_v58 = vadd.f32 %v4417_v20, %v4398_v63  ;;  %v4515_v0 = vpop.f32.mrf.mxu2  ;;  %6706 = vmatpush.xpose.msrb.mxu1 %v8092_v13  ;;  %v4698_v13 = vadd.f32 %v11666_v15, %v11499_v1  ;;  %v8131_v1 = vld [vmem:[%s12230_s2 + $0xf20] sm:$0xff] }
 0x309   : > { %v4437_v4 = vpop.f32.mrf.mxu3  ;;  %v4516_v21 = vadd.f32 %v4515_v0, %v4496_v60  ;;  %v11808_v51 = vmax.f32 %v974_v39, 0.0  ;;  %7075 = vmatpush.xpose.msrb.mxu0 %v8115_v50  ;;  %v8054_v60 = vld [vmem:[%s12230_s2 + $0xcb8] sm:$0xff]  ;;  %v8077_v0 = vld [vmem:[%s12230_s2 + $0xd70] sm:$0x3] }
 0x30a   : > { %v4438_v7 = vadd.f32 %v4437_v4, %v4418_v58  ;;  %6259 = vmatpush.xpose.msra.mxu2 %v8049_v12  ;;  %v11877_v39 = vpop.f32.mrf.mxu0  ;;  %v6194_v58 = vrot.slane %v11802_v36, 1  ;;  %v8074_v50 = vld [vmem:[%s12230_s2 + $0xd58] sm:$0x3] }
 0x30b   : > { %6157 = vmatpush.xpose.msrb.mxu3 %v8038_v37  ;;  %v7158_v37 = vrot.slane %v11423_v30, 6 }
 0x30c   : > { %v11813_v33 = vadd.f32 %v4438_v7, %v11728_v32  ;;  %v11822_v20 = vpop.f32.mrf.mxu1  ;;  %6996 = vmatmul.f32.vlgmr.msra.gmra.mxu0 %v6964_v26  ;;  %v6577_v32 = vrot.slane %v11595_v45, 3  ;;  %6707 = vmatpush.xpose.msrb.mxu1 %v8084_v49  ;;  %v8100_v7 = vld [vmem:[%s12230_s2 + $0xe28] sm:$0xff]  ;;  %v8151_v26 = vld [vmem:[%s12230_s2 + $0xfc0] sm:$0x3] }
 0x30d   : > { %6138 = vmatmul.f32.vlgmr.msrb.gmra.mxu2 %v11802_v36  ;;  %7188 = vmatpush.xpose.msra.mxu0 %v8135_v9 }
 0x30e   : > { %6078 = vmatmul.f32.vlgmr.msra.gmra.mxu3 %v11808_v51  ;;  %6338 = vmatpush.xpose.msrb.mxu2 %v8061_v62 }
 0x30f   : > { %6278 = vmatpush.xpose.msra.mxu3 %v8058_v47  ;;  %6628 = vmatmul.f32.vlgmr.msra.gmra.mxu1 %v6577_v32  ;;  %v8069_v47 = vld [vmem:[%s12230_s2 + $0xd30] sm:$0xff]  ;;  %v8143_v32 = vld [vmem:[%s12230_s2 + $0xf80] sm:$0xff] }
 0x310   : > { %v4595_v54 = vpop.f32.mrf.mxu2  ;;  %6820 = vmatpush.xpose.msra.mxu1 %v8104_v35 }
 0x311   : > { %v4535_v3 = vpop.f32.mrf.mxu3  ;;  %7189 = vmatpush.xpose.msra.mxu0 %v8127_v61  ;;  %v6195_v61 = vrot.slane %v11849_v22, 1 }
 0x312   : > { %v4536_v8 = vadd.f32 %v4535_v3, %v4516_v21  ;;  %6339 = vmatpush.xpose.msrb.mxu2 %v8053_v17  ;;  %v6191_v21 = vrot.slane %v11808_v51, 1  ;;  %v11916_v17 = vpop.f32.mrf.mxu0 }
 0x313   : > { %6279 = vmatpush.xpose.msra.mxu3 %v8050_v14  ;;  %v7162_v14 = vrot.slane %v11463_v44, 6 }
 0x314   : > { %v4556_v23 = vadd.f32 %v11461_v31, %v4536_v8  ;;  %v11858_v46 = vpop.f32.mrf.mxu1  ;;  %7076 = vmatmul.f32.vlgmr.msrb.gmra.mxu0 %v6968_v52  ;;  %v6581_v31 = vrot.slane %v11631_v59, 3  ;;  %6821 = vmatpush.xpose.msra.mxu1 %v8096_v2  ;;  %v8078_v8 = vld [vmem:[%s12230_s2 + $0xd78] sm:$0x3]  ;;  %v8155_v52 = vld [vmem:[%s12230_s2 + $0xfe0] sm:$0x3]  ;;  %v4892_v2 = vadd.f32 %v11739_v25, %v11590_v53 }
 0x315   : > { %6260 = vmatmul.f32.vlgmr.msra.gmra.mxu2 %v6190_v27  ;;  %7268 = vmatpush.xpose.msrb.mxu0 %v8139_v10  ;;  %v8112_v27 = vld [vmem:[%s12230_s2 + $0xe88] sm:$0xff]  ;;  %v8081_v10 = vld [vmem:[%s12230_s2 + $0xd90] sm:$0xff]  ;;  %v8147_v53 = vld [vmem:[%s12230_s2 + $0xfa0] sm:$0xff] }
 0x316   : > { %v4576_v63 = vadd.f32 %v11626_v11, %v4556_v23  ;;  %6158 = vmatmul.f32.vlgmr.msrb.gmra.mxu3 %v11849_v22  ;;  %6452 = vmatpush.xpose.msra.mxu2 %v8073_v19  ;;  %v6775_v23 = vrot.slane %v11631_v59, 4 }
 0x317   : > { %6358 = vmatpush.xpose.msrb.mxu3 %v8062_v24  ;;  %6708 = vmatmul.f32.vlgmr.msrb.gmra.mxu1 %v6581_v31  ;;  %v8124_v24 = vld [vmem:[%s12230_s2 + $0xee8] sm:$0x3] }
 0x318   : > { %v4596_v56 = vadd.f32 %v4595_v54, %v4576_v63  ;;  %v4717_v11 = vpop.f32.mrf.mxu2  ;;  %6900 = vmatpush.xpose.msrb.mxu1 %v8108_v42  ;;  %v8089_v54 = vld [vmem:[%s12230_s2 + $0xdd0] sm:$0x3] }
 0x319   : > { %v4615_v12 = vpop.f32.mrf.mxu3  ;;  %v4718_v29 = vadd.f32 %v4717_v11, %v4698_v13  ;;  %7269 = vmatpush.xpose.msrb.mxu0 %v8131_v1  ;;  %v7352_v11 = vrot.slane %v11423_v30, 7  ;;  %v8116_v1 = vld [vmem:[%s12230_s2 + $0xea8] sm:$0xff] }
 0x31a   : > { %v4616_v15 = vadd.f32 %v4615_v12, %v4596_v56  ;;  %6453 = vmatpush.xpose.msra.mxu2 %v8065_v5  ;;  %v6388_v5 = vrot.slane %v11802_v36, 2  ;;  %v8093_v56 = vld [vmem:[%s12230_s2 + $0xdf0] sm:$0x3]  ;;  %v6385_v12 = vrot.slane %v11808_v51, 2 }
 0x31b   : > { %6359 = vmatpush.xpose.msrb.mxu3 %v8054_v60 }
 0x31c   : > { %v11888_v4 = vadd.f32 %v4616_v15, %v11813_v33  ;;  %v5279_v62 = vpop.f32.mrf.mxu1  ;;  %7190 = vmatmul.f32.vlgmr.msra.gmra.mxu0 %v7158_v37  ;;  %v8120_v33 = vld [vmem:[%s12230_s2 + $0xec8] sm:$0x3]  ;;  %6901 = vmatpush.xpose.msrb.mxu1 %v8100_v7  ;;  %v5647_v15 = vpop.f32.mrf.mxu0 }
 0x31d   : > { %6340 = vmatmul.f32.vlgmr.msrb.gmra.mxu2 %v6194_v58  ;;  %v11901_v48 = vadd.f32 %v5279_v62, %v11777_v18  ;;  %v8066_v18 = vld [vmem:[%s12230_s2 + $0xd18] sm:$0xff]  ;;  %7382 = vmatpush.xpose.msra.mxu0 %v8151_v26  ;;  %v8136_v37 = vld [vmem:[%s12230_s2 + $0xf48] sm:$0x3]  ;;  %v6578_v62 = vrot.slane %v11758_v55, 3  ;;  %v8105_v26 = vld [vmem:[%s12230_s2 + $0xe50] sm:$0x3] }
 0x31e   : > { %6280 = vmatmul.f32.vlgmr.msra.gmra.mxu3 %v6191_v21  ;;  %6532 = vmatpush.xpose.msrb.mxu2 %v8077_v0  ;;  %v6965_v0 = vrot.slane %v11595_v45, 5 }
 0x31f   : > { %6472 = vmatpush.xpose.msra.mxu3 %v8074_v50  ;;  %6822 = vmatmul.f32.vlgmr.msra.gmra.mxu1 %v6771_v38  ;;  %v7356_v38 = vrot.slane %v11463_v44, 7  ;;  %v6969_v44 = vrot.slane %v11631_v59, 5 }
 0x320   : > { %v4797_v49 = vpop.f32.mrf.mxu2  ;;  %7014 = vmatpush.xpose.msra.mxu1 %v8120_v33 }
 0x321   : > { %v4737_v9 = vpop.f32.mrf.mxu3  ;;  %7383 = vmatpush.xpose.msra.mxu0 %v8143_v32 }
 0x322   : > { %v4738_v35 = vadd.f32 %v4737_v9, %v4718_v29  ;;  %6533 = vmatpush.xpose.msrb.mxu2 %v8069_v47  ;;  %v8090_v29 = vld [vmem:[%s12230_s2 + $0xdd8] sm:$0x3]  ;;  %v6389_v47 = vrot.slane %v11849_v22, 2 }
 0x323   : > { %6473 = vmatpush.xpose.msra.mxu3 %v8066_v18  ;;  %v8128_v18 = vld [vmem:[%s12230_s2 + $0xf08] sm:$0xff] }
 0x324   : > { %v4758_v3 = vadd.f32 %v11538_v16, %v4738_v35  ;;  %v11931_v19 = vpop.f32.mrf.mxu1  ;;  %7270 = vmatmul.f32.vlgmr.msrb.gmra.mxu0 %v7162_v14  ;;  %7015 = vmatpush.xpose.msra.mxu1 %v8112_v27  ;;  %v5086_v35 = vadd.f32 %v11822_v20, %v11681_v41  ;;  %v8132_v41 = vld [vmem:[%s12230_s2 + $0xf28] sm:$0xff]  ;;  %v6582_v20 = vrot.slane %v11802_v36, 3 }
 0x325   : > { %6454 = vmatmul.f32.vlgmr.msra.gmra.mxu2 %v6384_v40  ;;  %7462 = vmatpush.xpose.msrb.mxu0 %v8155_v52  ;;  %v12000_v40 = vpop.f32.mrf.mxu0  ;;  %v8109_v52 = vld [vmem:[%s12230_s2 + $0xe70] sm:$0x3] }
 0x326   : > { %v4778_v16 = vadd.f32 %v11699_v28, %v4758_v3  ;;  %6360 = vmatmul.f32.vlgmr.msrb.gmra.mxu3 %v6195_v61  ;;  %6646 = vmatpush.xpose.msra.mxu2 %v8089_v54  ;;  %v8070_v28 = vld [vmem:[%s12230_s2 + $0xd38] sm:$0xff]  ;;  %v8097_v54 = vld [vmem:[%s12230_s2 + $0xe10] sm:$0xff] }
 0x327   : > { %6552 = vmatpush.xpose.msrb.mxu3 %v8078_v8  ;;  %6902 = vmatmul.f32.vlgmr.msrb.gmra.mxu1 %v6775_v23  ;;  %v8086_v3 = vld [vmem:[%s12230_s2 + $0xdb8] sm:$0xff]  ;;  %v6579_v23 = vrot.slane %v11808_v51, 3 }
 0x328   : > { %v4798_v63 = vadd.f32 %v4797_v49, %v4778_v16  ;;  %v4911_v31 = vpop.f32.mrf.mxu2  ;;  %7094 = vmatpush.xpose.msrb.mxu1 %v8124_v24  ;;  %v8094_v49 = vld [vmem:[%s12230_s2 + $0xdf8] sm:$0x3] }
 0x329   : > { %v4817_v42 = vpop.f32.mrf.mxu3  ;;  %v4912_v13 = vadd.f32 %v4911_v31, %v4892_v2  ;;  %7463 = vmatpush.xpose.msrb.mxu0 %v8147_v53  ;;  %v8106_v24 = vld [vmem:[%s12230_s2 + $0xe58] sm:$0x3]  ;;  %v8152_v31 = vld [vmem:[%s12230_s2 + $0xfc8] sm:$0x3] }
 0x32a   : > { %v4818_v25 = vadd.f32 %v4817_v42, %v4798_v63  ;;  %6647 = vmatpush.xpose.msra.mxu2 %v8081_v10  ;;  %v7159_v63 = vrot.slane %v11595_v45, 6 }
 0x32b   : > { %6553 = vmatpush.xpose.msrb.mxu3 %v8070_v28  ;;  %v8101_v28 = vld [vmem:[%s12230_s2 + $0xe30] sm:$0xff] }
 0x32c   : > { %v4820_v60 = vadd.f32 %v4818_v25, %v11888_v4  ;;  %v5473_v58 = vpop.f32.mrf.mxu1  ;;  %7384 = vmatmul.f32.vlgmr.msra.gmra.mxu0 %v7352_v11  ;;  %v8085_v4 = vld [vmem:[%s12230_s2 + $0xdb0] sm:$0xff]  ;;  %7095 = vmatpush.xpose.msrb.mxu1 %v8116_v1  ;;  %v6772_v11 = vrot.slane %v11758_v55, 4  ;;  %v8110_v1 = vld [vmem:[%s12230_s2 + $0xe78] sm:$0x3] }
 0x32d   : > { %6534 = vmatmul.f32.vlgmr.msrb.gmra.mxu2 %v6388_v5  ;;  %v11966_v30 = vadd.f32 %v5473_v58, %v11877_v39  ;;  %v8082_v39 = vld [vmem:[%s12230_s2 + $0xd98] sm:$0xff]  ;;  %v5841_v53 = vpop.f32.mrf.mxu0 }
 0x32e   : > { %6474 = vmatmul.f32.vlgmr.msra.gmra.mxu3 %v6385_v12  ;;  %6726 = vmatpush.xpose.msrb.mxu2 %v8093_v56  ;;  %v8144_v56 = vld [vmem:[%s12230_s2 + $0xf88] sm:$0xff] }
 0x32f   : > { %6666 = vmatpush.xpose.msra.mxu3 %v8090_v29  ;;  %7016 = vmatmul.f32.vlgmr.msra.gmra.mxu1 %v6965_v0  ;;  %v6583_v29 = vrot.slane %v11849_v22, 3  ;;  %v7163_v0 = vrot.slane %v11631_v59, 6 }
 0x330   : > { %v4991_v21 = vpop.f32.mrf.mxu2  ;;  %7208 = vmatpush.xpose.msra.mxu1 %v8136_v37  ;;  %v8113_v37 = vld [vmem:[%s12230_s2 + $0xe90] sm:$0xff] }
 0x331   : > { %v4931_v50 = vpop.f32.mrf.mxu3 }
 0x332   : > { %v4932_v7 = vadd.f32 %v4931_v50, %v4912_v13  ;;  %6727 = vmatpush.xpose.msrb.mxu2 %v8085_v4  ;;  %v8098_v13 = vld [vmem:[%s12230_s2 + $0xe18] sm:$0xff] }
 0x333   : > { %6667 = vmatpush.xpose.msra.mxu3 %v8082_v39 }
 0x334   : > { %v4952_v33 = vadd.f32 %v11639_v43, %v4932_v7  ;;  %v11991_v9 = vpop.f32.mrf.mxu1  ;;  %7464 = vmatmul.f32.vlgmr.msrb.gmra.mxu0 %v7356_v38  ;;  %v8140_v43 = vld [vmem:[%s12230_s2 + $0xf68] sm:$0x3]  ;;  %7209 = vmatpush.xpose.msra.mxu1 %v8128_v18  ;;  %v6776_v38 = vrot.slane %v11802_v36, 4 }
 0x335   : > { %6648 = vmatmul.f32.vlgmr.msra.gmra.mxu2 %v6578_v62  ;;  %v8148_v62 = vld [vmem:[%s12230_s2 + $0xfa8] sm:$0xff] }
 0x336   : > { %v4972_v32 = vadd.f32 %v11779_v6, %v4952_v33  ;;  %6554 = vmatmul.f32.vlgmr.msrb.gmra.mxu3 %v6389_v47  ;;  %6840 = vmatpush.xpose.msra.mxu2 %v8105_v26  ;;  %v12060_v26 = vpop.f32.mrf.mxu0  ;;  %v8125_v33 = vld [vmem:[%s12230_s2 + $0xef0] sm:$0x3] }
 0x337   : > { %6746 = vmatpush.xpose.msrb.mxu3 %v8094_v49  ;;  %7096 = vmatmul.f32.vlgmr.msrb.gmra.mxu1 %v6969_v44  ;;  %v6773_v49 = vrot.slane %v11808_v51, 4  ;;  %v7353_v44 = vrot.slane %v11595_v45, 7  ;;  %v8137_v45 = vld [vmem:[%s12230_s2 + $0xf50] sm:$0x3] }
 0x338   : > { %v4992_v6 = vadd.f32 %v4991_v21, %v4972_v32  ;;  %v5105_v14 = vpop.f32.mrf.mxu2  ;;  %7288 = vmatpush.xpose.msrb.mxu1 %v8140_v43  ;;  %v8117_v43 = vld [vmem:[%s12230_s2 + $0xeb0] sm:$0xff] }
 0x339   : > { %v5011_v61 = vpop.f32.mrf.mxu3  ;;  %v5106_v8 = vadd.f32 %v5105_v14, %v5086_v35 }
 0x33a   : > { %v5012_v27 = vadd.f32 %v5011_v61, %v4992_v6  ;;  %6841 = vmatpush.xpose.msra.mxu2 %v8097_v54  ;;  %v8114_v54 = vld [vmem:[%s12230_s2 + $0xe98] sm:$0xff] }
 0x33b   : > { %6747 = vmatpush.xpose.msrb.mxu3 %v8086_v3  ;;  %v6966_v3 = vrot.slane %v11758_v55, 5 }
 0x33c   : > { %v5014_v16 = vadd.f32 %v5012_v27, %v4820_v60  ;;  %v5667_v2 = vpop.f32.mrf.mxu1  ;;  %7289 = vmatpush.xpose.msrb.mxu1 %v8132_v41  ;;  %v8121_v60 = vld [vmem:[%s12230_s2 + $0xed0] sm:$0x3]  ;;  %v8126_v27 = vld [vmem:[%s12230_s2 + $0xef8] sm:$0x3] }
 0x33d   : > { %6728 = vmatmul.f32.vlgmr.msrb.gmra.mxu2 %v6582_v20  ;;  %v12019_v10 = vadd.f32 %v5667_v2, %v5647_v15  ;;  %v8118_v2 = vld [vmem:[%s12230_s2 + $0xeb8] sm:$0xff] }
 0x33e   : > { %6668 = vmatmul.f32.vlgmr.msra.gmra.mxu3 %v6579_v23  ;;  %6920 = vmatpush.xpose.msrb.mxu2 %v8109_v52  ;;  %v6019_v41 = vpop.f32.mrf.mxu0 }
 0x33f   : > { %6860 = vmatpush.xpose.msra.mxu3 %v8106_v24  ;;  %7210 = vmatmul.f32.vlgmr.msra.gmra.mxu1 %v7159_v63 }
 0x340   : > { %v5185_v42 = vpop.f32.mrf.mxu2  ;;  %7402 = vmatpush.xpose.msra.mxu1 %v8152_v31 }
 0x341   : > { %v5125_v25 = vpop.f32.mrf.mxu3 }
 0x342   : > { %v5126_v5 = vadd.f32 %v5125_v25, %v5106_v8  ;;  %6921 = vmatpush.xpose.msrb.mxu2 %v8101_v28  ;;  %v6777_v8 = vrot.slane %v11849_v22, 4  ;;  %v6970_v28 = vrot.slane %v11802_v36, 5 }
 0x343   : > { %6861 = vmatpush.xpose.msra.mxu3 %v8098_v13  ;;  %v6967_v13 = vrot.slane %v11808_v51, 5 }
 0x344   : > { %v5146_v12 = vadd.f32 %v11721_v57, %v5126_v5  ;;  %v12043_v15 = vpop.f32.mrf.mxu1  ;;  %7403 = vmatpush.xpose.msra.mxu1 %v8144_v56  ;;  %v8156_v57 = vld [vmem:[%s12230_s2 + $0xfe8] sm:$0x3]  ;;  %v8133_v56 = vld [vmem:[%s12230_s2 + $0xf30] sm:$0xff] }
 0x345   : > { %6842 = vmatmul.f32.vlgmr.msra.gmra.mxu2 %v6772_v11 }
 0x346   : > { %v5166_v58 = vadd.f32 %v11858_v46, %v5146_v12  ;;  %6748 = vmatmul.f32.vlgmr.msrb.gmra.mxu3 %v6583_v29  ;;  %7034 = vmatpush.xpose.msra.mxu2 %v8121_v60  ;;  %v8102_v46 = vld [vmem:[%s12230_s2 + $0xe38] sm:$0xff]  ;;  %v12109_v5 = vpop.f32.mrf.mxu0 }
 0x347   : > { %6940 = vmatpush.xpose.msrb.mxu3 %v8110_v1  ;;  %7290 = vmatmul.f32.vlgmr.msrb.gmra.mxu1 %v7163_v0  ;;  %v8130_v60 = vld [vmem:[%s12230_s2 + $0xf18] sm:$0xff]  ;;  %v7160_v1 = vrot.slane %v11758_v55, 6 }
 0x348   : > { %v5186_v4 = vadd.f32 %v5185_v42, %v5166_v58  ;;  %v5299_v21 = vpop.f32.mrf.mxu2  ;;  %7482 = vmatpush.xpose.msrb.mxu1 %v8156_v57  ;;  %v8153_v58 = vld [vmem:[%s12230_s2 + $0xfd0] sm:$0x3]  ;;  %v6971_v57 = vrot.slane %v11849_v22, 5 }
 0x349   : > { %v5205_v39 = vpop.f32.mrf.mxu3  ;;  %v5300_v50 = vadd.f32 %v5299_v21, %v11901_v48  ;;  %v8122_v48 = vld [vmem:[%s12230_s2 + $0xed8] sm:$0x3] }
 0x34a   : > { %v5206_v7 = vadd.f32 %v5205_v39, %v5186_v4  ;;  %7035 = vmatpush.xpose.msra.mxu2 %v8113_v37  ;;  %v8142_v37 = vld [vmem:[%s12230_s2 + $0xf78] sm:$0x3] }
 0x34b   : > { %6941 = vmatpush.xpose.msrb.mxu3 %v8102_v46  ;;  %v8145_v46 = vld [vmem:[%s12230_s2 + $0xf90] sm:$0xff] }
 0x34c   : > { %v5208_v47 = vadd.f32 %v5206_v7, %v5014_v16  ;;  %v5861_v18 = vpop.f32.mrf.mxu1  ;;  %7483 = vmatpush.xpose.msrb.mxu1 %v8148_v62  ;;  %v7357_v16 = vrot.slane %v11631_v59, 7  ;;  %v8141_v59 = vld [vmem:[%s12230_s2 + $0xf70] sm:$0x3] }
 0x34d   : > { %6922 = vmatmul.f32.vlgmr.msrb.gmra.mxu2 %v6776_v38  ;;  %v12070_v32 = vadd.f32 %v5861_v18, %v5841_v53  ;;  %v8138_v53 = vld [vmem:[%s12230_s2 + $0xf58] sm:$0x3] }
 0x34e   : > { %6862 = vmatmul.f32.vlgmr.msra.gmra.mxu3 %v6773_v49  ;;  %7114 = vmatpush.xpose.msrb.mxu2 %v8125_v33  ;;  %v6221_v7 = vpop.f32.mrf.mxu0  ;;  %v8154_v18 = vld [vmem:[%s12230_s2 + $0xfd8] sm:$0x3] }
 0x34f   : > { %7054 = vmatpush.xpose.msra.mxu3 %v8122_v48  ;;  %7404 = vmatmul.f32.vlgmr.msra.gmra.mxu1 %v7353_v44  ;;  %v7161_v48 = vrot.slane %v11808_v51, 6 }
 0x350   : > { %v5379_v35 = vpop.f32.mrf.mxu2 }
 0x351   : > { %v5319_v6 = vpop.f32.mrf.mxu3 }
 0x352   : > { %v5320_v14 = vadd.f32 %v5319_v6, %v5300_v50  ;;  %7115 = vmatpush.xpose.msrb.mxu2 %v8117_v43  ;;  %v8134_v50 = vld [vmem:[%s12230_s2 + $0xf38] sm:$0xff]  ;;  %v8149_v43 = vld [vmem:[%s12230_s2 + $0xfb0] sm:$0xff] }
 0x353   : > { %7055 = vmatpush.xpose.msra.mxu3 %v8114_v54  ;;  %v8146_v54 = vld [vmem:[%s12230_s2 + $0xf98] sm:$0xff] }
 0x354   : > { %v5340_v61 = vadd.f32 %v11832_v34, %v5320_v14  ;;  %v12088_v20 = vpop.f32.mrf.mxu1  ;;  %v8129_v34 = vld [vmem:[%s12230_s2 + $0xf10] sm:$0xff] }
 0x355   : > { %7036 = vmatmul.f32.vlgmr.msra.gmra.mxu2 %v6966_v3 }
 0x356   : > { %v5360_v52 = vadd.f32 %v11931_v19, %v5340_v61  ;;  %6942 = vmatmul.f32.vlgmr.msrb.gmra.mxu3 %v6777_v8  ;;  %7228 = vmatpush.xpose.msra.mxu2 %v8137_v45  ;;  %v6301_v3 = vpop.f32.mrf.mxu0  ;;  %v7354_v45 = vrot.slane %v11758_v55, 7  ;;  %v7165_v8 = vrot.slane %v11849_v22, 6  ;;  %v8150_v55 = vld [vmem:[%s12230_s2 + $0xfb8] sm:$0xff] }
 0x357   : > { %7134 = vmatpush.xpose.msrb.mxu3 %v8126_v27  ;;  %7484 = vmatmul.f32.vlgmr.msrb.gmra.mxu1 %v7357_v16  ;;  %v8158_v27 = vld [vmem:[%s12230_s2 + $0xff8] sm:$0x3] }
 0x358   : > { %v5380_v23 = vadd.f32 %v5379_v35, %v5360_v52  ;;  %v5493_v24 = vpop.f32.mrf.mxu2 }
 0x359   : > { %v5399_v63 = vpop.f32.mrf.mxu3  ;;  %v5494_v31 = vadd.f32 %v5493_v24, %v11966_v30 }
 0x35a   : > { %v5400_v19 = vadd.f32 %v5399_v63, %v5380_v23  ;;  %7229 = vmatpush.xpose.msra.mxu2 %v8129_v34 }
 0x35b   : > { %7135 = vmatpush.xpose.msrb.mxu3 %v8118_v2  ;;  %v7358_v2 = vrot.slane %v11802_v36, 7 }
 0x35c   : > { %v5402_v42 = vadd.f32 %v5400_v19, %v5208_v47  ;;  %v6039_v25 = vpop.f32.mrf.mxu1  ;;  %v8157_v47 = vld [vmem:[%s12230_s2 + $0xff0] sm:$0x3] }
 0x35d   : > { %7116 = vmatmul.f32.vlgmr.msrb.gmra.mxu2 %v6970_v28  ;;  %v12107_v30 = vadd.f32 %v6039_v25, %v6019_v41  ;;  %v7359_v25 = vrot.slane %v11849_v22, 7 }
 0x35e   : > { %7056 = vmatmul.f32.vlgmr.msra.gmra.mxu3 %v6967_v13  ;;  %7308 = vmatpush.xpose.msrb.mxu2 %v8141_v59  ;;  %v6415_v19 = vpop.f32.mrf.mxu0 }
 0x35f   : > { %7248 = vmatpush.xpose.msra.mxu3 %v8138_v53 }
 0x360   : > { %v5573_v11 = vpop.f32.mrf.mxu2 }
 0x361   : > { %v5513_v12 = vpop.f32.mrf.mxu3 }
 0x362   : > { %v5514_v29 = vadd.f32 %v5513_v12, %v5494_v31  ;;  %7309 = vmatpush.xpose.msrb.mxu2 %v8133_v56  ;;  %v7355_v31 = vrot.slane %v11808_v51, 7 }
 0x363   : > { %7249 = vmatpush.xpose.msra.mxu3 %v8130_v60 }
 0x364   : > { %v5534_v0 = vadd.f32 %v11916_v17, %v5514_v29  ;;  %v12126_v4 = vpop.f32.mrf.mxu1 }
 0x365   : > { %7230 = vmatmul.f32.vlgmr.msra.gmra.mxu2 %v7160_v1 }
 0x366   : > { %v5554_v21 = vadd.f32 %v11991_v9, %v5534_v0  ;;  %7136 = vmatmul.f32.vlgmr.msrb.gmra.mxu3 %v6971_v57  ;;  %7422 = vmatpush.xpose.msra.mxu2 %v8153_v58  ;;  %v7164_v9 = vrot.slane %v11802_v36, 6 }
 0x367   : > { %7328 = vmatpush.xpose.msrb.mxu3 %v8142_v37 }
 0x368   : > { %v5574_v39 = vadd.f32 %v5573_v11, %v5554_v21  ;;  %v5687_v17 = vpop.f32.mrf.mxu2 }
 0x369   : > { %v5593_v62 = vpop.f32.mrf.mxu3  ;;  %v5688_v38 = vadd.f32 %v5687_v17, %v12019_v10 }
 0x36a   : > { %v5594_v33 = vadd.f32 %v5593_v62, %v5574_v39  ;;  %7423 = vmatpush.xpose.msra.mxu2 %v8145_v46  ;;  %v6495_v39 = vpop.f32.mrf.mxu0 }
 0x36b   : > { %7329 = vmatpush.xpose.msrb.mxu3 %v8134_v50 }
 0x36c   : > { %v5596_v49 = vadd.f32 %v5594_v33, %v5402_v42  ;;  %v6241_v44 = vpop.f32.mrf.mxu1 }
 0x36d   : > { %7310 = vmatmul.f32.vlgmr.msrb.gmra.mxu2 %v7164_v9  ;;  %v6242_v10 = vadd.f32 %v6241_v44, %v6221_v7 }
 0x36e   : > { %7250 = vmatmul.f32.vlgmr.msra.gmra.mxu3 %v7161_v48  ;;  %7502 = vmatpush.xpose.msrb.mxu2 %v8157_v47 }
 0x36f   : > { %7442 = vmatpush.xpose.msra.mxu3 %v8154_v18 }
 0x370   : > { %v5767_v35 = vpop.f32.mrf.mxu2 }
 0x371   : > { %v5707_v6 = vpop.f32.mrf.mxu3 }
 0x372   : > { %v5708_v14 = vadd.f32 %v5707_v6, %v5688_v38  ;;  %7503 = vmatpush.xpose.msrb.mxu2 %v8149_v43  ;;  %v6609_v47 = vpop.f32.mrf.mxu0 }
 0x373   : > { %7443 = vmatpush.xpose.msra.mxu3 %v8146_v54 }
 0x374   : > { %v5728_v61 = vadd.f32 %v12000_v40, %v5708_v14  ;;  %v6321_v41 = vpop.f32.mrf.mxu1 }
 0x375   : > { %7424 = vmatmul.f32.vlgmr.msra.gmra.mxu2 %v7354_v45 }
 0x376   : > { %v5748_v52 = vadd.f32 %v12043_v15, %v5728_v61  ;;  %7330 = vmatmul.f32.vlgmr.msrb.gmra.mxu3 %v7165_v8 }
 0x377   : > { %7522 = vmatpush.xpose.msrb.mxu3 %v8158_v27 }
 0x378   : > { %v5768_v16 = vadd.f32 %v5767_v35, %v5748_v52  ;;  %v5881_v34 = vpop.f32.mrf.mxu2 }
 0x379   : > { %v5787_v23 = vpop.f32.mrf.mxu3  ;;  %v5882_v40 = vadd.f32 %v5881_v34, %v12070_v32 }
 0x37a   : > { %v5788_v24 = vadd.f32 %v5787_v23, %v5768_v16  ;;  %v6689_v35 = vpop.f32.mrf.mxu0 }
 0x37b   : > { %7523 = vmatpush.xpose.msrb.mxu3 %v8150_v55 }
 0x37c   : > { %v5790_v63 = vadd.f32 %v5788_v24, %v5596_v49  ;;  %v6435_v15 = vpop.f32.mrf.mxu1 }
 0x37d   : > { %7504 = vmatmul.f32.vlgmr.msrb.gmra.mxu2 %v7358_v2  ;;  %v6436_v28 = vadd.f32 %v6435_v15, %v6415_v19 }
 0x37e   : > { %7444 = vmatmul.f32.vlgmr.msra.gmra.mxu3 %v7355_v31 }
 0x380   : > { %v5961_v59 = vpop.f32.mrf.mxu2 }
 0x381   : > { %v5901_v42 = vpop.f32.mrf.mxu3 }
 0x382   : > { %v5902_v13 = vadd.f32 %v5901_v42, %v5882_v40 }
 0x384   : > { %v5922_v53 = vadd.f32 %v12060_v26, %v5902_v13  ;;  %v6515_v50 = vpop.f32.mrf.mxu1 }
 0x386   : > { %v5942_v32 = vadd.f32 %v12088_v20, %v5922_v53  ;;  %7524 = vmatmul.f32.vlgmr.msrb.gmra.mxu3 %v7359_v25 }
 0x388   : > { %v5962_v36 = vadd.f32 %v5961_v59, %v5942_v32  ;;  %v6059_v56 = vpop.f32.mrf.mxu2 }
 0x389   : > { %v5981_v11 = vpop.f32.mrf.mxu3  ;;  %v6060_v51 = vadd.f32 %v6059_v56, %v12107_v30 }
 0x38a   : > { %v5982_v60 = vadd.f32 %v5981_v11, %v5962_v36 }
 0x38c   : > { %v5984_v12 = vadd.f32 %v5982_v60, %v5790_v63 }
 0x390   : > { %v6139_v29 = vpop.f32.mrf.mxu2 }
 0x391   : > { %v6079_v1 = vpop.f32.mrf.mxu3 }
 0x392   : > { %v6080_v58 = vadd.f32 %v6079_v1, %v6060_v51 }
 0x394   : > { %v6100_v0 = vadd.f32 %v12109_v5, %v6080_v58 }
 0x396   : > { %v6120_v57 = vadd.f32 %v12126_v4, %v6100_v0  ;;  %v6629_v4 = vpop.f32.mrf.mxu1 }
 0x397   : > { %v6630_v11 = vadd.f32 %v6629_v4, %v6609_v47 }
 0x398   : > { %v6140_v26 = vadd.f32 %v6139_v29, %v6120_v57  ;;  %v6261_v37 = vpop.f32.mrf.mxu2 }
 0x399   : > { %v6159_v22 = vpop.f32.mrf.mxu3  ;;  %v6262_v21 = vadd.f32 %v6261_v37, %v6242_v10 }
 0x39a   : > { %v6160_v20 = vadd.f32 %v6159_v22, %v6140_v26 }
 0x39c   : > { %v6162_v46 = vadd.f32 %v6160_v20, %v5984_v12 }
 0x39e   : > { %v6709_v6 = vpop.f32.mrf.mxu1 }
 0x3a0   : > { %v6341_v17 = vpop.f32.mrf.mxu2 }
 0x3a1   : > { %v6281_v7 = vpop.f32.mrf.mxu3 }
 0x3a2   : > { %v6282_v30 = vadd.f32 %v6281_v7, %v6262_v21 }
 0x3a4   : > { %v6302_v62 = vadd.f32 %v6301_v3, %v6282_v30 }
 0x3a6   : > { %v6322_v38 = vadd.f32 %v6321_v41, %v6302_v62  ;;  %v6803_v41 = vpop.f32.mrf.mxu0  ;;  %v6823_v52 = vpop.f32.mrf.mxu1 }
 0x3a7   : > { %v6824_v51 = vadd.f32 %v6823_v52, %v6803_v41 }
 0x3a8   : > { %v6342_v33 = vadd.f32 %v6341_v17, %v6322_v38  ;;  %v6455_v9 = vpop.f32.mrf.mxu2 }
 0x3a9   : > { %v6361_v49 = vpop.f32.mrf.mxu3  ;;  %v6456_v5 = vadd.f32 %v6455_v9, %v6436_v28 }
 0x3aa   : > { %v6362_v48 = vadd.f32 %v6361_v49, %v6342_v33 }
 0x3ac   : > { %v6364_v18 = vadd.f32 %v6362_v48, %v6162_v46 }
 0x3ae   : > { %v6883_v55 = vpop.f32.mrf.mxu0  ;;  %v6903_v40 = vpop.f32.mrf.mxu1 }
 0x3b0   : > { %v6535_v44 = vpop.f32.mrf.mxu2 }
 0x3b1   : > { %v6475_v43 = vpop.f32.mrf.mxu3 }
 0x3b2   : > { %v6476_v10 = vadd.f32 %v6475_v43, %v6456_v5 }
 0x3b4   : > { %v6496_v54 = vadd.f32 %v6495_v39, %v6476_v10 }
 0x3b6   : > { %v6516_v14 = vadd.f32 %v6515_v50, %v6496_v54  ;;  %v6997_v63 = vpop.f32.mrf.mxu0  ;;  %v7017_v19 = vpop.f32.mrf.mxu1 }
 0x3b7   : > { %v7018_v29 = vadd.f32 %v7017_v19, %v6997_v63 }
 0x3b8   : > { %v6536_v45 = vadd.f32 %v6535_v44, %v6516_v14  ;;  %v6649_v61 = vpop.f32.mrf.mxu2 }
 0x3b9   : > { %v6555_v8 = vpop.f32.mrf.mxu3  ;;  %v6650_v60 = vadd.f32 %v6649_v61, %v6630_v11 }
 0x3ba   : > { %v6556_v3 = vadd.f32 %v6555_v8, %v6536_v45 }
 0x3bc   : > { %v6558_v27 = vadd.f32 %v6556_v3, %v6364_v18 }
 0x3be   : > { %v7077_v59 = vpop.f32.mrf.mxu0  ;;  %v7097_v42 = vpop.f32.mrf.mxu1 }
 0x3c0   : > { %v6729_v16 = vpop.f32.mrf.mxu2 }
 0x3c1   : > { %v6669_v34 = vpop.f32.mrf.mxu3 }
 0x3c2   : > { %v6670_v1 = vadd.f32 %v6669_v34, %v6650_v60 }
 0x3c4   : > { %v6690_v20 = vadd.f32 %v6689_v35, %v6670_v1 }
 0x3c6   : > { %v7191_v25 = vpop.f32.mrf.mxu0  ;;  %v7211_v32 = vpop.f32.mrf.mxu1  ;;  %v6710_v7 = vadd.f32 %v6709_v6, %v6690_v20 }
 0x3c7   : > { %v7212_v26 = vadd.f32 %v7211_v32, %v7191_v25 }
 0x3c8   : > { %v6843_v23 = vpop.f32.mrf.mxu2  ;;  %v6730_v49 = vadd.f32 %v6729_v16, %v6710_v7 }
 0x3c9   : > { %v6749_v24 = vpop.f32.mrf.mxu3  ;;  %v6844_v58 = vadd.f32 %v6843_v23, %v6824_v51 }
 0x3ca   : > { %v6750_v43 = vadd.f32 %v6749_v24, %v6730_v49 }
 0x3cc   : > { %v6752_v8 = vadd.f32 %v6750_v43, %v6558_v27  ;;  %v7529_v27 = vld [vmem:[%s12231_s3] sm:$0x1] }
 0x3ce   : > { %v7271_v12 = vpop.f32.mrf.mxu0  ;;  %v7291_v0 = vpop.f32.mrf.mxu1 }
 0x3d0   : > { %v6923_v2 = vpop.f32.mrf.mxu2 }
 0x3d1   : > { %v6863_v31 = vpop.f32.mrf.mxu3 }
 0x3d2   : > { %v6864_v37 = vadd.f32 %v6863_v31, %v6844_v58 }
 0x3d4   : > { %v6884_v17 = vadd.f32 %v6883_v55, %v6864_v37 }
 0x3d6   : > { %v7385_v62 = vpop.f32.mrf.mxu0  ;;  %v6904_v33 = vadd.f32 %v6903_v40, %v6884_v17  ;;  %v7405_v47 = vpop.f32.mrf.mxu1 }
 0x3d7   : > { %v7406_v18 = vadd.f32 %v7405_v47, %v7385_v62 }
 0x3d8   : > { %v7037_v15 = vpop.f32.mrf.mxu2  ;;  %v6924_v4 = vadd.f32 %v6923_v2, %v6904_v33 }
 0x3d9   : > { %v6943_v28 = vpop.f32.mrf.mxu3  ;;  %v7038_v22 = vadd.f32 %v7037_v15, %v7018_v29 }
 0x3da   : > { %v6944_v14 = vadd.f32 %v6943_v28, %v6924_v4 }
 0x3dc   : > { %v6946_v34 = vadd.f32 %v6944_v14, %v6752_v8 }
 0x3de   : > { %v7465_v61 = vpop.f32.mrf.mxu0  ;;  %v7485_v52 = vpop.f32.mrf.mxu1 }
 0x3e0   : > { %v7117_v13 = vpop.f32.mrf.mxu2 }
 0x3e1   : > { %v7057_v53 = vpop.f32.mrf.mxu3 }
 0x3e2   : > { %v7058_v46 = vadd.f32 %v7057_v53, %v7038_v22 }
 0x3e4   : > { %v7078_v30 = vadd.f32 %v7077_v59, %v7058_v46 }
 0x3e6   : > { %v7098_v5 = vadd.f32 %v7097_v42, %v7078_v30 }
 0x3e8   : > { %v7231_v56 = vpop.f32.mrf.mxu2  ;;  %v7118_v10 = vadd.f32 %v7117_v13, %v7098_v5 }
 0x3e9   : > { %v7137_v36 = vpop.f32.mrf.mxu3  ;;  %v7232_v39 = vadd.f32 %v7231_v56, %v7212_v26 }
 0x3ea   : > { %v7138_v3 = vadd.f32 %v7137_v36, %v7118_v10 }
 0x3ec   : > { %v7140_v40 = vadd.f32 %v7138_v3, %v6946_v34 }
 0x3f0   : > { %v7311_v21 = vpop.f32.mrf.mxu2 }
 0x3f1   : > { %v7251_v57 = vpop.f32.mrf.mxu3 }
 0x3f2   : > { %v7252_v50 = vadd.f32 %v7251_v57, %v7232_v39 }
 0x3f4   : > { %v7272_v9 = vadd.f32 %v7271_v12, %v7252_v50 }
 0x3f6   : > { %v7292_v44 = vadd.f32 %v7291_v0, %v7272_v9 }
 0x3f8   : > { %v7425_v48 = vpop.f32.mrf.mxu2  ;;  %v7312_v45 = vadd.f32 %v7311_v21, %v7292_v44 }
 0x3f9   : > { %v7331_v38 = vpop.f32.mrf.mxu3  ;;  %v7426_v35 = vadd.f32 %v7425_v48, %v7406_v18 }
 0x3fa   : > { %v7332_v16 = vadd.f32 %v7331_v38, %v7312_v45 }
 0x3fc   : > { %v7334_v24 = vadd.f32 %v7332_v16, %v7140_v40 }
 0x400   : > { %v7505_v23 = vpop.f32.mrf.mxu2 }
 0x401   : > { %v7445_v54 = vpop.f32.mrf.mxu3 }
 0x402   : > { %v7446_v6 = vadd.f32 %v7445_v54, %v7426_v35 }
 0x404   : > { %v7466_v41 = vadd.f32 %v7465_v61, %v7446_v6 }
 0x406   : > { %v7486_v55 = vadd.f32 %v7485_v52, %v7466_v41 }
 0x408   : > { %v7506_v2 = vadd.f32 %v7505_v23, %v7486_v55 }
 0x409   : > { %v7525_v63 = vpop.f32.mrf.mxu3 }
 0x40a   : > { %v7526_v31 = vadd.f32 %v7525_v63, %v7506_v2 }
 0x40c   : > { %v7528_v19 = vadd.f32 %v7526_v31, %v7334_v24 }
 0x40e   : > { %v7530_v15 = vadd.f32 %v7529_v27, %v7528_v19 }
 0x410   : > { %v7533_v28 = vsel %vm7531_vm0, %v7530_v15, -inf  ;;  %7532 = vst.msk [vmem:[%s226_s13] sm:$0x1] %vm7531_vm0, %v7530_v15 }
 0x411   : > { %7534 = vmax.xlane.f32.xlu0 %v7533_v28 }
 0x484   : > { %v7535_v59 = vpop.xlane.xlu0 %7534 }
 0x485   : > { %v7536_v42 = vsub.f32 %v7530_v15, %v7535_v59 }
 0x487   : > { %v7537_v13 = vmul.f32 1.442695, %v7536_v42 }
 0x489   : > { %8206 = vpow2.f32 %v7537_v13 }
 0x48f   : > { %v8207_v53 = vpop.eup %8206 }
 0x490   : > { %v7539_v25 = vsel %vm7531_vm0, %v8207_v53, 0.0 }
 0x491   : > { %7540 = vadd.xlane.f32.xlu0 %v7539_v25 }
 0x492   : > { %8249 = shalt.err (!%p8246_p3)
}
 0x493   : > { %8163 = dma.vmem_to_hbm [thread:$0]  (%p8386_p5), %s7574_s10, 16, %s7576_s11, %s7550_s12  }
 0x494   : > { %s7558_s8 = scalar_lea.hbm %s12232_s4, %s8369_s22  ;;  %s220_s15 = scalar_lea.vmem [#allocation2], %s12170_s30 }
 0x495   : > { %s7560_s9 = sshll.u32 %s220_s15, 4  ;;  %s7562_s14 = sshll.u32 %s7558_s8, 4  ;;  %s7561_s9 = int_to_ptr.vmem [resolvable:$true] %s7560_s9  ;;  %s7563_s14 = int_to_ptr.hbm [resolvable:$true] %s7562_s14 }
 0x496   : > { %s7546_s25 = scalar_lea.sflag [#allocation3], %s12170_s30  ;;  %s8264_s16 = sshra.s32 %s7563_s14, 4  ;;  %s8265_s16 = int_to_ptr.hbm [resolvable:$true] %s8264_s16 }
 0x497   : > { %s8266_s10 = scalar_lea.hbm %s8265_s16, 1  ;;  %s8270_s22 = scalar_lea.hbm %s12232_s4, 2 }
 0x498   : > { %p8267_p4 = scmp.ne.s32.totalorder %s8265_s16, %s8266_s10  ;;  %p8271_p9 = scmp.lt.s32.totalorder %s8265_s16, %s12232_s4 }
 0x499   : > { %p8272_p10 = scmp.lt.s32.totalorder %s8270_s22, %s8266_s10 }
 0x49a   : > { %p8268_p7 = pnand %p8267_p4, %p8386_p5 }
 0x49b   : > { %p8273_p11 = por %p8272_p10, %p8271_p9 }
 0x49c   : > { %p8269_p8 = pneg %p8268_p7 }
 0x49e   : > { %p8274_p12 = pnand %p8273_p11, %p8269_p8 }
 0x504   : > { %v7541_v32 = vpop.xlane.xlu0 %7540 }
 0x505   : > { %8208 = vrcp.f32 %v7541_v32 }
 0x50b   : > { %v8209_v36 = vpop.eup %8208 }
 0x50c   : > { %v7543_v56 = vmul.f32 %v8209_v36, %v8207_v53 }
 0x50e   : > { %7544 = vst.msk [vmem:[%s220_s15] sm:$0x1] %vm7531_vm0, %v7543_v56 }
 0x50f   : > { %8277 = shalt.err (!%p8274_p12)
}
 0x510   : > { %8162 = dma.vmem_to_hbm [thread:$0]  (%p8386_p5), %s7561_s9, 16, %s7563_s14, %s7546_s25  }
 0x511 PF: > { %p8173_p13 = scmp.ge.s32.totalorder %s8316_s21, 2  ;;  %s7587_s30 = sand.u32 1, %s8304_s18  }
 0x512   : > { %s7588_s26 = scalar_lea.sflag [#allocation3], %s7587_s30 }
 0x513   : > { %p8167_p0 = pnand %p8173_p13, %p8390_p6 }
 0x515   : > { %p8168_p1 = pneg %p8167_p0 }
 0x517   : > { %8295 = dma.done.wait (%p8168_p1), %s7588_s26, 16  }
 0x518   : > { %8297 = vsyncadd (%p8168_p1), %s7588_s26, 4294967280  ;;  %s7597_s6 = scalar_lea.sflag [#allocation5], %s7587_s30 }
 0x519   : > { %8299 = dma.done.wait (%p8168_p1), %s7597_s6, 16  }
 0x51a   : > { %8301 = vsyncadd (%p8168_p1), %s7597_s6, 4294967280  ;;  %p19_p5 = scmp.ge.s32.totalorder %s8373_s24, 4   ;;  %s12284_s18 = smov %s8308_s19 }
 0x51b   : > { %s12285_s19 = smov %s8312_s20  ;;  %s12286_s20 = smov %s8384_s27 }
 0x51c   : > { %s12287_s21 = smov %s8373_s24  ;;  %21 = sbr.rel (!%p19_p5) target bundleno = 5 (0x5), region = 119 }
 0x521   :  { %7602 = vsyncpa [#allocation3], 1 }
 0x522   :  { %7604 = vsyncpa [#allocation3 + $0x1], 1 }
 0x523   :  { %7605 = vsyncpa [#allocation5], 1 }
 0x524   :  { %7607 = vsyncpa [#allocation5 + $0x1], 1 }

</bundles_post_ra>
